<compile_context>
chip_gen: v5e
topology: v5e:2x2
jax: 0.10.0
libtpu: 0.0.40
codegen_flags: <defaults>
</compile_context>

<pallas_src>
import functools

import jax
import jax.numpy as jnp
from jax.experimental import pallas as pl
from jax.experimental.pallas import tpu as pltpu


def _round_up(v, m):
    return (v + m - 1) // m * m


def _cdiv(a, b):
    return -(-a // b)


def _conv_out(sz, k, s):
    return (sz - k) // s + 1


def _pick_batch_block(b, cap=8):
    """Images per grid step: >=2 grid blocks whenever b >= 2 (pipelining +
    v7x megacore split), with per-block VMEM bounded by `cap` images."""
    nb = 1 if b < 2 else min(cap, max(1, b // 2))
    return nb, _cdiv(b, nb)


# ----------------------------------------------------------------------------
# Pallas kernel 1: fused im2col + matmul + bias + ReLU (stride-1 conv, NHWC)
# ----------------------------------------------------------------------------
def _conv_kernel(x_ref, w_ref, b_ref, o_ref, *, kh, kw, oh, ow):
    nb = x_ref.shape[0]
    c = x_ref.shape[3]
    oc = o_ref.shape[3]
    m = nb * oh * ow
    acc = jnp.zeros((m, oc), jnp.float32)
    for i in range(kh):                       # window extraction stays in VMEM
        for j in range(kw):
            xij = x_ref[:, i:i + oh, j:j + ow, :].reshape(m, c)
            wij = w_ref[(i * kw + j) * c:(i * kw + j + 1) * c, :]
            acc = acc + jnp.dot(xij, wij, preferred_element_type=jnp.float32)
    acc = jnp.maximum(acc + b_ref[...], 0.0)
    o_ref[...] = acc.reshape(nb, oh, ow, oc).astype(o_ref.dtype)


def _conv_pallas(x, w_mat, b_row, *, kh, kw, oh, ow, nb_cap=8):
    bsz, ih, iw, c = x.shape
    oc = w_mat.shape[1]
    nb, grid = _pick_batch_block(bsz, nb_cap)
    bp = nb * grid
    if bp != bsz:
        x = jnp.pad(x, ((0, bp - bsz), (0, 0), (0, 0), (0, 0)))
    kdim = kh * kw * c
    cost = pl.CostEstimate(
        flops=2 * bp * oh * ow * kdim * oc,
        transcendentals=0,
        bytes_accessed=int(bp * ih * iw * c * 2 + kdim * oc * 2 + oc * 4
                           + bp * oh * ow * oc * 2))
    out = pl.pallas_call(
        functools.partial(_conv_kernel, kh=kh, kw=kw, oh=oh, ow=ow),
        out_shape=jax.ShapeDtypeStruct((bp, oh, ow, oc), jnp.bfloat16),
        grid=(grid,),
        in_specs=[
            pl.BlockSpec((nb, ih, iw, c), lambda i: (i, 0, 0, 0)),   # per-block
            pl.BlockSpec((kdim, oc), lambda i: (0, 0)),              # resident
            pl.BlockSpec((1, oc), lambda i: (0, 0)),                 # resident
        ],
        out_specs=pl.BlockSpec((nb, oh, ow, oc), lambda i: (i, 0, 0, 0)),
        compiler_params=pltpu.CompilerParams(
            dimension_semantics=("parallel",)),
        cost_estimate=cost,
    )(x, w_mat, b_row)
    return out[:bsz] if bp != bsz else out


def conv_layer(x, w_mat, b_row, *, k, s, nb_cap=8):
    """Valid conv (kernel k, stride s) + ReLU on NHWC bf16 input.  Strides are
    removed via a bijective space-to-depth rearrangement (weight half was done
    once in prepare_params)."""
    bsz, h, w, c = x.shape
    oh, ow = _conv_out(h, k, s), _conv_out(w, k, s)
    if s > 1:
        assert k % s == 0, "space-to-depth conv requires k % s == 0"
        hc, wc = s * (oh - 1) + k, s * (ow - 1) + k      # drop unused rows/cols
        x = x[:, :hc, :wc, :]
        x = x.reshape(bsz, hc // s, s, wc // s, s, c)
        x = jnp.transpose(x, (0, 1, 3, 2, 4, 5))
        x = x.reshape(bsz, hc // s, wc // s, s * s * c)
    kh = kw = k // s
    return _conv_pallas(x, w_mat, b_row, kh=kh, kw=kw, oh=oh, ow=ow,
                        nb_cap=nb_cap)


# ----------------------------------------------------------------------------
# Pallas kernel 2: fused tail  conv3(3x3,s1)+ReLU -> flatten -> FC1+ReLU -> FC2
# ----------------------------------------------------------------------------
def _tail_kernel(x_ref, w3_ref, b3_ref, wf1_ref, bf1_ref, wf2_ref, bf2_ref,
                 o_ref, *, kh, kw, oh, ow):
    nb = x_ref.shape[0]
    c = x_ref.shape[3]
    oc3 = w3_ref.shape[1]
    hid = wf1_ref.shape[1]
    m = nb * oh * ow
    # conv3: fused in-VMEM window extraction, f32 accumulation.
    acc3 = jnp.zeros((m, oc3), jnp.float32)
    for i in range(kh):
        for j in range(kw):
            xij = x_ref[:, i:i + oh, j:j + ow, :].reshape(m, c)
            w_blk = w3_ref[(i * kw + j) * c:(i * kw + j + 1) * c, :]
            acc3 = acc3 + jnp.dot(xij, w_blk,
                                  preferred_element_type=jnp.float32)
    h = jnp.maximum(acc3 + b3_ref[...], 0.0).astype(jnp.bfloat16)   # (m, oc3)
    h = h.reshape(nb, oh * ow, oc3)
    # FC1: flatten @ wf1 done as one matmul per spatial position (wf1 rows were
    # pre-permuted to NHWC order) -- avoids a lane-changing flatten reshape.
    acc1 = jnp.zeros((nb, hid), jnp.float32)
    for r in range(oh * ow):
        acc1 = acc1 + jnp.dot(h[:, r, :], wf1_ref[r * oc3:(r + 1) * oc3, :],
                              preferred_element_type=jnp.float32)
    h1 = jnp.maximum(acc1 + bf1_ref[...], 0.0).astype(jnp.bfloat16)
    # FC2 (lane-dense 128-wide padded output columns).
    out = jnp.dot(h1, wf2_ref[...], preferred_element_type=jnp.float32)
    out = out + bf2_ref[...]
    o_ref[...] = out.reshape(1, nb, -1).astype(o_ref.dtype)


def tail_pallas(x, w3_mat, b3_row, wf1, bf1_row, wf2p, bf2p_row, *, k3,
                n_actions, nb_cap=8):
    bsz, ih, iw, c = x.shape
    oh, ow = ih - k3 + 1, iw - k3 + 1
    oc3 = w3_mat.shape[1]
    hid = wf1.shape[1]
    n_out = wf2p.shape[1]
    nb, grid = _pick_batch_block(bsz, nb_cap)
    bp = nb * grid
    if bp != bsz:
        x = jnp.pad(x, ((0, bp - bsz), (0, 0), (0, 0), (0, 0)))
    flops = 2 * bp * (oh * ow * (k3 * k3 * c) * oc3 + (oh * ow * oc3) * hid
                      + hid * n_out)
    bytes_acc = int(bp * ih * iw * c * 2
                    + (w3_mat.size + wf1.size + wf2p.size) * 2
                    + (oc3 + hid + n_out) * 4 + bp * n_out * 4)
    cost = pl.CostEstimate(flops=flops, transcendentals=0,
                           bytes_accessed=bytes_acc)
    out = pl.pallas_call(
        functools.partial(_tail_kernel, kh=k3, kw=k3, oh=oh, ow=ow),
        out_shape=jax.ShapeDtypeStruct((grid, nb, n_out), jnp.float32),
        grid=(grid,),
        in_specs=[
            pl.BlockSpec((nb, ih, iw, c), lambda i: (i, 0, 0, 0)),
            pl.BlockSpec((k3 * k3 * c, oc3), lambda i: (0, 0)),
            pl.BlockSpec((1, oc3), lambda i: (0, 0)),
            pl.BlockSpec((oh * ow * oc3, hid), lambda i: (0, 0)),
            pl.BlockSpec((1, hid), lambda i: (0, 0)),
            pl.BlockSpec((hid, n_out), lambda i: (0, 0)),
            pl.BlockSpec((1, n_out), lambda i: (0, 0)),
        ],
        out_specs=pl.BlockSpec((1, nb, n_out), lambda i: (i, 0, 0)),
        compiler_params=pltpu.CompilerParams(
            dimension_semantics=("parallel",)),
        cost_estimate=cost,
    )(x, w3_mat, b3_row, wf1, bf1_row, wf2p, bf2p_row)
    return out.reshape(bp, n_out)[:bsz, :n_actions]


# ----------------------------------------------------------------------------
# QNet parameters (PyTorch-style uniform(-1/sqrt(fan_in), 1/sqrt(fan_in)))
# ----------------------------------------------------------------------------
def init_qnet_params(key, input_shape, n_actions):
    c, h, w = input_shape
    keys = jax.random.split(key, 10)

    def u(k, shape, fan_in):
        bound = 1.0 / float(fan_in) ** 0.5
        return jax.random.uniform(k, shape, jnp.float32, -bound, bound)

    p = {}
    p["w1"] = u(keys[0], (8, 8, c, 32), c * 8 * 8)
    p["b1"] = u(keys[1], (32,), c * 8 * 8)
    p["w2"] = u(keys[2], (4, 4, 32, 64), 32 * 4 * 4)
    p["b2"] = u(keys[3], (64,), 32 * 4 * 4)
    p["w3"] = u(keys[4], (3, 3, 64, 64), 64 * 3 * 3)
    p["b3"] = u(keys[5], (64,), 64 * 3 * 3)

    h1, w1 = _conv_out(h, 8, 4), _conv_out(w, 8, 4)
    h2, w2 = _conv_out(h1, 4, 2), _conv_out(w1, 4, 2)
    h3, w3 = _conv_out(h2, 3, 1), _conv_out(w2, 3, 1)
    conv_out_size = 64 * h3 * w3                        # mirrors _get_conv_out

    p["wf1"] = u(keys[6], (conv_out_size, 512), conv_out_size)
    p["bf1"] = u(keys[7], (512,), conv_out_size)
    p["wf2"] = u(keys[8], (512, n_actions), 512)
    p["bf2"] = u(keys[9], (n_actions,), 512)
    return p


def _s2d_weight_matrix(w_hwio, s):
    """(KH, KW, C, OC) -> im2col matrix (KH/s*KW/s*s*s*C, OC) matching the
    runtime space-to-depth activation channel order, cast to bf16."""
    kh, kw, c, oc = w_hwio.shape
    assert kh % s == 0 and kw % s == 0
    w = w_hwio.reshape(kh // s, s, kw // s, s, c, oc)    # (di, ri, dj, rj, c, oc)
    w = jnp.transpose(w, (0, 2, 1, 3, 4, 5))             # (di, dj, ri, rj, c, oc)
    return w.reshape((kh // s) * (kw // s) * s * s * c, oc).astype(jnp.bfloat16)


def prepare_params(params, input_shape, n_actions):
    """One-time prep: s2d weight rearrangement for strided convs, im2col weight
    matrices, NCHW-flatten permutation folded into wf1's rows, bf16 weights,
    f32 (1, N) biases, n_actions padded to a lane-dense 128-wide column block."""
    c, h, w = input_shape
    h1, w1 = _conv_out(h, 8, 4), _conv_out(w, 8, 4)
    h2, w2 = _conv_out(h1, 4, 2), _conv_out(w1, 4, 2)
    h3, w3 = _conv_out(h2, 3, 1), _conv_out(w2, 3, 1)
    oc3 = 64

    prep = {}
    prep["w1"] = _s2d_weight_matrix(params["w1"], 4)     # (256, 32)
    prep["w2"] = _s2d_weight_matrix(params["w2"], 2)     # (512, 64)
    prep["w3"] = _s2d_weight_matrix(params["w3"], 1)     # (576, 64)
    prep["b1"] = params["b1"].astype(jnp.float32).reshape(1, -1)
    prep["b2"] = params["b2"].astype(jnp.float32).reshape(1, -1)
    prep["b3"] = params["b3"].astype(jnp.float32).reshape(1, -1)

    yy, xx, cc = jnp.meshgrid(jnp.arange(h3), jnp.arange(w3), jnp.arange(oc3),
                              indexing="ij")
    nchw_rows = (cc * (h3 * w3) + yy * w3 + xx).reshape(-1)  # NHWC pos -> NCHW row
    prep["wf1"] = params["wf1"][nchw_rows, :].astype(jnp.bfloat16)
    prep["bf1"] = params["bf1"].astype(jnp.float32).reshape(1, -1)

    n_out = _round_up(n_actions, 128)
    prep["wf2"] = jnp.pad(params["wf2"],
                          ((0, 0), (0, n_out - n_actions))).astype(jnp.bfloat16)
    prep["bf2"] = jnp.pad(params["bf2"],
                          (0, n_out - n_actions)).astype(jnp.float32).reshape(1, -1)
    return prep


# ----------------------------------------------------------------------------
# Forward pass (Pallas) and a pure-JAX reference (same bf16 rounding policy)
# ----------------------------------------------------------------------------
def qnet_forward(prep, x_nchw, *, n_actions):
    x = jnp.transpose(x_nchw, (0, 2, 3, 1)).astype(jnp.bfloat16)   # NCHW->NHWC
    x = conv_layer(x, prep["w1"], prep["b1"], k=8, s=4)
    x = conv_layer(x, prep["w2"], prep["b2"], k=4, s=2)
    # TODO(synk): fold the conv1->conv2 space-to-depth rearrangement into the
    #             conv1 kernel's output store to drop the one remaining tiny
    #             XLA relayout between pallas_calls.
    return tail_pallas(x, prep["w3"], prep["b3"], prep["wf1"], prep["bf1"],
                       prep["wf2"], prep["bf2"], k3=3, n_actions=n_actions)


def _im2col_ref(x, kh, kw, stride):
    n, h, w, c = x.shape
    oh = (h - kh) // stride + 1
    ow = (w - kw) // stride + 1
    cols = []
    for i in range(kh):
        for j in range(kw):
            cols.append(x[:, i:i + stride * oh:stride,
                            j:j + stride * ow:stride, :])
    patches = jnp.concatenate(cols, axis=-1)
    return patches.reshape(n * oh * ow, kh * kw * c), oh, ow


def qnet_forward_ref(params, x_nchw):
    """Pure-JAX reference with the original NCHW flatten and un-permuted,
    un-rearranged weights (validates kernels, s2d weight prep and the flatten
    permutation)."""
    x = jnp.transpose(x_nchw, (0, 2, 3, 1)).astype(jnp.bfloat16)

    def conv(x, w, b, s):
        n = x.shape[0]
        kh, kw, c, oc = w.shape
        patches, oh, ow = _im2col_ref(x, kh, kw, s)
        y = jnp.dot(patches, w.reshape(kh * kw * c, oc).astype(jnp.bfloat16),
                    preferred_element_type=jnp.float32) + b[None, :]
        return jnp.maximum(y, 0.0).astype(jnp.bfloat16).reshape(n, oh, ow, oc)

    x = conv(x, params["w1"], params["b1"], 4)
    x = conv(x, params["w2"], params["b2"], 2)
    x = conv(x, params["w3"], params["b3"], 1)
    n = x.shape[0]
    x = jnp.transpose(x, (0, 3, 1, 2)).reshape(n, -1)   # original NCHW flatten
    h = jnp.maximum(
        jnp.dot(x, params["wf1"].astype(jnp.bfloat16),
                preferred_element_type=jnp.float32) + params["bf1"][None, :],
        0.0)
    return jnp.dot(h.astype(jnp.bfloat16), params["wf2"].astype(jnp.bfloat16),
                   preferred_element_type=jnp.float32) + params["bf2"][None, :]


if __name__ == "__main__":
    key = jax.random.PRNGKey(0)
    kp, kx = jax.random.split(key)

    # Small shapes; spatial must survive the 8/4 -> 4/2 -> 3/1 conv stack and is
    # chosen so the final feature map is 3x3 (exercises the flatten permutation).
    input_shape = (4, 52, 52)        # (C, H, W)
    n_actions = 6
    batch = 2

    params = init_qnet_params(kp, input_shape, n_actions)
    prep = prepare_params(params, input_shape, n_actions)
    x = jax.random.normal(kx, (batch, *input_shape), jnp.float32)   # NCHW

    fwd = jax.jit(functools.partial(qnet_forward, n_actions=n_actions))
    out = jax.block_until_ready(fwd(prep, x))
    ref = jax.block_until_ready(qnet_forward_ref(params, x))

    assert out.shape == (batch, n_actions), out.shape
    assert bool(jnp.all(jnp.isfinite(out)))
    assert bool(jnp.allclose(out, ref, atol=1e-2, rtol=1e-2)), \
        float(jnp.max(jnp.abs(out - ref)))
    print("KERNEL_OK")
</pallas_src>

<mosaic_0001>
module attributes {stable_mosaic.version = 11 : i64} {
  func.func @_conv_kernel(%arg0: i32, %arg1: memref<1x13x13x64xbf16, #tpu.memory_space<vmem>>, %arg2: memref<256x32xbf16, #tpu.memory_space<vmem>>, %arg3: memref<1x32xf32, #tpu.memory_space<vmem>>, %arg4: memref<1x12x12x32xbf16, #tpu.memory_space<vmem>>) attributes {dimension_semantics = [#tpu.dimension_semantics<parallel>], iteration_bounds = array<i64: 2>, scalar_prefetch = 0 : i64, scratch_operands = 0 : i64, tpu.core_type = #tpu.core_type<tc>, window_params = [{transform_indices = @transform_0, window_bounds = array<i64: 1, 13, 13, 64>}, {pipeline_mode = #tpu.pipeline_mode<synchronous>, transform_indices = @transform_1, window_bounds = array<i64: 256, 32>}, {pipeline_mode = #tpu.pipeline_mode<synchronous>, transform_indices = @transform_2, window_bounds = array<i64: 1, 32>}, {transform_indices = @transform_3, window_bounds = array<i64: 1, 12, 12, 32>}]} {
    %cst = arith.constant 0.000000e+00 : f32
    %0 = vector.broadcast %cst : f32 to vector<144x32xf32>
    %c0 = arith.constant 0 : index
    %c0_0 = arith.constant 0 : index
    %c0_1 = arith.constant 0 : index
    %c0_2 = arith.constant 0 : index
    %1 = vector.load %arg1[%c0, %c0_0, %c0_1, %c0_2] : memref<1x13x13x64xbf16, #tpu.memory_space<vmem>>, vector<1x12x12x64xbf16>
    %2 = vector.shape_cast %1 : vector<1x12x12x64xbf16> to vector<144x64xbf16>
    %c0_3 = arith.constant 0 : index
    %c0_4 = arith.constant 0 : index
    %3 = vector.load %arg2[%c0_3, %c0_4] : memref<256x32xbf16, #tpu.memory_space<vmem>>, vector<64x32xbf16>
    %cst_5 = arith.constant dense<0.000000e+00> : vector<144x32xf32>
    %4 = tpu.matmul %2, %3, %cst_5 {dimension_numbers = #tpu.dot_dimension_numbers<[1], [0], [0], [1], [0, 0, 1, 1], [], []>} : vector<144x64xbf16>, vector<64x32xbf16>, vector<144x32xf32> -> vector<144x32xf32>
    %5 = arith.addf %0, %4 : vector<144x32xf32>
    %c0_6 = arith.constant 0 : index
    %c0_7 = arith.constant 0 : index
    %c1 = arith.constant 1 : index
    %c0_8 = arith.constant 0 : index
    %6 = vector.load %arg1[%c0_6, %c0_7, %c1, %c0_8] : memref<1x13x13x64xbf16, #tpu.memory_space<vmem>>, vector<1x12x12x64xbf16>
    %7 = vector.shape_cast %6 : vector<1x12x12x64xbf16> to vector<144x64xbf16>
    %c64 = arith.constant 64 : index
    %c0_9 = arith.constant 0 : index
    %8 = vector.load %arg2[%c64, %c0_9] : memref<256x32xbf16, #tpu.memory_space<vmem>>, vector<64x32xbf16>
    %cst_10 = arith.constant dense<0.000000e+00> : vector<144x32xf32>
    %9 = tpu.matmul %7, %8, %cst_10 {dimension_numbers = #tpu.dot_dimension_numbers<[1], [0], [0], [1], [0, 0, 1, 1], [], []>} : vector<144x64xbf16>, vector<64x32xbf16>, vector<144x32xf32> -> vector<144x32xf32>
    %10 = arith.addf %5, %9 : vector<144x32xf32>
    %c0_11 = arith.constant 0 : index
    %c1_12 = arith.constant 1 : index
    %c0_13 = arith.constant 0 : index
    %c0_14 = arith.constant 0 : index
    %11 = vector.load %arg1[%c0_11, %c1_12, %c0_13, %c0_14] : memref<1x13x13x64xbf16, #tpu.memory_space<vmem>>, vector<1x12x12x64xbf16>
    %12 = vector.shape_cast %11 : vector<1x12x12x64xbf16> to vector<144x64xbf16>
    %c128 = arith.constant 128 : index
    %c0_15 = arith.constant 0 : index
    %13 = vector.load %arg2[%c128, %c0_15] : memref<256x32xbf16, #tpu.memory_space<vmem>>, vector<64x32xbf16>
    %cst_16 = arith.constant dense<0.000000e+00> : vector<144x32xf32>
    %14 = tpu.matmul %12, %13, %cst_16 {dimension_numbers = #tpu.dot_dimension_numbers<[1], [0], [0], [1], [0, 0, 1, 1], [], []>} : vector<144x64xbf16>, vector<64x32xbf16>, vector<144x32xf32> -> vector<144x32xf32>
    %15 = arith.addf %10, %14 : vector<144x32xf32>
    %c0_17 = arith.constant 0 : index
    %c1_18 = arith.constant 1 : index
    %c1_19 = arith.constant 1 : index
    %c0_20 = arith.constant 0 : index
    %16 = vector.load %arg1[%c0_17, %c1_18, %c1_19, %c0_20] : memref<1x13x13x64xbf16, #tpu.memory_space<vmem>>, vector<1x12x12x64xbf16>
    %17 = vector.shape_cast %16 : vector<1x12x12x64xbf16> to vector<144x64xbf16>
    %c192 = arith.constant 192 : index
    %c0_21 = arith.constant 0 : index
    %18 = vector.load %arg2[%c192, %c0_21] : memref<256x32xbf16, #tpu.memory_space<vmem>>, vector<64x32xbf16>
    %cst_22 = arith.constant dense<0.000000e+00> : vector<144x32xf32>
    %19 = tpu.matmul %17, %18, %cst_22 {dimension_numbers = #tpu.dot_dimension_numbers<[1], [0], [0], [1], [0, 0, 1, 1], [], []>} : vector<144x64xbf16>, vector<64x32xbf16>, vector<144x32xf32> -> vector<144x32xf32>
    %20 = arith.addf %15, %19 : vector<144x32xf32>
    %c0_23 = arith.constant 0 : index
    %c0_24 = arith.constant 0 : index
    %21 = vector.load %arg3[%c0_23, %c0_24] : memref<1x32xf32, #tpu.memory_space<vmem>>, vector<1x32xf32>
    %22 = vector.broadcast %21 : vector<1x32xf32> to vector<144x32xf32>
    %23 = arith.addf %20, %22 : vector<144x32xf32>
    %cst_25 = arith.constant 0.000000e+00 : f32
    %24 = vector.broadcast %cst_25 : f32 to vector<144x32xf32>
    %25 = arith.maximumf %23, %24 : vector<144x32xf32>
    %26 = vector.shape_cast %25 : vector<144x32xf32> to vector<1x12x12x32xf32>
    %27 = arith.truncf %26 : vector<1x12x12x32xf32> to vector<1x12x12x32xbf16>
    %c0_26 = arith.constant 0 : index
    %c0_27 = arith.constant 0 : index
    %c0_28 = arith.constant 0 : index
    %c0_29 = arith.constant 0 : index
    %28 = vector.load %arg4[%c0_26, %c0_27, %c0_28, %c0_29] : memref<1x12x12x32xbf16, #tpu.memory_space<vmem>>, vector<1x12x12x32xbf16>
    tpu.vector_store %arg4[%c0_26, %c0_27, %c0_28, %c0_29], %27 {strides = array<i32>} : memref<1x12x12x32xbf16, #tpu.memory_space<vmem>>, vector<1x12x12x32xbf16>,
    return
  }
  func.func @transform_0(%arg0: i32) -> (i32, i32, i32, i32) {
    %c0_i32 = arith.constant 0 : i32
    %c0_i32_0 = arith.constant 0 : i32
    %c0_i32_1 = arith.constant 0 : i32
    %c0_i32_2 = arith.constant 0 : i32
    return %arg0, %c0_i32, %c0_i32_0, %c0_i32_1 : i32, i32, i32, i32
  }
  func.func @transform_1(%arg0: i32) -> (i32, i32) {
    %c0_i32 = arith.constant 0 : i32
    %c0_i32_0 = arith.constant 0 : i32
    %c0_i32_1 = arith.constant 0 : i32
    return %c0_i32, %c0_i32_0 : i32, i32
  }
  func.func @transform_2(%arg0: i32) -> (i32, i32) {
    %c0_i32 = arith.constant 0 : i32
    %c0_i32_0 = arith.constant 0 : i32
    %c0_i32_1 = arith.constant 0 : i32
    return %c0_i32, %c0_i32_0 : i32, i32
  }
  func.func @transform_3(%arg0: i32) -> (i32, i32, i32, i32) {
    %c0_i32 = arith.constant 0 : i32
    %c0_i32_0 = arith.constant 0 : i32
    %c0_i32_1 = arith.constant 0 : i32
    %c0_i32_2 = arith.constant 0 : i32
    return %arg0, %c0_i32, %c0_i32_0, %c0_i32_1 : i32, i32, i32, i32
  }
}

module attributes {stable_mosaic.version = 11 : i64} {
  func.func @_conv_kernel(%arg0: i32, %arg1: memref<1x6x6x128xbf16, #tpu.memory_space<vmem>>, %arg2: memref<512x64xbf16, #tpu.memory_space<vmem>>, %arg3: memref<1x64xf32, #tpu.memory_space<vmem>>, %arg4: memref<1x5x5x64xbf16, #tpu.memory_space<vmem>>) attributes {dimension_semantics = [#tpu.dimension_semantics<parallel>], iteration_bounds = array<i64: 2>, scalar_prefetch = 0 : i64, scratch_operands = 0 : i64, tpu.core_type = #tpu.core_type<tc>, window_params = [{transform_indices = @transform_0, window_bounds = array<i64: 1, 6, 6, 128>}, {pipeline_mode = #tpu.pipeline_mode<synchronous>, transform_indices = @transform_1, window_bounds = array<i64: 512, 64>}, {pipeline_mode = #tpu.pipeline_mode<synchronous>, transform_indices = @transform_2, window_bounds = array<i64: 1, 64>}, {transform_indices = @transform_3, window_bounds = array<i64: 1, 5, 5, 64>}]} {
    %cst = arith.constant 0.000000e+00 : f32
    %0 = vector.broadcast %cst : f32 to vector<25x64xf32>
    %c0 = arith.constant 0 : index
    %c0_0 = arith.constant 0 : index
    %c0_1 = arith.constant 0 : index
    %c0_2 = arith.constant 0 : index
    %1 = vector.load %arg1[%c0, %c0_0, %c0_1, %c0_2] : memref<1x6x6x128xbf16, #tpu.memory_space<vmem>>, vector<1x5x5x128xbf16>
    %2 = vector.shape_cast %1 : vector<1x5x5x128xbf16> to vector<25x128xbf16>
    %c0_3 = arith.constant 0 : index
    %c0_4 = arith.constant 0 : index
    %3 = vector.load %arg2[%c0_3, %c0_4] : memref<512x64xbf16, #tpu.memory_space<vmem>>, vector<128x64xbf16>
    %cst_5 = arith.constant dense<0.000000e+00> : vector<25x64xf32>
    %4 = tpu.matmul %2, %3, %cst_5 {dimension_numbers = #tpu.dot_dimension_numbers<[1], [0], [0], [1], [0, 0, 1, 1], [], []>} : vector<25x128xbf16>, vector<128x64xbf16>, vector<25x64xf32> -> vector<25x64xf32>
    %5 = arith.addf %0, %4 : vector<25x64xf32>
    %c0_6 = arith.constant 0 : index
    %c0_7 = arith.constant 0 : index
    %c1 = arith.constant 1 : index
    %c0_8 = arith.constant 0 : index
    %6 = vector.load %arg1[%c0_6, %c0_7, %c1, %c0_8] : memref<1x6x6x128xbf16, #tpu.memory_space<vmem>>, vector<1x5x5x128xbf16>
    %7 = vector.shape_cast %6 : vector<1x5x5x128xbf16> to vector<25x128xbf16>
    %c128 = arith.constant 128 : index
    %c0_9 = arith.constant 0 : index
    %8 = vector.load %arg2[%c128, %c0_9] : memref<512x64xbf16, #tpu.memory_space<vmem>>, vector<128x64xbf16>
    %cst_10 = arith.constant dense<0.000000e+00> : vector<25x64xf32>
    %9 = tpu.matmul %7, %8, %cst_10 {dimension_numbers = #tpu.dot_dimension_numbers<[1], [0], [0], [1], [0, 0, 1, 1], [], []>} : vector<25x128xbf16>, vector<128x64xbf16>, vector<25x64xf32> -> vector<25x64xf32>
    %10 = arith.addf %5, %9 : vector<25x64xf32>
    %c0_11 = arith.constant 0 : index
    %c1_12 = arith.constant 1 : index
    %c0_13 = arith.constant 0 : index
    %c0_14 = arith.constant 0 : index
    %11 = vector.load %arg1[%c0_11, %c1_12, %c0_13, %c0_14] : memref<1x6x6x128xbf16, #tpu.memory_space<vmem>>, vector<1x5x5x128xbf16>
    %12 = vector.shape_cast %11 : vector<1x5x5x128xbf16> to vector<25x128xbf16>
    %c256 = arith.constant 256 : index
    %c0_15 = arith.constant 0 : index
    %13 = vector.load %arg2[%c256, %c0_15] : memref<512x64xbf16, #tpu.memory_space<vmem>>, vector<128x64xbf16>
    %cst_16 = arith.constant dense<0.000000e+00> : vector<25x64xf32>
    %14 = tpu.matmul %12, %13, %cst_16 {dimension_numbers = #tpu.dot_dimension_numbers<[1], [0], [0], [1], [0, 0, 1, 1], [], []>} : vector<25x128xbf16>, vector<128x64xbf16>, vector<25x64xf32> -> vector<25x64xf32>
    %15 = arith.addf %10, %14 : vector<25x64xf32>
    %c0_17 = arith.constant 0 : index
    %c1_18 = arith.constant 1 : index
    %c1_19 = arith.constant 1 : index
    %c0_20 = arith.constant 0 : index
    %16 = vector.load %arg1[%c0_17, %c1_18, %c1_19, %c0_20] : memref<1x6x6x128xbf16, #tpu.memory_space<vmem>>, vector<1x5x5x128xbf16>
    %17 = vector.shape_cast %16 : vector<1x5x5x128xbf16> to vector<25x128xbf16>
    %c384 = arith.constant 384 : index
    %c0_21 = arith.constant 0 : index
    %18 = vector.load %arg2[%c384, %c0_21] : memref<512x64xbf16, #tpu.memory_space<vmem>>, vector<128x64xbf16>
    %cst_22 = arith.constant dense<0.000000e+00> : vector<25x64xf32>
    %19 = tpu.matmul %17, %18, %cst_22 {dimension_numbers = #tpu.dot_dimension_numbers<[1], [0], [0], [1], [0, 0, 1, 1], [], []>} : vector<25x128xbf16>, vector<128x64xbf16>, vector<25x64xf32> -> vector<25x64xf32>
    %20 = arith.addf %15, %19 : vector<25x64xf32>
    %c0_23 = arith.constant 0 : index
    %c0_24 = arith.constant 0 : index
    %21 = vector.load %arg3[%c0_23, %c0_24] : memref<1x64xf32, #tpu.memory_space<vmem>>, vector<1x64xf32>
    %22 = vector.broadcast %21 : vector<1x64xf32> to vector<25x64xf32>
    %23 = arith.addf %20, %22 : vector<25x64xf32>
    %cst_25 = arith.constant 0.000000e+00 : f32
    %24 = vector.broadcast %cst_25 : f32 to vector<25x64xf32>
    %25 = arith.maximumf %23, %24 : vector<25x64xf32>
    %26 = vector.shape_cast %25 : vector<25x64xf32> to vector<1x5x5x64xf32>
    %27 = arith.truncf %26 : vector<1x5x5x64xf32> to vector<1x5x5x64xbf16>
    %c0_26 = arith.constant 0 : index
    %c0_27 = arith.constant 0 : index
    %c0_28 = arith.constant 0 : index
    %c0_29 = arith.constant 0 : index
    %28 = vector.load %arg4[%c0_26, %c0_27, %c0_28, %c0_29] : memref<1x5x5x64xbf16, #tpu.memory_space<vmem>>, vector<1x5x5x64xbf16>
    tpu.vector_store %arg4[%c0_26, %c0_27, %c0_28, %c0_29], %27 {strides = array<i32>} : memref<1x5x5x64xbf16, #tpu.memory_space<vmem>>, vector<1x5x5x64xbf16>,
    return
  }
  func.func @transform_0(%arg0: i32) -> (i32, i32, i32, i32) {
    %c0_i32 = arith.constant 0 : i32
    %c0_i32_0 = arith.constant 0 : i32
    %c0_i32_1 = arith.constant 0 : i32
    %c0_i32_2 = arith.constant 0 : i32
    return %arg0, %c0_i32, %c0_i32_0, %c0_i32_1 : i32, i32, i32, i32
  }
  func.func @transform_1(%arg0: i32) -> (i32, i32) {
    %c0_i32 = arith.constant 0 : i32
    %c0_i32_0 = arith.constant 0 : i32
    %c0_i32_1 = arith.constant 0 : i32
    return %c0_i32, %c0_i32_0 : i32, i32
  }
  func.func @transform_2(%arg0: i32) -> (i32, i32) {
    %c0_i32 = arith.constant 0 : i32
    %c0_i32_0 = arith.constant 0 : i32
    %c0_i32_1 = arith.constant 0 : i32
    return %c0_i32, %c0_i32_0 : i32, i32
  }
  func.func @transform_3(%arg0: i32) -> (i32, i32, i32, i32) {
    %c0_i32 = arith.constant 0 : i32
    %c0_i32_0 = arith.constant 0 : i32
    %c0_i32_1 = arith.constant 0 : i32
    %c0_i32_2 = arith.constant 0 : i32
    return %arg0, %c0_i32, %c0_i32_0, %c0_i32_1 : i32, i32, i32, i32
  }
}

module attributes {stable_mosaic.version = 11 : i64} {
  func.func @_tail_kernel(%arg0: i32, %arg1: memref<1x5x5x64xbf16, #tpu.memory_space<vmem>>, %arg2: memref<576x64xbf16, #tpu.memory_space<vmem>>, %arg3: memref<1x64xf32, #tpu.memory_space<vmem>>, %arg4: memref<576x512xbf16, #tpu.memory_space<vmem>>, %arg5: memref<1x512xf32, #tpu.memory_space<vmem>>, %arg6: memref<512x128xbf16, #tpu.memory_space<vmem>>, %arg7: memref<1x128xf32, #tpu.memory_space<vmem>>, %arg8: memref<1x1x128xf32, #tpu.memory_space<vmem>>) attributes {dimension_semantics = [#tpu.dimension_semantics<parallel>], iteration_bounds = array<i64: 2>, scalar_prefetch = 0 : i64, scratch_operands = 0 : i64, tpu.core_type = #tpu.core_type<tc>, window_params = [{transform_indices = @transform_0, window_bounds = array<i64: 1, 5, 5, 64>}, {pipeline_mode = #tpu.pipeline_mode<synchronous>, transform_indices = @transform_1, window_bounds = array<i64: 576, 64>}, {pipeline_mode = #tpu.pipeline_mode<synchronous>, transform_indices = @transform_2, window_bounds = array<i64: 1, 64>}, {pipeline_mode = #tpu.pipeline_mode<synchronous>, transform_indices = @transform_3, window_bounds = array<i64: 576, 512>}, {pipeline_mode = #tpu.pipeline_mode<synchronous>, transform_indices = @transform_4, window_bounds = array<i64: 1, 512>}, {pipeline_mode = #tpu.pipeline_mode<synchronous>, transform_indices = @transform_5, window_bounds = array<i64: 512, 128>}, {pipeline_mode = #tpu.pipeline_mode<synchronous>, transform_indices = @transform_6, window_bounds = array<i64: 1, 128>}, {transform_indices = @transform_7, window_bounds = array<i64: 1, 1, 128>}]} {
    %cst = arith.constant 0.000000e+00 : f32
    %0 = vector.broadcast %cst : f32 to vector<9x64xf32>
    %c0 = arith.constant 0 : index
    %c0_0 = arith.constant 0 : index
    %c0_1 = arith.constant 0 : index
    %c0_2 = arith.constant 0 : index
    %1 = vector.load %arg1[%c0, %c0_0, %c0_1, %c0_2] : memref<1x5x5x64xbf16, #tpu.memory_space<vmem>>, vector<1x3x3x64xbf16>
    %2 = vector.shape_cast %1 : vector<1x3x3x64xbf16> to vector<9x64xbf16>
    %c0_3 = arith.constant 0 : index
    %c0_4 = arith.constant 0 : index
    %3 = vector.load %arg2[%c0_3, %c0_4] : memref<576x64xbf16, #tpu.memory_space<vmem>>, vector<64x64xbf16>
    %cst_5 = arith.constant dense<0.000000e+00> : vector<9x64xf32>
    %4 = tpu.matmul %2, %3, %cst_5 {dimension_numbers = #tpu.dot_dimension_numbers<[1], [0], [0], [1], [0, 0, 1, 1], [], []>} : vector<9x64xbf16>, vector<64x64xbf16>, vector<9x64xf32> -> vector<9x64xf32>
    %5 = arith.addf %0, %4 : vector<9x64xf32>
    %c0_6 = arith.constant 0 : index
    %c0_7 = arith.constant 0 : index
    %c1 = arith.constant 1 : index
    %c0_8 = arith.constant 0 : index
    %6 = vector.load %arg1[%c0_6, %c0_7, %c1, %c0_8] : memref<1x5x5x64xbf16, #tpu.memory_space<vmem>>, vector<1x3x3x64xbf16>
    %7 = vector.shape_cast %6 : vector<1x3x3x64xbf16> to vector<9x64xbf16>
    %c64 = arith.constant 64 : index
    %c0_9 = arith.constant 0 : index
    %8 = vector.load %arg2[%c64, %c0_9] : memref<576x64xbf16, #tpu.memory_space<vmem>>, vector<64x64xbf16>
    %cst_10 = arith.constant dense<0.000000e+00> : vector<9x64xf32>
    %9 = tpu.matmul %7, %8, %cst_10 {dimension_numbers = #tpu.dot_dimension_numbers<[1], [0], [0], [1], [0, 0, 1, 1], [], []>} : vector<9x64xbf16>, vector<64x64xbf16>, vector<9x64xf32> -> vector<9x64xf32>
    %10 = arith.addf %5, %9 : vector<9x64xf32>
    %c0_11 = arith.constant 0 : index
    %c0_12 = arith.constant 0 : index
    %c2 = arith.constant 2 : index
    %c0_13 = arith.constant 0 : index
    %11 = vector.load %arg1[%c0_11, %c0_12, %c2, %c0_13] : memref<1x5x5x64xbf16, #tpu.memory_space<vmem>>, vector<1x3x3x64xbf16>
    %12 = vector.shape_cast %11 : vector<1x3x3x64xbf16> to vector<9x64xbf16>
    %c128 = arith.constant 128 : index
    %c0_14 = arith.constant 0 : index
    %13 = vector.load %arg2[%c128, %c0_14] : memref<576x64xbf16, #tpu.memory_space<vmem>>, vector<64x64xbf16>
    %cst_15 = arith.constant dense<0.000000e+00> : vector<9x64xf32>
    %14 = tpu.matmul %12, %13, %cst_15 {dimension_numbers = #tpu.dot_dimension_numbers<[1], [0], [0], [1], [0, 0, 1, 1], [], []>} : vector<9x64xbf16>, vector<64x64xbf16>, vector<9x64xf32> -> vector<9x64xf32>
    %15 = arith.addf %10, %14 : vector<9x64xf32>
    %c0_16 = arith.constant 0 : index
    %c1_17 = arith.constant 1 : index
    %c0_18 = arith.constant 0 : index
    %c0_19 = arith.constant 0 : index
    %16 = vector.load %arg1[%c0_16, %c1_17, %c0_18, %c0_19] : memref<1x5x5x64xbf16, #tpu.memory_space<vmem>>, vector<1x3x3x64xbf16>
    %17 = vector.shape_cast %16 : vector<1x3x3x64xbf16> to vector<9x64xbf16>
    %c192 = arith.constant 192 : index
    %c0_20 = arith.constant 0 : index
    %18 = vector.load %arg2[%c192, %c0_20] : memref<576x64xbf16, #tpu.memory_space<vmem>>, vector<64x64xbf16>
    %cst_21 = arith.constant dense<0.000000e+00> : vector<9x64xf32>
    %19 = tpu.matmul %17, %18, %cst_21 {dimension_numbers = #tpu.dot_dimension_numbers<[1], [0], [0], [1], [0, 0, 1, 1], [], []>} : vector<9x64xbf16>, vector<64x64xbf16>, vector<9x64xf32> -> vector<9x64xf32>
    %20 = arith.addf %15, %19 : vector<9x64xf32>
    %c0_22 = arith.constant 0 : index
    %c1_23 = arith.constant 1 : index
    %c1_24 = arith.constant 1 : index
    %c0_25 = arith.constant 0 : index
    %21 = vector.load %arg1[%c0_22, %c1_23, %c1_24, %c0_25] : memref<1x5x5x64xbf16, #tpu.memory_space<vmem>>, vector<1x3x3x64xbf16>
    %22 = vector.shape_cast %21 : vector<1x3x3x64xbf16> to vector<9x64xbf16>
    %c256 = arith.constant 256 : index
    %c0_26 = arith.constant 0 : index
    %23 = vector.load %arg2[%c256, %c0_26] : memref<576x64xbf16, #tpu.memory_space<vmem>>, vector<64x64xbf16>
    %cst_27 = arith.constant dense<0.000000e+00> : vector<9x64xf32>
    %24 = tpu.matmul %22, %23, %cst_27 {dimension_numbers = #tpu.dot_dimension_numbers<[1], [0], [0], [1], [0, 0, 1, 1], [], []>} : vector<9x64xbf16>, vector<64x64xbf16>, vector<9x64xf32> -> vector<9x64xf32>
    %25 = arith.addf %20, %24 : vector<9x64xf32>
    %c0_28 = arith.constant 0 : index
    %c1_29 = arith.constant 1 : index
    %c2_30 = arith.constant 2 : index
    %c0_31 = arith.constant 0 : index
    %26 = vector.load %arg1[%c0_28, %c1_29, %c2_30, %c0_31] : memref<1x5x5x64xbf16, #tpu.memory_space<vmem>>, vector<1x3x3x64xbf16>
    %27 = vector.shape_cast %26 : vector<1x3x3x64xbf16> to vector<9x64xbf16>
    %c320 = arith.constant 320 : index
    %c0_32 = arith.constant 0 : index
    %28 = vector.load %arg2[%c320, %c0_32] : memref<576x64xbf16, #tpu.memory_space<vmem>>, vector<64x64xbf16>
    %cst_33 = arith.constant dense<0.000000e+00> : vector<9x64xf32>
    %29 = tpu.matmul %27, %28, %cst_33 {dimension_numbers = #tpu.dot_dimension_numbers<[1], [0], [0], [1], [0, 0, 1, 1], [], []>} : vector<9x64xbf16>, vector<64x64xbf16>, vector<9x64xf32> -> vector<9x64xf32>
    %30 = arith.addf %25, %29 : vector<9x64xf32>
    %c0_34 = arith.constant 0 : index
    %c2_35 = arith.constant 2 : index
    %c0_36 = arith.constant 0 : index
    %c0_37 = arith.constant 0 : index
    %31 = vector.load %arg1[%c0_34, %c2_35, %c0_36, %c0_37] : memref<1x5x5x64xbf16, #tpu.memory_space<vmem>>, vector<1x3x3x64xbf16>
    %32 = vector.shape_cast %31 : vector<1x3x3x64xbf16> to vector<9x64xbf16>
    %c384 = arith.constant 384 : index
    %c0_38 = arith.constant 0 : index
    %33 = vector.load %arg2[%c384, %c0_38] : memref<576x64xbf16, #tpu.memory_space<vmem>>, vector<64x64xbf16>
    %cst_39 = arith.constant dense<0.000000e+00> : vector<9x64xf32>
    %34 = tpu.matmul %32, %33, %cst_39 {dimension_numbers = #tpu.dot_dimension_numbers<[1], [0], [0], [1], [0, 0, 1, 1], [], []>} : vector<9x64xbf16>, vector<64x64xbf16>, vector<9x64xf32> -> vector<9x64xf32>
    %35 = arith.addf %30, %34 : vector<9x64xf32>
    %c0_40 = arith.constant 0 : index
    %c2_41 = arith.constant 2 : index
    %c1_42 = arith.constant 1 : index
    %c0_43 = arith.constant 0 : index
    %36 = vector.load %arg1[%c0_40, %c2_41, %c1_42, %c0_43] : memref<1x5x5x64xbf16, #tpu.memory_space<vmem>>, vector<1x3x3x64xbf16>
    %37 = vector.shape_cast %36 : vector<1x3x3x64xbf16> to vector<9x64xbf16>
    %c448 = arith.constant 448 : index
    %c0_44 = arith.constant 0 : index
    %38 = vector.load %arg2[%c448, %c0_44] : memref<576x64xbf16, #tpu.memory_space<vmem>>, vector<64x64xbf16>
    %cst_45 = arith.constant dense<0.000000e+00> : vector<9x64xf32>
    %39 = tpu.matmul %37, %38, %cst_45 {dimension_numbers = #tpu.dot_dimension_numbers<[1], [0], [0], [1], [0, 0, 1, 1], [], []>} : vector<9x64xbf16>, vector<64x64xbf16>, vector<9x64xf32> -> vector<9x64xf32>
    %40 = arith.addf %35, %39 : vector<9x64xf32>
    %c0_46 = arith.constant 0 : index
    %c2_47 = arith.constant 2 : index
    %c2_48 = arith.constant 2 : index
    %c0_49 = arith.constant 0 : index
    %41 = vector.load %arg1[%c0_46, %c2_47, %c2_48, %c0_49] : memref<1x5x5x64xbf16, #tpu.memory_space<vmem>>, vector<1x3x3x64xbf16>
    %42 = vector.shape_cast %41 : vector<1x3x3x64xbf16> to vector<9x64xbf16>
    %c512 = arith.constant 512 : index
    %c0_50 = arith.constant 0 : index
    %43 = vector.load %arg2[%c512, %c0_50] : memref<576x64xbf16, #tpu.memory_space<vmem>>, vector<64x64xbf16>
    %cst_51 = arith.constant dense<0.000000e+00> : vector<9x64xf32>
    %44 = tpu.matmul %42, %43, %cst_51 {dimension_numbers = #tpu.dot_dimension_numbers<[1], [0], [0], [1], [0, 0, 1, 1], [], []>} : vector<9x64xbf16>, vector<64x64xbf16>, vector<9x64xf32> -> vector<9x64xf32>
    %45 = arith.addf %40, %44 : vector<9x64xf32>
    %c0_52 = arith.constant 0 : index
    %c0_53 = arith.constant 0 : index
    %46 = vector.load %arg3[%c0_52, %c0_53] : memref<1x64xf32, #tpu.memory_space<vmem>>, vector<1x64xf32>
    %47 = vector.broadcast %46 : vector<1x64xf32> to vector<9x64xf32>
    %48 = arith.addf %45, %47 : vector<9x64xf32>
    %cst_54 = arith.constant 0.000000e+00 : f32
    %49 = vector.broadcast %cst_54 : f32 to vector<9x64xf32>
    %50 = arith.maximumf %48, %49 : vector<9x64xf32>
    %51 = arith.truncf %50 : vector<9x64xf32> to vector<9x64xbf16>
    %52 = vector.shape_cast %51 : vector<9x64xbf16> to vector<1x9x64xbf16>
    %cst_55 = arith.constant 0.000000e+00 : f32
    %53 = vector.broadcast %cst_55 : f32 to vector<1x512xf32>
    %54 = vector.extract_strided_slice %52 {offsets = [0, 0, 0], sizes = [1, 1, 64], strides = [1, 1, 1]} : vector<1x9x64xbf16> to vector<1x1x64xbf16>
    %55 = vector.shape_cast %54 : vector<1x1x64xbf16> to vector<1x64xbf16>
    %c0_56 = arith.constant 0 : index
    %c0_57 = arith.constant 0 : index
    %56 = vector.load %arg4[%c0_56, %c0_57] : memref<576x512xbf16, #tpu.memory_space<vmem>>, vector<64x512xbf16>
    %cst_58 = arith.constant dense<0.000000e+00> : vector<1x512xf32>
    %57 = tpu.matmul %55, %56, %cst_58 {dimension_numbers = #tpu.dot_dimension_numbers<[1], [0], [0], [1], [0, 0, 1, 1], [], []>} : vector<1x64xbf16>, vector<64x512xbf16>, vector<1x512xf32> -> vector<1x512xf32>
    %58 = arith.addf %53, %57 : vector<1x512xf32>
    %59 = vector.extract_strided_slice %52 {offsets = [0, 1, 0], sizes = [1, 1, 64], strides = [1, 1, 1]} : vector<1x9x64xbf16> to vector<1x1x64xbf16>
    %60 = vector.shape_cast %59 : vector<1x1x64xbf16> to vector<1x64xbf16>
    %c64_59 = arith.constant 64 : index
    %c0_60 = arith.constant 0 : index
    %61 = vector.load %arg4[%c64_59, %c0_60] : memref<576x512xbf16, #tpu.memory_space<vmem>>, vector<64x512xbf16>
    %cst_61 = arith.constant dense<0.000000e+00> : vector<1x512xf32>
    %62 = tpu.matmul %60, %61, %cst_61 {dimension_numbers = #tpu.dot_dimension_numbers<[1], [0], [0], [1], [0, 0, 1, 1], [], []>} : vector<1x64xbf16>, vector<64x512xbf16>, vector<1x512xf32> -> vector<1x512xf32>
    %63 = arith.addf %58, %62 : vector<1x512xf32>
    %64 = vector.extract_strided_slice %52 {offsets = [0, 2, 0], sizes = [1, 1, 64], strides = [1, 1, 1]} : vector<1x9x64xbf16> to vector<1x1x64xbf16>
    %65 = vector.shape_cast %64 : vector<1x1x64xbf16> to vector<1x64xbf16>
    %c128_62 = arith.constant 128 : index
    %c0_63 = arith.constant 0 : index
    %66 = vector.load %arg4[%c128_62, %c0_63] : memref<576x512xbf16, #tpu.memory_space<vmem>>, vector<64x512xbf16>
    %cst_64 = arith.constant dense<0.000000e+00> : vector<1x512xf32>
    %67 = tpu.matmul %65, %66, %cst_64 {dimension_numbers = #tpu.dot_dimension_numbers<[1], [0], [0], [1], [0, 0, 1, 1], [], []>} : vector<1x64xbf16>, vector<64x512xbf16>, vector<1x512xf32> -> vector<1x512xf32>
    %68 = arith.addf %63, %67 : vector<1x512xf32>
    %69 = vector.extract_strided_slice %52 {offsets = [0, 3, 0], sizes = [1, 1, 64], strides = [1, 1, 1]} : vector<1x9x64xbf16> to vector<1x1x64xbf16>
    %70 = vector.shape_cast %69 : vector<1x1x64xbf16> to vector<1x64xbf16>
    %c192_65 = arith.constant 192 : index
    %c0_66 = arith.constant 0 : index
    %71 = vector.load %arg4[%c192_65, %c0_66] : memref<576x512xbf16, #tpu.memory_space<vmem>>, vector<64x512xbf16>
    %cst_67 = arith.constant dense<0.000000e+00> : vector<1x512xf32>
    %72 = tpu.matmul %70, %71, %cst_67 {dimension_numbers = #tpu.dot_dimension_numbers<[1], [0], [0], [1], [0, 0, 1, 1], [], []>} : vector<1x64xbf16>, vector<64x512xbf16>, vector<1x512xf32> -> vector<1x512xf32>
    %73 = arith.addf %68, %72 : vector<1x512xf32>
    %74 = vector.extract_strided_slice %52 {offsets = [0, 4, 0], sizes = [1, 1, 64], strides = [1, 1, 1]} : vector<1x9x64xbf16> to vector<1x1x64xbf16>
    %75 = vector.shape_cast %74 : vector<1x1x64xbf16> to vector<1x64xbf16>
    %c256_68 = arith.constant 256 : index
    %c0_69 = arith.constant 0 : index
    %76 = vector.load %arg4[%c256_68, %c0_69] : memref<576x512xbf16, #tpu.memory_space<vmem>>, vector<64x512xbf16>
    %cst_70 = arith.constant dense<0.000000e+00> : vector<1x512xf32>
    %77 = tpu.matmul %75, %76, %cst_70 {dimension_numbers = #tpu.dot_dimension_numbers<[1], [0], [0], [1], [0, 0, 1, 1], [], []>} : vector<1x64xbf16>, vector<64x512xbf16>, vector<1x512xf32> -> vector<1x512xf32>
    %78 = arith.addf %73, %77 : vector<1x512xf32>
    %79 = vector.extract_strided_slice %52 {offsets = [0, 5, 0], sizes = [1, 1, 64], strides = [1, 1, 1]} : vector<1x9x64xbf16> to vector<1x1x64xbf16>
    %80 = vector.shape_cast %79 : vector<1x1x64xbf16> to vector<1x64xbf16>
    %c320_71 = arith.constant 320 : index
    %c0_72 = arith.constant 0 : index
    %81 = vector.load %arg4[%c320_71, %c0_72] : memref<576x512xbf16, #tpu.memory_space<vmem>>, vector<64x512xbf16>
    %cst_73 = arith.constant dense<0.000000e+00> : vector<1x512xf32>
    %82 = tpu.matmul %80, %81, %cst_73 {dimension_numbers = #tpu.dot_dimension_numbers<[1], [0], [0], [1], [0, 0, 1, 1], [], []>} : vector<1x64xbf16>, vector<64x512xbf16>, vector<1x512xf32> -> vector<1x512xf32>
    %83 = arith.addf %78, %82 : vector<1x512xf32>
    %84 = vector.extract_strided_slice %52 {offsets = [0, 6, 0], sizes = [1, 1, 64], strides = [1, 1, 1]} : vector<1x9x64xbf16> to vector<1x1x64xbf16>
    %85 = vector.shape_cast %84 : vector<1x1x64xbf16> to vector<1x64xbf16>
    %c384_74 = arith.constant 384 : index
    %c0_75 = arith.constant 0 : index
    %86 = vector.load %arg4[%c384_74, %c0_75] : memref<576x512xbf16, #tpu.memory_space<vmem>>, vector<64x512xbf16>
    %cst_76 = arith.constant dense<0.000000e+00> : vector<1x512xf32>
    %87 = tpu.matmul %85, %86, %cst_76 {dimension_numbers = #tpu.dot_dimension_numbers<[1], [0], [0], [1], [0, 0, 1, 1], [], []>} : vector<1x64xbf16>, vector<64x512xbf16>, vector<1x512xf32> -> vector<1x512xf32>
    %88 = arith.addf %83, %87 : vector<1x512xf32>
    %89 = vector.extract_strided_slice %52 {offsets = [0, 7, 0], sizes = [1, 1, 64], strides = [1, 1, 1]} : vector<1x9x64xbf16> to vector<1x1x64xbf16>
    %90 = vector.shape_cast %89 : vector<1x1x64xbf16> to vector<1x64xbf16>
    %c448_77 = arith.constant 448 : index
    %c0_78 = arith.constant 0 : index
    %91 = vector.load %arg4[%c448_77, %c0_78] : memref<576x512xbf16, #tpu.memory_space<vmem>>, vector<64x512xbf16>
    %cst_79 = arith.constant dense<0.000000e+00> : vector<1x512xf32>
    %92 = tpu.matmul %90, %91, %cst_79 {dimension_numbers = #tpu.dot_dimension_numbers<[1], [0], [0], [1], [0, 0, 1, 1], [], []>} : vector<1x64xbf16>, vector<64x512xbf16>, vector<1x512xf32> -> vector<1x512xf32>
    %93 = arith.addf %88, %92 : vector<1x512xf32>
    %94 = vector.extract_strided_slice %52 {offsets = [0, 8, 0], sizes = [1, 1, 64], strides = [1, 1, 1]} : vector<1x9x64xbf16> to vector<1x1x64xbf16>
    %95 = vector.shape_cast %94 : vector<1x1x64xbf16> to vector<1x64xbf16>
    %c512_80 = arith.constant 512 : index
    %c0_81 = arith.constant 0 : index
    %96 = vector.load %arg4[%c512_80, %c0_81] : memref<576x512xbf16, #tpu.memory_space<vmem>>, vector<64x512xbf16>
    %cst_82 = arith.constant dense<0.000000e+00> : vector<1x512xf32>
    %97 = tpu.matmul %95, %96, %cst_82 {dimension_numbers = #tpu.dot_dimension_numbers<[1], [0], [0], [1], [0, 0, 1, 1], [], []>} : vector<1x64xbf16>, vector<64x512xbf16>, vector<1x512xf32> -> vector<1x512xf32>
    %98 = arith.addf %93, %97 : vector<1x512xf32>
    %c0_83 = arith.constant 0 : index
    %c0_84 = arith.constant 0 : index
    %99 = vector.load %arg5[%c0_83, %c0_84] : memref<1x512xf32, #tpu.memory_space<vmem>>, vector<1x512xf32>
    %100 = arith.addf %98, %99 : vector<1x512xf32>
    %cst_85 = arith.constant 0.000000e+00 : f32
    %101 = vector.broadcast %cst_85 : f32 to vector<1x512xf32>
    %102 = arith.maximumf %100, %101 : vector<1x512xf32>
    %103 = arith.truncf %102 : vector<1x512xf32> to vector<1x512xbf16>
    %c0_86 = arith.constant 0 : index
    %c0_87 = arith.constant 0 : index
    %104 = vector.load %arg6[%c0_86, %c0_87] : memref<512x128xbf16, #tpu.memory_space<vmem>>, vector<512x128xbf16>
    %cst_88 = arith.constant dense<0.000000e+00> : vector<1x128xf32>
    %105 = tpu.matmul %103, %104, %cst_88 {dimension_numbers = #tpu.dot_dimension_numbers<[1], [0], [0], [1], [0, 0, 1, 1], [], []>} : vector<1x512xbf16>, vector<512x128xbf16>, vector<1x128xf32> -> vector<1x128xf32>
    %c0_89 = arith.constant 0 : index
    %c0_90 = arith.constant 0 : index
    %106 = vector.load %arg7[%c0_89, %c0_90] : memref<1x128xf32, #tpu.memory_space<vmem>>, vector<1x128xf32>
    %107 = arith.addf %105, %106 : vector<1x128xf32>
    %108 = vector.shape_cast %107 : vector<1x128xf32> to vector<1x1x128xf32>
    %c0_91 = arith.constant 0 : index
    %c0_92 = arith.constant 0 : index
    %c0_93 = arith.constant 0 : index
    %109 = vector.load %arg8[%c0_91, %c0_92, %c0_93] : memref<1x1x128xf32, #tpu.memory_space<vmem>>, vector<1x1x128xf32>
    tpu.vector_store %arg8[%c0_91, %c0_92, %c0_93], %108 {strides = array<i32>} : memref<1x1x128xf32, #tpu.memory_space<vmem>>, vector<1x1x128xf32>,
    return
  }
  func.func @transform_0(%arg0: i32) -> (i32, i32, i32, i32) {
    %c0_i32 = arith.constant 0 : i32
    %c0_i32_0 = arith.constant 0 : i32
    %c0_i32_1 = arith.constant 0 : i32
    %c0_i32_2 = arith.constant 0 : i32
    return %arg0, %c0_i32, %c0_i32_0, %c0_i32_1 : i32, i32, i32, i32
  }
  func.func @transform_1(%arg0: i32) -> (i32, i32) {
    %c0_i32 = arith.constant 0 : i32
    %c0_i32_0 = arith.constant 0 : i32
    %c0_i32_1 = arith.constant 0 : i32
    return %c0_i32, %c0_i32_0 : i32, i32
  }
  func.func @transform_2(%arg0: i32) -> (i32, i32) {
    %c0_i32 = arith.constant 0 : i32
    %c0_i32_0 = arith.constant 0 : i32
    %c0_i32_1 = arith.constant 0 : i32
    return %c0_i32, %c0_i32_0 : i32, i32
  }
  func.func @transform_3(%arg0: i32) -> (i32, i32) {
    %c0_i32 = arith.constant 0 : i32
    %c0_i32_0 = arith.constant 0 : i32
    %c0_i32_1 = arith.constant 0 : i32
    return %c0_i32, %c0_i32_0 : i32, i32
  }
  func.func @transform_4(%arg0: i32) -> (i32, i32) {
    %c0_i32 = arith.constant 0 : i32
    %c0_i32_0 = arith.constant 0 : i32
    %c0_i32_1 = arith.constant 0 : i32
    return %c0_i32, %c0_i32_0 : i32, i32
  }
  func.func @transform_5(%arg0: i32) -> (i32, i32) {
    %c0_i32 = arith.constant 0 : i32
    %c0_i32_0 = arith.constant 0 : i32
    %c0_i32_1 = arith.constant 0 : i32
    return %c0_i32, %c0_i32_0 : i32, i32
  }
  func.func @transform_6(%arg0: i32) -> (i32, i32) {
    %c0_i32 = arith.constant 0 : i32
    %c0_i32_0 = arith.constant 0 : i32
    %c0_i32_1 = arith.constant 0 : i32
    return %c0_i32, %c0_i32_0 : i32, i32
  }
  func.func @transform_7(%arg0: i32) -> (i32, i32, i32) {
    %c0_i32 = arith.constant 0 : i32
    %c0_i32_0 = arith.constant 0 : i32
    %c0_i32_1 = arith.constant 0 : i32
    return %arg0, %c0_i32, %c0_i32_0 : i32, i32, i32
  }
}

</mosaic_0001>

<bundles_post_ra>
// kernel: qnet_forward.3
= control target key start
LH: loop header
LB: loop body
LE: loop exit
PB: predicated region body
PF: predicated region fallthrough
CT: control target
= control target key end

     0   :  { %s2861_s12 = smov 0   ;;  %s3778_s0 = inlined_call_operand.vmem [shape: bf16[2,13,13,64], index: 0, kind: input, shape index: {}]   ;;  %s3779_s1 = inlined_call_operand.vmem [shape: bf16[256,32], index: 1, kind: input, shape index: {}]   ;;  %s3780_s2 = inlined_call_operand.vmem [shape: f32[1,32], index: 2, kind: input, shape index: {}]   ;;  %s3781_s3 = inlined_call_operand.vmem [shape: bf16[2,12,12,32], index: 3, kind: output, shape index: {}]  }
   0x1 LB: > { %s2649_s13 = sadd.s32 4294967295, %s2839_s12   ;;  %p2653_p0 = scmp.ge.s32.totalorder %s2839_s12, 1  ;;  %s2839_s12 = sphi %s2861_s12, %s13_s12  }
   0x2   : > { %p137_p1 = scmp.lt.s32.totalorder %s2839_s12, 3 }
   0x4   : > { %p138_p2 = pnand %p2653_p0, %p137_p1 }
   0x5   : > { %p161_p3 = scmp.lt.s32.totalorder (!%p138_p2), %s2649_s13, 1 }
   0x6   : > { %141 = sbr.rel (%p138_p2) target bundleno = 522 (0x20a), region = 32 }
   0xb   : > { %v2817_v0 = vld [vmem:[%s3779_s1 + $0x58] sm:$0xff]  ;;  %v2816_v3 = vld [vmem:[%s3779_s1 + $0x50] sm:$0xff]  ;;  %s3785_s13 = smov (!%p161_p3, %s2649_s13), 1  ;;  %v2815_v8 = vld [vmem:[%s3779_s1 + $0x48] sm:$0xff]  ;;  %vm470_vm0 = vsmask.f32 1280 }
   0xc   : > { %v2813_v1 = vld [vmem:[%s3779_s1 + $0x38] sm:$0xff]  ;;  %1501 = vmatpush.bf16.msra.mxu2 %v2817_v0  ;;  %v2812_v4 = vld [vmem:[%s3779_s1 + $0x30] sm:$0xff]  ;;  %v2811_v9 = vld [vmem:[%s3779_s1 + $0x28] sm:$0xff]  ;;  %s2822_s9 = smul.u32 104, %s3785_s13  ;;  %vm471_vm1 = vsmask.f32 3336 }
   0xd   : > { %v2809_v2 = vld [vmem:[%s3779_s1 + $0x18] sm:$0xff]  ;;  %1004 = vmatpush.bf16.msra.mxu0 %v2813_v1  ;;  %v2808_v6 = vld [vmem:[%s3779_s1 + $0x10] sm:$0xff]  ;;  %v2807_v10 = vld [vmem:[%s3779_s1 + $0x8] sm:$0xff]  ;;  %vm248_vm2 = vcmask 1043458   ;;  %vm244_vm3 = vcmask 1041408   ;;  %vm981_vm9 = vcmask 523264  }
   0xe   : > { %v2821_v5 = vld [vmem:[%s3779_s1 + $0x78] sm:$0xff]  ;;  %1152 = vmatpush.bf16.msra.mxu1 %v2809_v2  ;;  %v2820_v7 = vld [vmem:[%s3779_s1 + $0x70] sm:$0xff]  ;;  %v2814_v11 = vld [vmem:[%s3779_s1 + $0x40] sm:$0xff]  ;;  %s2911_s16 = scalar_lea.vmem %s3778_s0, %s2822_s9  ;;  %vm473_vm4 = vsmask.f32 5392  ;;  %s2823_s27 = smul.u32 96, %s3785_s13 }
   0xf   : > { %2311 = vmatpush.bf16.msra.mxu3 %v2821_v5  ;;  %v172_v12 = vld [vmem:[%s2911_s16] sm:$0xf]  ;;  %v178_v13 = vld [vmem:[%s2911_s16 + $0x18] sm:$0xf]  ;;  %v174_v14 = vld [vmem:[%s2911_s16 + $0x8] sm:$0xf] }
  0x10   : > { %1502 = vmatpush.bf16.msra.mxu2 %v2816_v3  ;;  %v2917_v15 = vld [vmem:[%s2911_s16 + $0x28] sm:$0xf]  ;;  %v184_v16 = vld [vmem:[%s2911_s16 + $0x30] sm:$0xf]  ;;  %v2921_v17 = vld [vmem:[%s2911_s16 + $0x40] sm:$0xf]  ;;  %s3708_s30 = scalar_lea.vmem %s3781_s3, %s2823_s27 }
  0x11   : > { %1005 = vmatpush.bf16.msra.mxu0 %v2812_v4  ;;  %v220_v18 = vrot.slane %v172_v12, 2  ;;  %v2924_v19 = vld [vmem:[%s2911_s16 + $0x48] sm:$0xf]  ;;  %v226_v20 = vrot.slane %v178_v13, 2  ;;  %v362_v21 = vld [vmem:[%s2911_s16 + $0x4] sm:$0x7]  ;;  %vm472_vm6 = vmor %vm470_vm0, %vm471_vm1 }
  0x12   : > { %1153 = vmatpush.bf16.msra.mxu1 %v2808_v6  ;;  %v2928_v22 = vld [vmem:[%s2911_s16 + $0x58] sm:$0xf]  ;;  %v230_v23 = vrot.slane %v2917_v15, 2  ;;  %v364_v24 = vld [vmem:[%s2911_s16 + $0x14] sm:$0x7]  ;;  %v222_v25 = vrot.slane %v174_v14, 2  ;;  %vm474_vm7 = vmor %vm472_vm6, %vm473_vm4 }
  0x13   : > { %2312 = vmatpush.bf16.msra.mxu3 %v2820_v7  ;;  %v232_v26 = vrot.slane %v184_v16, 2  ;;  %v365_v27 = vld [vmem:[%s2911_s16 + $0x1c] sm:$0x7]  ;;  %v236_v28 = vrot.slane %v2921_v17, 2  ;;  %v238_v29 = vrot.slane %v2924_v19, 2  ;;  %v249_v30 = vsel %vm248_vm2, %v172_v12, %v220_v18 }
  0x14   : > { %1503 = vmatpush.bf16.msra.mxu2 %v2815_v8  ;;  %v367_v31 = vld [vmem:[%s2911_s16 + $0x2c] sm:$0x7]  ;;  %v386_v32 = vrot.slane %v362_v21, 2  ;;  %v242_v33 = vrot.slane %v2928_v22, 2  ;;  %v258_v34 = vsel %vm248_vm2, %v174_v14, %v222_v25  ;;  %v276_v35 = vsel %vm248_vm2, %v178_v13, %v226_v20 }
  0x15   : > { %1006 = vmatpush.bf16.msra.mxu0 %v2811_v9  ;;  %v388_v36 = vrot.slane %v364_v24, 2  ;;  %vm475_vm5 = vsmask.f32 7448  ;;  %v2941_v37 = vsel %vm244_vm3, %v172_v12, %v220_v18  ;;  %v294_v38 = vsel %vm248_vm2, %v2917_v15, %v230_v23 }
  0x16   : > { %1154 = vmatpush.bf16.msra.mxu1 %v2807_v10  ;;  %v389_v39 = vrot.slane %v365_v27, 2  ;;  %v401_v40 = vsel %vm248_vm2, %v362_v21, %v386_v32  ;;  %v2948_v41 = vrot.slane %v249_v30, 2  ;;  %v2951_v42 = vsel %vm244_vm3, %v174_v14, %v222_v25  ;;  %vm2994_vm8 = vmor %vm474_vm7, %vm475_vm5 }
  0x17   : > { %v391_v43 = vrot.slane %v367_v31, 2  ;;  %v413_v44 = vsel %vm248_vm2, %v364_v24, %v388_v36  ;;  %v2954_v45 = vrot.slane %v258_v34, 2  ;;  %v2957_v46 = vsel %vm244_vm3, %v178_v13, %v226_v20 }
  0x18   : > { %1504 = vmatpush.bf16.msra.mxu2 %v2814_v11  ;;  %v2959_v47 = vrot.slane %v276_v35, 2  ;;  %v2962_v48 = vsel %vm248_vm2, %v365_v27, %v389_v39  ;;  %v2964_v49 = vrot.slane %v294_v38, 2  ;;  %v2967_v50 = vsel %vm244_vm3, %v184_v16, %v232_v26 }
  0x19   : > { %v400_v51 = vsel %vm244_vm3, %v362_v21, %v386_v32  ;;  %v403_v52 = vrot.slane %v401_v40, 2  ;;  %v2971_v53 = vsel %vm248_vm2, %v184_v16, %v232_v26  ;;  %v412_v54 = vsel %vm244_vm3, %v364_v24, %v388_v36 }
  0x1a   : > { %v415_v55 = vrot.slane %v413_v44, 2  ;;  %v2975_v56 = vsel %vm244_vm3, %v365_v27, %v389_v39  ;;  %v421_v57 = vrot.slane %v2962_v48, 2  ;;  %v2981_v58 = vsel %vm244_vm3, %v367_v31, %v391_v43 }
  0x1b   : > { %v477_v59 = vshrl.u32 %v2941_v37, 16  ;;  %v480_v60 = vshll.u32 %v2941_v37, 16  ;;  %v2986_v61 = vsel %vm248_vm2, %v367_v31, %v391_v43  ;;  %v486_v62 = vshll.u32 %v2948_v41, 16 }
  0x1c   : > { %v490_v63 = vshrl.u32 %v2948_v41, 16  ;;  %v495_v0 = vshll.u32 %v400_v51, 16  ;;  %v499_v3 = vshrl.u32 %v400_v51, 16  ;;  %v505_v4 = vshll.u32 %v403_v52, 16 }
  0x1d   : > { %v479_v1 = vrot.slane %v477_v59, 6  ;;  %v482_v2 = vrot.slane %v480_v60, 7  ;;  %v488_v5 = vrot.slane %v486_v62, 7  ;;  %v509_v8 = vshrl.u32 %v2951_v42, 16 }
  0x1e   : > { %v492_v6 = vrot.slane %v490_v63, 6  ;;  %v497_v7 = vrot.slane %v495_v0, 7  ;;  %v501_v10 = vrot.slane %v499_v3, 6  ;;  %v507_v11 = vrot.slane %v505_v4, 7  ;;  %v3016_v63 = vld [vmem:[%s2911_s16 + $0x34] sm:$0x7] }
  0x1f   : > { %v483_v9 = vor.u32 %v482_v2, %v479_v1  ;;  %v512_v12 = vshll.u32 %v2951_v42, 16  ;;  %v511_v16 = vrot.slane %v509_v8, 6  ;;  %v518_v18 = vshll.u32 %v2954_v45, 16 }
  0x20   : > { %v493_v14 = vor.u32 %v492_v6, %v488_v5  ;;  %v559_v20 = vshll.u32 %v412_v54, 16  ;;  %v502_v24 = vor.u32 %v501_v10, %v497_v7  ;;  %v563_v26 = vshrl.u32 %v412_v54, 16 }
  0x21   : > { %v484_v21 = vrot.slane %v483_v9, 2  ;;  %v514_v25 = vrot.slane %v512_v12, 7  ;;  %v2999_v30 = vrot.slane %v518_v18, 7  ;;  %v569_v32 = vshll.u32 %v415_v55, 16 }
  0x22   : > { %v494_v27 = vrot.slane %v493_v14, 2  ;;  %v3001_v31 = vrot.slane %v559_v20, 7  ;;  %v503_v35 = vrot.slane %v502_v24, 2  ;;  %v565_v38 = vrot.slane %v563_v26, 6 }
  0x23   : > { %v489_v34 = vsel %vm2994_vm8, %v484_v21, %v488_v5  ;;  %v515_v36 = vor.u32 %v514_v25, %v511_v16  ;;  %v571_v40 = vrot.slane %v569_v32, 7  ;;  %v573_v43 = vshrl.u32 %v2957_v46, 16  ;;  %v370_v21 = vld [vmem:[%s2911_s16 + $0x44] sm:$0x7] }
  0x24   : > { %v498_v39 = vsel %vm2994_vm8, %v494_v27, %v497_v7  ;;  %v576_v44 = vshll.u32 %v2957_v46, 16  ;;  %870 = vst [vmem:[#allocation1] ss:$4 sm:$0xff] %v489_v34  ;;  %v508_v48 = vsel %vm2994_vm8, %v503_v35, %v507_v11  ;;  %v566_v52 = vor.u32 %v565_v38, %v3001_v31 }
  0x25   : > { %v516_v51 = vrot.slane %v515_v36, 2  ;;  %v582_v54 = vshll.u32 %v2959_v47, 16  ;;  %873 = vst [vmem:[#allocation1 + $0x1] ss:$4 sm:$0xff] %v498_v39  ;;  %v575_v55 = vrot.slane %v573_v43, 6  ;;  %v586_v60 = vshrl.u32 %v2959_v47, 16 }
  0x26   : > { %v578_v59 = vrot.slane %v576_v44, 7  ;;  %v591_v62 = vshll.u32 %v2975_v56, 16  ;;  %876 = vst [vmem:[#allocation1 + $0x2] ss:$4 sm:$0xff] %v508_v48  ;;  %v567_v1 = vrot.slane %v566_v52, 2  ;;  %v595_v3 = vshrl.u32 %v2975_v56, 16 }
  0x27   : > { %v521_v0 = vsel %vm2994_vm8, %v516_v51, %v2999_v30  ;;  %v584_v2 = vrot.slane %v582_v54, 7  ;;  %v588_v5 = vrot.slane %v586_v60, 6  ;;  %v601_v7 = vshll.u32 %v421_v57, 16 }
  0x28   : > { %v579_v4 = vor.u32 %v578_v59, %v575_v55  ;;  %v593_v6 = vrot.slane %v591_v62, 7  ;;  %879 = vst [vmem:[#allocation1 + $0x3] ss:$4 sm:$0xff] %v521_v0  ;;  %v3023_v8 = vrot.slane %v2971_v53, 2  ;;  %v597_v9 = vrot.slane %v595_v3, 6 }
  0x29   : > { %v646_v10 = vshll.u32 %v2964_v49, 16  ;;  %v650_v11 = vshrl.u32 %v2964_v49, 16  ;;  %v321_v12 = vsel %vm248_vm2, %v2921_v17, %v236_v28  ;;  %v589_v14 = vor.u32 %v588_v5, %v584_v2 }
  0x2a   : > { %v580_v56 = vrot.slane %v579_v4, 2  ;;  %v655_v16 = vshll.u32 %v2981_v58, 16  ;;  %v392_v57 = vrot.slane %v3016_v63, 2  ;;  %v433_v18 = vrot.slane %v2986_v61, 2 }
  0x2b   : > { %v598_v53 = vor.u32 %v597_v9, %v593_v6  ;;  %v659_v20 = vshrl.u32 %v2981_v58, 16  ;;  %v572_v24 = vsel %vm2994_vm8, %v567_v1, %v571_v40  ;;  %v590_v25 = vrot.slane %v589_v14, 2 }
  0x2c   : > { %v603_v26 = vrot.slane %v601_v7, 7  ;;  %v3038_v27 = vrot.slane %v646_v10, 7  ;;  %v585_v32 = vsel %vm2994_vm8, %v580_v56, %v584_v2  ;;  %v652_v35 = vrot.slane %v650_v11, 6  ;;  %v372_v2 = vld [vmem:[%s2911_s16 + $0x54] sm:$0x7] }
  0x2d   : > { %v599_v34 = vrot.slane %v598_v53, 2  ;;  %v669_v36 = vshrl.u32 %v2967_v50, 16  ;;  %v3043_v38 = vrot.slane %v655_v16, 7  ;;  %v661_v61 = vrot.slane %v659_v20, 6  ;;  %v373_v16 = vld [vmem:[%s2911_s16 + $0x5c] sm:$0x7] }
  0x2e   : > { %v672_v58 = vshll.u32 %v2967_v50, 16  ;;  %v678_v39 = vshll.u32 %v3023_v8, 16  ;;  %v394_v40 = vrot.slane %v370_v21, 2  ;;  %v3051_v43 = vsel %vm244_vm3, %v3016_v63, %v392_v57 }
  0x2f   : > { %v594_v44 = vsel %vm2994_vm8, %v590_v25, %v593_v6  ;;  %v671_v48 = vrot.slane %v669_v36, 6  ;;  %v3055_v51 = vld.sshfl [vmem:[#allocation1] sm:$0xff pattern:$0x73625140]  ;;  %v604_v52 = vsel %vm2994_vm8, %v599_v34, %v603_v26  ;;  %v682_v59 = vshrl.u32 %v3023_v8, 16 }
  0x30   : > { %v674_v54 = vrot.slane %v672_v58, 7  ;;  %v3059_v55 = vrot.slane %v678_v39, 7  ;;  %895 = vst [vmem:[#allocation1] ss:$4 sm:$0xff] %v572_v24  ;;  %v3066_v60 = vsel %vm244_vm3, %v2921_v17, %v236_v28  ;;  %v3068_v62 = vrot.slane %v321_v12, 2 }
  0x31   : > { %v653_v0 = vor.u32 %v652_v35, %v3038_v27  ;;  %897 = vst [vmem:[#allocation1 + $0x1] ss:$4 sm:$0xff] %v585_v32  ;;  %v3075_v1 = vsel %vm244_vm3, %v2924_v19, %v238_v29  ;;  %v662_v3 = vor.u32 %v661_v61, %v3043_v38  ;;  %v665_v4 = vshll.u32 %v433_v18, 16 }
  0x32   : > { %v684_v5 = vrot.slane %v682_v59, 6  ;;  %899 = vst [vmem:[#allocation1 + $0x2] ss:$4 sm:$0xff] %v594_v44  ;;  %v330_v17 = vsel %vm248_vm2, %v2924_v19, %v238_v29  ;;  %v448_v28 = vsel %vm244_vm3, %v370_v21, %v394_v40  ;;  %v675_v6 = vor.u32 %v674_v54, %v671_v48 }
  0x33   : > { %v687_v7 = vshll.u32 %v3051_v43, 16  ;;  %901 = vst [vmem:[#allocation1 + $0x3] ss:$4 sm:$0xff] %v604_v52  ;;  %v348_v9 = vsel %vm248_vm2, %v2928_v22, %v242_v33  ;;  %v733_v11 = vshrl.u32 %v3066_v60, 16  ;;  %v736_v12 = vshll.u32 %v3066_v60, 16 }
  0x34   : > { %v685_v10 = vor.u32 %v684_v5, %v3059_v55  ;;  %v396_v56 = vrot.slane %v372_v2, 2  ;;  %v654_v14 = vrot.slane %v653_v0, 2  ;;  %v742_v19 = vshll.u32 %v3068_v62, 16 }
  0x35   : > { %v746_v29 = vshrl.u32 %v3068_v62, 16  ;;  %v663_v18 = vrot.slane %v662_v3, 2  ;;  %v667_v53 = vrot.slane %v665_v4, 7  ;;  %v751_v20 = vshll.u32 %v448_v28, 16 }
  0x36   : > { %v755_v24 = vshrl.u32 %v448_v28, 16  ;;  %v449_v25 = vsel %vm248_vm2, %v370_v21, %v394_v40  ;;  %v676_v26 = vrot.slane %v675_v6, 2  ;;  %v3096_v32 = vrot.slane %v687_v7, 7 }
  0x37   : > { %v765_v34 = vshrl.u32 %v3075_v1, 16  ;;  %v686_v35 = vrot.slane %v685_v10, 2  ;;  %v735_v36 = vrot.slane %v733_v11, 6  ;;  %v738_v61 = vrot.slane %v736_v12, 7 }
  0x38   : > { %v768_v58 = vshll.u32 %v3075_v1, 16  ;;  %v397_v39 = vrot.slane %v373_v16, 2  ;;  %v658_v44 = vsel %vm2994_vm8, %v654_v14, %v3043_v38  ;;  %v744_v48 = vrot.slane %v742_v19, 7 }
  0x39   : > { %v748_v52 = vrot.slane %v746_v29, 6  ;;  %v451_v54 = vrot.slane %v449_v25, 2  ;;  %v668_v21 = vsel %vm2994_vm8, %v663_v18, %v667_v53  ;;  %v753_v40 = vrot.slane %v751_v20, 7 }
  0x3a   : > { %v757_v59 = vrot.slane %v755_v24, 6  ;;  %v3105_v0 = vrot.slane %v330_v17, 2  ;;  %v681_v3 = vsel %vm2994_vm8, %v676_v26, %v3059_v55  ;;  %v767_v4 = vrot.slane %v765_v34, 6  ;;  %v3110_v28 = vld.sshfl [vmem:[#allocation1] sm:$0xff pattern:$0x73625140] }
  0x3b   : > { %v770_v5 = vrot.slane %v768_v58, 7  ;;  %v460_v38 = vsel %vm244_vm3, %v372_v2, %v396_v56  ;;  %v690_v6 = vsel %vm2994_vm8, %v686_v35, %v3096_v32  ;;  %v739_v7 = vor.u32 %v738_v61, %v735_v36  ;;  %913 = vst [vmem:[#allocation1] ss:$4 sm:$0xff] %v658_v44 }
  0x3c   : > { %v3120_v17 = vsel %vm244_vm3, %v2928_v22, %v242_v33  ;;  %v3122_v10 = vrot.slane %v348_v9, 2  ;;  %v461_v55 = vsel %vm248_vm2, %v372_v2, %v396_v56  ;;  %v749_v11 = vor.u32 %v748_v52, %v744_v48  ;;  %915 = vst [vmem:[#allocation1 + $0x1] ss:$4 sm:$0xff] %v668_v21 }
  0x3d   : > { %v466_v12 = vsel %vm244_vm3, %v373_v16, %v397_v39  ;;  %v758_v14 = vor.u32 %v757_v59, %v753_v40  ;;  %v761_v19 = vshll.u32 %v451_v54, 16  ;;  %917 = vst [vmem:[#allocation1 + $0x2] ss:$4 sm:$0xff] %v681_v3  ;;  %v771_v29 = vor.u32 %v770_v5, %v767_v4 }
  0x3e   : > { %v774_v18 = vshll.u32 %v3105_v0, 16  ;;  %v815_v53 = vshll.u32 %v460_v38, 16  ;;  %v819_v20 = vshrl.u32 %v460_v38, 16  ;;  %919 = vst [vmem:[#allocation1 + $0x3] ss:$4 sm:$0xff] %v690_v6  ;;  %v463_v24 = vrot.slane %v461_v55, 2 }
  0x3f   : > { %v740_v22 = vrot.slane %v739_v7, 2  ;;  %v829_v33 = vshrl.u32 %v3120_v17, 16  ;;  %v832_v9 = vshll.u32 %v3120_v17, 16  ;;  %v467_v2 = vsel %vm248_vm2, %v373_v16, %v397_v39 }
  0x40   : > { %v750_v56 = vrot.slane %v749_v11, 2  ;;  %v838_v25 = vshll.u32 %v3122_v10, 16  ;;  %v842_v26 = vshrl.u32 %v3122_v10, 16  ;;  %v759_v34 = vrot.slane %v758_v14, 2 }
  0x41   : > { %v763_v35 = vrot.slane %v761_v19, 7  ;;  %v847_v36 = vshll.u32 %v466_v12, 16  ;;  %v851_v61 = vshrl.u32 %v466_v12, 16  ;;  %v772_v58 = vrot.slane %v771_v29, 2 }
  0x42   : > { %v3132_v44 = vrot.slane %v774_v18, 7  ;;  %v3134_v52 = vrot.slane %v815_v53, 7  ;;  %v821_v54 = vrot.slane %v819_v20, 6  ;;  %v745_v21 = vsel %vm2994_vm8, %v740_v22, %v744_v48 }
  0x43   : > { %v831_v59 = vrot.slane %v829_v33, 6  ;;  %v834_v16 = vrot.slane %v832_v9, 7  ;;  %v754_v39 = vsel %vm2994_vm8, %v750_v56, %v753_v40  ;;  %v840_v3 = vrot.slane %v838_v25, 7  ;;  %v173_v56 = vld [vmem:[%s2911_s16 + $0x4] sm:$0x3] }
  0x44   : > { %v844_v4 = vrot.slane %v842_v26, 6  ;;  %v469_v5 = vrot.slane %v467_v2, 2  ;;  %v764_v38 = vsel %vm2994_vm8, %v759_v34, %v763_v35  ;;  %v849_v6 = vrot.slane %v847_v36, 7  ;;  %v176_v2 = vld [vmem:[%s2911_s16 + $0x10] sm:$0xf] }
  0x45   : > { %v853_v7 = vrot.slane %v851_v61, 6  ;;  %v3142_v55 = vld.sshfl [vmem:[#allocation1] sm:$0xff pattern:$0x73625140]  ;;  %v777_v11 = vsel %vm2994_vm8, %v772_v58, %v3132_v44  ;;  %v822_v48 = vor.u32 %v821_v54, %v3134_v52  ;;  %v825_v12 = vshll.u32 %v463_v24, 16 }
  0x46   : > { %931 = vst [vmem:[#allocation1] ss:$4 sm:$0xff] %v745_v21  ;;  %v835_v40 = vor.u32 %v834_v16, %v831_v59  ;;  %v845_v14 = vor.u32 %v844_v4, %v840_v3  ;;  %v857_v29 = vshll.u32 %v469_v5, 16  ;;  %v224_v26 = vrot.slane %v176_v2, 2  ;;  %v363_v36 = vld [vmem:[%s2911_s16 + $0xc] sm:$0x7] }
  0x47   : > { %933 = vst [vmem:[#allocation1 + $0x1] ss:$4 sm:$0xff] %v754_v39  ;;  %v854_v19 = vor.u32 %v853_v7, %v849_v6  ;;  %v823_v18 = vrot.slane %v822_v48, 2  ;;  %v827_v53 = vrot.slane %v825_v12, 7  ;;  %v387_v54 = vrot.slane %v363_v36, 2 }
  0x48   : > { %935 = vst [vmem:[#allocation1 + $0x2] ss:$4 sm:$0xff] %v764_v38  ;;  %v836_v20 = vrot.slane %v835_v40, 2  ;;  %v846_v22 = vrot.slane %v845_v14, 2  ;;  %v859_v9 = vrot.slane %v857_v29, 7  ;;  %v267_v58 = vsel %vm248_vm2, %v176_v2, %v224_v26 }
  0x49   : > { %937 = vst [vmem:[#allocation1 + $0x3] ss:$4 sm:$0xff] %v777_v11  ;;  %v855_v33 = vrot.slane %v854_v19, 2  ;;  %v828_v24 = vsel %vm2994_vm8, %v823_v18, %v827_v53  ;;  %v3162_v21 = vrot.slane %v267_v58, 2  ;;  %v221_v59 = vrot.slane %v173_v56, 2 }
  0x4a   : > { %v841_v25 = vsel %vm2994_vm8, %v836_v20, %v840_v3  ;;  %v850_v34 = vsel %vm2994_vm8, %v846_v22, %v849_v6  ;;  %v3165_v16 = vsel %vm244_vm3, %v176_v2, %v224_v26  ;;  %v406_v39 = vsel %vm244_vm3, %v363_v36, %v387_v54  ;;  %v180_v12 = vld [vmem:[%s2911_s16 + $0x20] sm:$0xf] }
  0x4b   : > { %v860_v61 = vsel %vm2994_vm8, %v855_v33, %v859_v9  ;;  %v522_v3 = vshrl.u32 %v2954_v45, 16  ;;  %v527_v4 = vshll.u32 %v406_v39, 16  ;;  %v531_v5 = vshrl.u32 %v406_v39, 16  ;;  %v366_v33 = vld [vmem:[%s2911_s16 + $0x24] sm:$0x7] }
  0x4c   : > { %v541_v38 = vshrl.u32 %v3165_v16, 16  ;;  %v407_v6 = vsel %vm248_vm2, %v363_v36, %v387_v54  ;;  %v544_v7 = vshll.u32 %v3165_v16, 16  ;;  %v550_v11 = vshll.u32 %v3162_v21, 16 }
  0x4d   : > { %v554_v48 = vshrl.u32 %v3162_v21, 16  ;;  %v409_v40 = vrot.slane %v407_v6, 2  ;;  %v524_v14 = vrot.slane %v522_v3, 6  ;;  %v529_v19 = vrot.slane %v527_v4, 7 }
  0x4e   : > { %v533_v29 = vrot.slane %v531_v5, 6  ;;  %v228_v18 = vrot.slane %v180_v12, 2  ;;  %v543_v53 = vrot.slane %v541_v38, 6  ;;  %v546_v20 = vrot.slane %v544_v7, 7 }
  0x4f   : > { %v552_v22 = vrot.slane %v550_v11, 7  ;;  %v525_v9 = vor.u32 %v524_v14, %v2999_v30  ;;  %v537_v2 = vshll.u32 %v409_v40, 16  ;;  %v254_v58 = vsel %vm244_vm3, %v173_v56, %v221_v59 }
  0x50   : > { %v3156_v35 = vld.sshfl [vmem:[#allocation1] sm:$0xff pattern:$0x73625140]  ;;  %v285_v26 = vsel %vm248_vm2, %v180_v12, %v228_v18  ;;  %v547_v36 = vor.u32 %v546_v20, %v543_v53  ;;  %v3185_v4 = vsel %vm244_vm3, %v180_v12, %v228_v18  ;;  %v179_v53 = vld [vmem:[%s2911_s16 + $0x1c] sm:$0x3]  ;;  %vm2568_vm10 = vcmask 257024  }
  0x51   : > { %949 = vst [vmem:[#allocation1] ss:$4 sm:$0xff] %v828_v24  ;;  %v534_v24 = vor.u32 %v533_v29, %v529_v19  ;;  %v3180_v54 = vrot.slane %v285_v26, 2  ;;  %v526_v39 = vrot.slane %v525_v9, 2  ;;  %v539_v30 = vrot.slane %v537_v2, 7 }
  0x52   : > { %951 = vst [vmem:[#allocation1 + $0x1] ss:$4 sm:$0xff] %v841_v25  ;;  %v556_v25 = vrot.slane %v554_v48, 6  ;;  %v548_v38 = vrot.slane %v547_v36, 2  ;;  %v605_v7 = vshrl.u32 %v3185_v4, 16  ;;  %v608_v59 = vshll.u32 %v3185_v4, 16 }
  0x53   : > { %953 = vst [vmem:[#allocation1 + $0x2] ss:$4 sm:$0xff] %v850_v34  ;;  %v390_v34 = vrot.slane %v366_v33, 2  ;;  %v535_v5 = vrot.slane %v534_v24, 2  ;;  %v614_v11 = vshll.u32 %v3180_v54, 16  ;;  %v530_v40 = vsel %vm2994_vm8, %v526_v39, %v529_v19 }
  0x54   : > { %955 = vst [vmem:[#allocation1 + $0x3] ss:$4 sm:$0xff] %v860_v61  ;;  %v177_v61 = vld [vmem:[%s2911_s16 + $0x14] sm:$0x3]  ;;  %v557_v6 = vor.u32 %v556_v25, %v552_v22  ;;  %v607_v29 = vrot.slane %v605_v7, 6  ;;  %v610_v18 = vrot.slane %v608_v59, 7  ;;  %v3207_v19 = vsel %vm244_vm3, %v2917_v15, %v230_v23 }
  0x55   : > { %v424_v56 = vsel %vm244_vm3, %v366_v33, %v390_v34  ;;  %v225_v48 = vrot.slane %v177_v61, 2  ;;  %v425_v12 = vsel %vm248_vm2, %v366_v33, %v390_v34  ;;  %v540_v14 = vsel %vm2994_vm8, %v535_v5, %v539_v30  ;;  %882 = vst [vmem:[#allocation1 + $0x20] ss:$4 sm:$0xff] %v530_v40  ;;  %v186_v5 = vld [vmem:[%s2911_s16 + $0x38] sm:$0xf] }
  0x56   : > { %v616_v20 = vrot.slane %v614_v11, 7  ;;  %v618_v9 = vshrl.u32 %v3180_v54, 16  ;;  %v623_v24 = vshll.u32 %v424_v56, 16  ;;  %v627_v33 = vshrl.u32 %v424_v56, 16  ;;  %885 = vst [vmem:[#allocation1 + $0x21] ss:$4 sm:$0xff] %v540_v14 }
  0x57   : > { %v611_v2 = vor.u32 %v610_v18, %v607_v29  ;;  %v227_v36 = vrot.slane %v179_v53, 2  ;;  %v637_v15 = vshrl.u32 %v3207_v19, 16  ;;  %v640_v23 = vshll.u32 %v3207_v19, 16 }
  0x58   : > { %v620_v25 = vrot.slane %v618_v9, 6  ;;  %v625_v26 = vrot.slane %v623_v24, 7  ;;  %v629_v34 = vrot.slane %v627_v33, 6  ;;  %v691_v7 = vshrl.u32 %v3051_v43, 16  ;;  %v369_v33 = vld [vmem:[%s2911_s16 + $0x3c] sm:$0x7] }
  0x59   : > { %v612_v30 = vrot.slane %v611_v2, 2  ;;  %v281_v56 = vsel %vm244_vm3, %v179_v53, %v227_v36  ;;  %v639_v11 = vrot.slane %v637_v15, 6  ;;  %vm2570_vm11 = vcmask 254976  }
  0x5a   : > { %v621_v39 = vor.u32 %v620_v25, %v616_v20  ;;  %v693_v43 = vrot.slane %v691_v7, 6  ;;  %v437_v25 = vsel %vm248_vm2, %v3016_v63, %v392_v57 }
  0x5b   : > { %v3182_v3 = vld.sshfl [vmem:[#allocation1] sm:$0xff pattern:$0x73625140]  ;;  %v617_v40 = vsel %vm2994_vm8, %v612_v30, %v616_v20  ;;  %v439_v63 = vrot.slane %v437_v25, 2 }
  0x5c   : > { %1054 = vst [vmem:[#allocation1] ss:$4 sm:$0xff] %v2941_v37  ;;  %v558_v37 = vrot.slane %v557_v6, 2  ;;  %v622_v59 = vrot.slane %v621_v39, 2  ;;  %v694_v9 = vor.u32 %v693_v43, %v3096_v32  ;;  %v393_v32 = vrot.slane %v369_v33, 2 }
  0x5d   : > { %1056 = vst [vmem:[#allocation1 + $0x1] ss:$4 sm:$0xff] %v2948_v41  ;;  %v553_v41 = vsel %vm2994_vm8, %v548_v38, %v552_v22  ;;  %v189_v39 = vld [vmem:[%s2911_s16 + $0x44] sm:$0x3] }
  0x5e   : > { %1058 = vst [vmem:[#allocation1 + $0x2] ss:$4 sm:$0xff] %v254_v58  ;;  %v562_v22 = vsel %vm2994_vm8, %v558_v37, %v3001_v31  ;;  %v272_v58 = vsel %vm244_vm3, %v177_v61, %v225_v48  ;;  %v630_v31 = vor.u32 %v629_v34, %v625_v26  ;;  %v234_v61 = vrot.slane %v186_v5, 2 }
  0x5f   : > { %1060 = vst [vmem:[#allocation1 + $0x3] ss:$4 sm:$0xff] %v2951_v42  ;;  %v427_v42 = vrot.slane %v425_v12, 2  ;;  %v642_v48 = vrot.slane %v640_v23, 7  ;;  %v183_v12 = vld [vmem:[%s2911_s16 + $0x2c] sm:$0x3]  ;;  %v442_v57 = vsel %vm244_vm3, %v369_v33, %v393_v32  ;;  %v443_v7 = vsel %vm248_vm2, %v369_v33, %v393_v32 }
  0x60   : > { %888 = vst [vmem:[#allocation1 + $0x22] ss:$4 sm:$0xff] %v553_v41  ;;  %v631_v37 = vrot.slane %v630_v31, 2  ;;  %v626_v41 = vsel %vm2994_vm8, %v622_v59, %v625_v26  ;;  %v312_v53 = vsel %vm248_vm2, %v186_v5, %v234_v61  ;;  %v3234_v20 = vsel %vm244_vm3, %v186_v5, %v234_v61  ;;  %v2819_v33 = vld [vmem:[%s3779_s1 + $0x68] sm:$0xff]  ;;  %v2818_v32 = vld [vmem:[%s3779_s1 + $0x60] sm:$0xff] }
  0x61   : > { %891 = vst [vmem:[#allocation1 + $0x23] ss:$4 sm:$0xff] %v562_v22  ;;  %v633_v38 = vshll.u32 %v427_v42, 16  ;;  %v643_v29 = vor.u32 %v642_v48, %v639_v11  ;;  %v3236_v24 = vrot.slane %v312_v53, 2  ;;  %v701_v26 = vshrl.u32 %v3234_v20, 16  ;;  %v2810_v53 = vld [vmem:[%s3779_s1 + $0x20] sm:$0xff]  ;;  %2313 = vmatpush.bf16.msra.mxu3 %v2819_v33 }
  0x62   : > { %v704_v34 = vshll.u32 %v3234_v20, 16  ;;  %v237_v31 = vrot.slane %v189_v39, 2  ;;  %v719_v59 = vshll.u32 %v442_v57, 16  ;;  %v193_v11 = vld [vmem:[%s2911_s16 + $0x54] sm:$0x3]  ;;  %v695_v43 = vrot.slane %v694_v9, 2  ;;  %1007 = vmatpush.bf16.msra.mxu0 %v2810_v53 }
  0x63   : > { %v635_v14 = vrot.slane %v633_v38, 7  ;;  %v644_v42 = vrot.slane %v643_v29, 2  ;;  %v703_v15 = vrot.slane %v701_v26, 6  ;;  %v371_v38 = vld [vmem:[%s2911_s16 + $0x4c] sm:$0x7] }
  0x64   : > { %v706_v23 = vrot.slane %v704_v34, 7  ;;  %v326_v48 = vsel %vm244_vm3, %v189_v39, %v237_v31  ;;  %v721_v29 = vrot.slane %v719_v59, 7  ;;  %v195_v9 = vld [vmem:[%s2911_s16 + $0x5c] sm:$0x3] }
  0x65   : > { %v649_v36 = vsel %vm2994_vm8, %v644_v42, %v3038_v27  ;;  %v192_v27 = vld [vmem:[%s2911_s16 + $0x50] sm:$0xf]  ;;  %2672 = vmatmul.msk.bf16.vlgmr.msra.gmra.mxu0 %vm981_vm9, %v3055_v51  ;;  %2314 = vmatpush.bf16.msra.mxu3 %v2818_v32 }
  0x66   : > { %v3216_v6 = vld.sshfl [vmem:[#allocation1] sm:$0xff pattern:$0x73625140]  ;;  %v707_v61 = vor.u32 %v706_v23, %v703_v15  ;;  %v2706_v23 = vld [vmem:[%s2911_s16 + $0x8] sm:$0xf] }
  0x67   : > { %1071 = vst [vmem:[#allocation1] ss:$4 sm:$0xff] %v272_v58  ;;  %v710_v58 = vshll.u32 %v3236_v24, 16 }
  0x68   : > { %1072 = vst [vmem:[#allocation1 + $0x1] ss:$4 sm:$0xff] %v2957_v46  ;;  %v3227_v18 = vld.sshfl [vmem:[#allocation1 + $0x20] sm:$0xff pattern:$0x73625140]  ;;  %v231_v46 = vrot.slane %v183_v12, 2 }
  0x69   : > { %1073 = vst [vmem:[#allocation1 + $0x2] ss:$4 sm:$0xff] %v2959_v47  ;;  %v636_v47 = vsel %vm2994_vm8, %v631_v37, %v635_v14  ;;  %v712_v5 = vrot.slane %v710_v58, 7  ;;  %v395_v37 = vrot.slane %v371_v38, 2  ;;  %v445_v14 = vrot.slane %v443_v7, 2 }
  0x6a   : > { %1074 = vst [vmem:[#allocation1 + $0x3] ss:$4 sm:$0xff] %v281_v56  ;;  %v299_v22 = vsel %vm244_vm3, %v183_v12, %v231_v46  ;;  %v697_v56 = vshll.u32 %v439_v63, 16  ;;  %v708_v42 = vrot.slane %v707_v61, 2 }
  0x6b   : > { %903 = vst [vmem:[#allocation1 + $0x20] ss:$4 sm:$0xff] %v617_v40  ;;  %v240_v40 = vrot.slane %v192_v27, 2  ;;  %v729_v34 = vshll.u32 %v445_v14, 16 }
  0x6c   : > { %905 = vst [vmem:[#allocation1 + $0x21] ss:$4 sm:$0xff] %v626_v41  ;;  %v699_v41 = vrot.slane %v697_v56, 7  ;;  %v713_v58 = vsel %vm2994_vm8, %v708_v42, %v712_v5 }
  0x6d   : > { %907 = vst [vmem:[#allocation1 + $0x22] ss:$4 sm:$0xff] %v636_v47  ;;  %v2806_v47 = vld [vmem:[%s3779_s1] sm:$0xff] }
  0x6e   : > { %909 = vst [vmem:[#allocation1 + $0x23] ss:$4 sm:$0xff] %v649_v36  ;;  %1155 = vmatpush.bf16.msra.mxu1 %v2806_v47  ;;  %v700_v25 = vsel %vm2994_vm8, %v695_v43, %v699_v41  ;;  %v3317_v47 = vld [vmem:[%s2911_s16 + $0x10] sm:$0xf] }
  0x71   : > { %v3240_v2 = vld.sshfl [vmem:[#allocation1] sm:$0xff pattern:$0x73625140]  ;;  %2697 = vmatmul.msk.bf16.vlgmr.msra.gmra.mxu1 %vm981_vm9, %v3216_v6 }
  0x72   : > { %1081 = vst [vmem:[#allocation1] ss:$4 sm:$0xff] %v2964_v49  ;;  %v714_v49 = vshrl.u32 %v3236_v24, 16 }
  0x73   : > { %1082 = vst [vmem:[#allocation1 + $0x1] ss:$4 sm:$0xff] %v299_v22  ;;  %v241_v22 = vrot.slane %v193_v11, 2 }
  0x74   : > { %1083 = vst [vmem:[#allocation1 + $0x2] ss:$4 sm:$0xff] %v2967_v50  ;;  %v716_v30 = vrot.slane %v714_v49, 6  ;;  %v723_v50 = vshrl.u32 %v442_v57, 16  ;;  %v3294_v49 = vsel %vm244_vm3, %v192_v27, %v240_v40  ;;  %v243_v57 = vrot.slane %v195_v9, 2 }
  0x75   : > { %1084 = vst [vmem:[#allocation1 + $0x3] ss:$4 sm:$0xff] %v3023_v8  ;;  %v3284_v36 = vld.sshfl [vmem:[#allocation1 + $0x20] sm:$0xff pattern:$0x73625140]  ;;  %v344_v15 = vsel %vm244_vm3, %v193_v11, %v241_v22  ;;  %v797_v7 = vshrl.u32 %v3294_v49, 16  ;;  %2673 = vmatmul.msk.bf16.gmra.mxu0 %vm981_vm9, %v3227_v18 }
  0x76   : > { %v717_v8 = vor.u32 %v716_v30, %v712_v5  ;;  %v725_v46 = vrot.slane %v723_v50, 6  ;;  %v778_v5 = vshrl.u32 %v3105_v0, 16  ;;  %921 = vst [vmem:[#allocation1 + $0x20] ss:$4 sm:$0xff] %v700_v25  ;;  %v731_v30 = vrot.slane %v729_v34, 7 }
  0x77   : > { %923 = vst [vmem:[#allocation1 + $0x21] ss:$4 sm:$0xff] %v713_v58  ;;  %v800_v56 = vshll.u32 %v3294_v49, 16  ;;  %v353_v11 = vsel %vm244_vm3, %v195_v9, %v243_v57  ;;  %v799_v43 = vrot.slane %v797_v7, 6  ;;  %v2713_v7 = vld [vmem:[%s2911_s16 + $0x24] sm:$0x3] }
  0x78   : > { %v726_v26 = vor.u32 %v725_v46, %v721_v29 }
  0x79   : > { %v802_v41 = vrot.slane %v800_v56, 7 }
  0x7a   : > { %v727_v51 = vrot.slane %v726_v26, 2 }
  0x7b   : > { %v803_v22 = vor.u32 %v802_v41, %v799_v43 }
  0x7c   : > { %v3263_v12 = vld.sshfl [vmem:[#allocation1] sm:$0xff pattern:$0x73625140] }
  0x7d   : > { %1091 = vst [vmem:[#allocation1] ss:$4 sm:$0xff] %v3066_v60  ;;  %v718_v60 = vrot.slane %v717_v8, 2  ;;  %v1251_v8 = vrot.slane %v2706_v23, 2  ;;  %v804_v57 = vrot.slane %v803_v22, 2 }
  0x7e   : > { %1092 = vst [vmem:[#allocation1 + $0x1] ss:$4 sm:$0xff] %v3068_v62  ;;  %v339_v62 = vsel %vm248_vm2, %v192_v27, %v240_v40  ;;  %v455_v27 = vsel %vm248_vm2, %v371_v38, %v395_v37  ;;  %v732_v40 = vsel %vm2994_vm8, %v727_v51, %v731_v30  ;;  %v181_v22 = vld [vmem:[%s2911_s16 + $0x24] sm:$0x3] }
  0x7f   : > { %1093 = vst [vmem:[#allocation1 + $0x2] ss:$4 sm:$0xff] %v326_v48  ;;  %v3296_v39 = vrot.slane %v339_v62, 2  ;;  %v722_v63 = vsel %vm2994_vm8, %v718_v60, %v721_v29  ;;  %v780_v48 = vrot.slane %v778_v5, 6  ;;  %v2707_v29 = vld [vmem:[%s2911_s16 + $0xc] sm:$0x3]  ;;  %v1277_v32 = vsel %vm244_vm3, %v2706_v23, %v1251_v8 }
  0x80   : > { %1094 = vst [vmem:[#allocation1 + $0x3] ss:$4 sm:$0xff] %v3075_v1  ;;  %v454_v1 = vsel %vm244_vm3, %v371_v38, %v395_v37  ;;  %v457_v38 = vrot.slane %v455_v27, 2  ;;  %v1252_v9 = vrot.slane %v2707_v29, 2  ;;  %v2711_v5 = vld [vmem:[%s2911_s16 + $0x1c] sm:$0x3] }
  0x81   : > { %v783_v31 = vshll.u32 %v454_v1, 16  ;;  %v787_v6 = vshrl.u32 %v454_v1, 16  ;;  %925 = vst [vmem:[#allocation1 + $0x22] ss:$4 sm:$0xff] %v722_v63  ;;  %v806_v50 = vshll.u32 %v3296_v39, 16  ;;  %v810_v61 = vshrl.u32 %v3296_v39, 16 }
  0x82   : > { %v781_v33 = vor.u32 %v780_v48, %v3132_v44  ;;  %927 = vst [vmem:[#allocation1 + $0x23] ss:$4 sm:$0xff] %v732_v40  ;;  %v793_v60 = vshll.u32 %v457_v38, 16  ;;  %v1283_v44 = vsel %vm244_vm3, %v2707_v29, %v1252_v9  ;;  %v2712_v63 = vld [vmem:[%s2911_s16 + $0x20] sm:$0xf]  ;;  %v1256_v56 = vrot.slane %v2711_v5, 2 }
  0x83   : > { %v785_v37 = vrot.slane %v783_v31, 7  ;;  %v789_v14 = vrot.slane %v787_v6, 6  ;;  %v808_v46 = vrot.slane %v806_v50, 7  ;;  %v812_v53 = vrot.slane %v810_v61, 6  ;;  %v2717_v29 = vld [vmem:[%s2911_s16 + $0x34] sm:$0x3] }
  0x84   : > { %v782_v26 = vrot.slane %v781_v33, 2  ;;  %v795_v1 = vrot.slane %v793_v60, 7  ;;  %v1257_v31 = vrot.slane %v2712_v63, 2  ;;  %v1258_v61 = vrot.slane %v2713_v7, 2 }
  0x85   : > { %v790_v42 = vor.u32 %v789_v14, %v785_v37  ;;  %v813_v62 = vor.u32 %v812_v53, %v808_v46  ;;  %v809_v27 = vsel %vm2994_vm8, %v804_v57, %v808_v46  ;;  %v1301_v48 = vsel %vm244_vm3, %v2711_v5, %v1256_v56  ;;  %2674 = vmatmul.msk.bf16.gmra.mxu0 %vm981_vm9, %v3110_v28 }
  0x86   : > { %v1305_v50 = vsel %vm248_vm2, %v2712_v63, %v1257_v31  ;;  %v1304_v38 = vsel %vm244_vm3, %v2712_v63, %v1257_v31  ;;  %v1310_v41 = vsel %vm244_vm3, %v2713_v7, %v1258_v61  ;;  %v229_v28 = vrot.slane %v181_v22, 2 }
  0x87   : > { %v3306_v59 = vld.sshfl [vmem:[#allocation1] sm:$0xff pattern:$0x73625140]  ;;  %v791_v34 = vrot.slane %v790_v42, 2  ;;  %v814_v51 = vrot.slane %v813_v62, 2  ;;  %v1307_v40 = vrot.slane %v1305_v50, 2 }
  0x88   : > { %1101 = vst [vmem:[#allocation1] ss:$4 sm:$0xff] %v344_v15  ;;  %v1262_v42 = vrot.slane %v2717_v29, 2  ;;  %v2722_v62 = vld [vmem:[%s2911_s16 + $0x48] sm:$0xf]  ;;  %v290_v63 = vsel %vm244_vm3, %v181_v22, %v229_v28 }
  0x89   : > { %1102 = vst [vmem:[#allocation1 + $0x1] ss:$4 sm:$0xff] %v3120_v17  ;;  %v1278_v17 = vsel %vm248_vm2, %v2706_v23, %v1251_v8  ;;  %v786_v23 = vsel %vm2994_vm8, %v782_v26, %v785_v37  ;;  %v3336_v30 = vld.sshfl [vmem:[#allocation1 + $0x20] sm:$0xff pattern:$0x73625140]  ;;  %v796_v6 = vsel %vm2994_vm8, %v791_v34, %v795_v1  ;;  %v818_v18 = vsel %vm2994_vm8, %v814_v51, %v3134_v52 }
  0x8a   : > { %1103 = vst [vmem:[#allocation1 + $0x2] ss:$4 sm:$0xff] %v3122_v10  ;;  %v1253_v10 = vrot.slane %v3317_v47, 2  ;;  %v1280_v25 = vrot.slane %v1278_v17, 2  ;;  %v3349_v8 = vld [vmem:[%s2911_s16 + $0x30] sm:$0xf] }
  0x8b   : > { %1104 = vst [vmem:[#allocation1 + $0x3] ss:$4 sm:$0xff] %v353_v11  ;;  %v175_v11 = vld [vmem:[%s2911_s16 + $0xc] sm:$0x3]  ;;  %v2718_v52 = vld [vmem:[%s2911_s16 + $0x38] sm:$0xf] }
  0x8c   : > { %v1286_v15 = vsel %vm244_vm3, %v3317_v47, %v1253_v10  ;;  %939 = vst [vmem:[#allocation1 + $0x20] ss:$4 sm:$0xff] %v786_v23  ;;  %v223_v14 = vrot.slane %v175_v11, 2  ;;  %v1261_v43 = vrot.slane %v3349_v8, 2  ;;  %v1263_v46 = vrot.slane %v2718_v52, 2 }
  0x8d   : > { %941 = vst [vmem:[#allocation1 + $0x21] ss:$4 sm:$0xff] %v796_v6  ;;  %v1267_v34 = vrot.slane %v2722_v62, 2  ;;  %v2755_v1 = vld [vmem:[%s2911_s16 + $0x8] sm:$0xf] }
  0x8e   : > { %943 = vst [vmem:[#allocation1 + $0x22] ss:$4 sm:$0xff] %v809_v27  ;;  %v263_v53 = vsel %vm244_vm3, %v175_v11, %v223_v14  ;;  %v1323_v33 = vsel %vm248_vm2, %v3349_v8, %v1261_v43  ;;  %v1332_v9 = vsel %vm248_vm2, %v2718_v52, %v1263_v46  ;;  %v2756_v51 = vld [vmem:[%s2911_s16 + $0xc] sm:$0x7]  ;;  %v185_v23 = vld [vmem:[%s2911_s16 + $0x34] sm:$0x3] }
  0x8f   : > { %945 = vst [vmem:[#allocation1 + $0x23] ss:$4 sm:$0xff] %v818_v18  ;;  %v1325_v60 = vrot.slane %v1323_v33, 2  ;;  %v1350_v5 = vsel %vm248_vm2, %v2722_v62, %v1267_v34  ;;  %v2757_v6 = vld [vmem:[%s2911_s16 + $0x10] sm:$0xf]  ;;  %v1349_v27 = vsel %vm244_vm3, %v2722_v62, %v1267_v34  ;;  %v1618_v18 = vrot.slane %v2756_v51, 2 }
  0x90   : > { %v1352_v7 = vrot.slane %v1350_v5, 2  ;;  %v187_v50 = vld [vmem:[%s2911_s16 + $0x3c] sm:$0x3]  ;;  %v233_v61 = vrot.slane %v185_v23, 2  ;;  %v2729_v14 = vld [vmem:[%s2911_s16 + $0x64] sm:$0x3] }
  0x91   : > { %v1650_v34 = vsel %vm248_vm2, %v2756_v51, %v1618_v18 }
  0x92   : > { %v3323_v58 = vld.sshfl [vmem:[#allocation1] sm:$0xff pattern:$0x73625140] }
  0x93   : > { %1391 = vst [vmem:[#allocation1] ss:$4 sm:$0xff] %v1277_v32  ;;  %v1328_v32 = vsel %vm244_vm3, %v2717_v29, %v1262_v42  ;;  %v1649_v29 = vsel %vm244_vm3, %v2756_v51, %v1618_v18  ;;  %v1652_v51 = vrot.slane %v1650_v34, 2 }
  0x94   : > { %1394 = vst [vmem:[#allocation1 + $0x1] ss:$4 sm:$0xff] %v1280_v25  ;;  %v1334_v25 = vrot.slane %v1332_v9, 2 }
  0x95   : > { %1396 = vst [vmem:[#allocation1 + $0x2] ss:$4 sm:$0xff] %v1283_v44  ;;  %v1617_v44 = vrot.slane %v2755_v1, 2  ;;  %2675 = vmatmul.msk.bf16.gmra.mxu0 %vm981_vm9, %v3284_v36 }
  0x96   : > { %1398 = vst [vmem:[#allocation1 + $0x3] ss:$4 sm:$0xff] %v1286_v15  ;;  %v3363_v17 = vld.sshfl [vmem:[#allocation1 + $0x20] sm:$0xff pattern:$0x73625140] }
  0x97   : > { %1062 = vst [vmem:[#allocation1 + $0x20] ss:$4 sm:$0xff] %v2954_v45  ;;  %v1331_v45 = vsel %vm244_vm3, %v2718_v52, %v1263_v46  ;;  %v1644_v56 = vsel %vm248_vm2, %v2755_v1, %v1617_v44  ;;  %v308_v46 = vsel %vm244_vm3, %v185_v23, %v233_v61 }
  0x98   : > { %1064 = vst [vmem:[#allocation1 + $0x21] ss:$4 sm:$0xff] %v263_v53 }
  0x99   : > { %1066 = vst [vmem:[#allocation1 + $0x22] ss:$4 sm:$0xff] %v3165_v16  ;;  %v2723_v16 = vld [vmem:[%s2911_s16 + $0x4c] sm:$0x3] }
  0x9a   : > { %1068 = vst [vmem:[#allocation1 + $0x23] ss:$4 sm:$0xff] %v3162_v21  ;;  %v3380_v21 = vld [vmem:[%s2911_s16 + $0x50] sm:$0xf]  ;;  %v1268_v15 = vrot.slane %v2723_v16, 2 }
  0x9b   : > { %v1269_v31 = vrot.slane %v3380_v21, 2 }
  0x9c   : > { %v1355_v11 = vsel %vm244_vm3, %v2723_v16, %v1268_v15 }
  0x9d   : > { %v1409_v37 = vld.sshfl [vmem:[#allocation1] sm:$0xff pattern:$0x73625140] }
  0x9e   : > { %2746 = vmatmul.msk.bf16.vlgmr.msra.gmra.mxu2 %vm981_vm9, %v1409_v37  ;;  %1411 = vst [vmem:[#allocation1] ss:$4 sm:$0xff] %v1301_v48  ;;  %v1619_v48 = vrot.slane %v2757_v6, 2  ;;  %v1646_v37 = vrot.slane %v1644_v56, 2 }
  0x9f   : > { %1412 = vst [vmem:[#allocation1 + $0x1] ss:$4 sm:$0xff] %v1304_v38  ;;  %v2727_v38 = vld [vmem:[%s2911_s16 + $0x5c] sm:$0x3] }
  0xa0   : > { %1414 = vst [vmem:[#allocation1 + $0x2] ss:$4 sm:$0xff] %v1307_v40  ;;  %v1358_v40 = vsel %vm244_vm3, %v3380_v21, %v1269_v31  ;;  %v1272_v36 = vrot.slane %v2727_v38, 2  ;;  %v1655_v53 = vsel %vm244_vm3, %v2757_v6, %v1619_v48  ;;  %v1794_v9 = vshll.u32 %v1646_v37, 16 }
  0xa1   : > { %1415 = vst [vmem:[#allocation1 + $0x3] ss:$4 sm:$0xff] %v1310_v41  ;;  %v1070_v57 = vld.sshfl [vmem:[#allocation1 + $0x20] sm:$0xff pattern:$0x73625140]  ;;  %v235_v41 = vrot.slane %v187_v50, 2 }
  0xa2   : > { %1075 = vst [vmem:[#allocation1 + $0x20] ss:$4 sm:$0xff] %v3185_v4  ;;  %2698 = vmatmul.msk.bf16.gmra.mxu1 %vm981_vm9, %v1070_v57  ;;  %v2728_v4 = vld [vmem:[%s2911_s16 + $0x60] sm:$0xf]  ;;  %v1798_v22 = vshrl.u32 %v1646_v37, 16  ;;  %v1820_v16 = vshll.u32 %v1655_v53, 16  ;;  %v3420_v57 = vsel %vm248_vm2, %v2757_v6, %v1619_v48 }
  0xa3   : > { %1076 = vst [vmem:[#allocation1 + $0x21] ss:$4 sm:$0xff] %v3180_v54  ;;  %v1273_v52 = vrot.slane %v2728_v4, 2  ;;  %v317_v28 = vsel %vm244_vm3, %v187_v50, %v235_v41 }
  0xa4   : > { %1077 = vst [vmem:[#allocation1 + $0x22] ss:$4 sm:$0xff] %v290_v63  ;;  %v1373_v63 = vsel %vm244_vm3, %v2727_v38, %v1272_v36  ;;  %v1800_v56 = vrot.slane %v1798_v22, 6  ;;  %v1822_v48 = vrot.slane %v1820_v16, 7  ;;  %v1287_v22 = vsel %vm248_vm2, %v3317_v47, %v1253_v10  ;;  %v2714_v10 = vld [vmem:[%s2911_s16 + $0x28] sm:$0xf] }
  0xa5   : > { %1078 = vst [vmem:[#allocation1 + $0x23] ss:$4 sm:$0xff] %v3207_v19  ;;  %v1643_v19 = vsel %vm244_vm3, %v2755_v1, %v1617_v44  ;;  %v1817_v1 = vshrl.u32 %v1655_v53, 16  ;;  %v191_v44 = vld [vmem:[%s2911_s16 + $0x4c] sm:$0x3]  ;;  %v1376_v23 = vsel %vm244_vm3, %v2728_v4, %v1273_v52  ;;  %2676 = vmatmul.msk.bf16.gmra.mxu0 %vm981_vm9, %v3142_v55 }
  0xa6   : > { %v1785_v33 = vshrl.u32 %v1643_v19, 16  ;;  %v1788_v42 = vshll.u32 %v1643_v19, 16  ;;  %v239_v61 = vrot.slane %v191_v44, 2  ;;  %v1813_v19 = vshll.u32 %v1652_v51, 16  ;;  %v2720_v51 = vld [vmem:[%s2911_s16 + $0x40] sm:$0xf] }
  0xa7   : > { %v1819_v6 = vrot.slane %v1817_v1, 6 }
  0xa8   : > { %v3375_v26 = vld.sshfl [vmem:[#allocation1] sm:$0xff pattern:$0x73625140]  ;;  %v1787_v15 = vrot.slane %v1785_v33, 6  ;;  %v1790_v5 = vrot.slane %v1788_v42, 7  ;;  %v335_v41 = vsel %vm244_vm3, %v191_v44, %v239_v61  ;;  %v1815_v53 = vrot.slane %v1813_v19, 7 }
  0xa9   : > { %1424 = vst [vmem:[#allocation1] ss:$4 sm:$0xff] %v1325_v60  ;;  %v1274_v60 = vrot.slane %v2729_v14, 2  ;;  %v1823_v37 = vor.u32 %v1822_v48, %v1819_v6  ;;  %v1259_v44 = vrot.slane %v2714_v10, 2  ;;  %v2759_v61 = vld [vmem:[%s2911_s16 + $0x18] sm:$0xf]  ;;  %v1322_v19 = vsel %vm244_vm3, %v3349_v8, %v1261_v43 }
  0xaa   : > { %1425 = vst [vmem:[#allocation1 + $0x1] ss:$4 sm:$0xff] %v1328_v32  ;;  %v1377_v32 = vsel %vm248_vm2, %v2728_v4, %v1273_v52  ;;  %v1791_v4 = vor.u32 %v1790_v5, %v1787_v15  ;;  %v2760_v15 = vld [vmem:[%s2911_s16 + $0x1c] sm:$0x7]  ;;  %v2721_v48 = vld [vmem:[%s2911_s16 + $0x44] sm:$0x3] }
  0xab   : > { %1426 = vst [vmem:[#allocation1 + $0x2] ss:$4 sm:$0xff] %v1331_v45  ;;  %v1803_v45 = vshll.u32 %v1649_v29, 16  ;;  %v1824_v33 = vrot.slane %v1823_v37, 2  ;;  %v1622_v5 = vrot.slane %v2760_v15, 2  ;;  %v1265_v37 = vrot.slane %v2720_v51, 2 }
  0xac   : > { %1428 = vst [vmem:[#allocation1 + $0x3] ss:$4 sm:$0xff] %v1334_v25  ;;  %v3411_v62 = vld.sshfl [vmem:[#allocation1 + $0x20] sm:$0xff pattern:$0x73625140]  ;;  %v1807_v25 = vshrl.u32 %v1649_v29, 16 }
  0xad   : > { %1085 = vst [vmem:[#allocation1 + $0x20] ss:$4 sm:$0xff] %v308_v46  ;;  %v1805_v18 = vrot.slane %v1803_v45, 7  ;;  %v2710_v46 = vld [vmem:[%s2911_s16 + $0x18] sm:$0xf] }
  0xae   : > { %1086 = vst [vmem:[#allocation1 + $0x21] ss:$4 sm:$0xff] %v3234_v20  ;;  %v1809_v50 = vrot.slane %v1807_v25, 6  ;;  %v1255_v55 = vrot.slane %v2710_v46, 2  ;;  %v1289_v25 = vrot.slane %v1287_v22, 2 }
  0xaf   : > { %1087 = vst [vmem:[#allocation1 + $0x22] ss:$4 sm:$0xff] %v3236_v24  ;;  %v1382_v24 = vsel %vm244_vm3, %v2729_v14, %v1274_v60  ;;  %v2709_v60 = vld [vmem:[%s2911_s16 + $0x14] sm:$0x3]  ;;  %v2719_v6 = vld [vmem:[%s2911_s16 + $0x3c] sm:$0x3] }
  0xb0   : > { %1088 = vst [vmem:[#allocation1 + $0x23] ss:$4 sm:$0xff] %v317_v28  ;;  %v1254_v45 = vrot.slane %v2709_v60, 2  ;;  %v1296_v28 = vsel %vm248_vm2, %v2710_v46, %v1255_v55  ;;  %v1295_v1 = vsel %vm244_vm3, %v2710_v46, %v1255_v55  ;;  %v3493_v46 = vld [vmem:[%s2911_s16 + $0x58] sm:$0xf] }
  0xb1   : > { %v1298_v16 = vrot.slane %v1296_v28, 2  ;;  %v1271_v22 = vrot.slane %v3493_v46, 2 }
  0xb2   : > { %2699 = vmatmul.msk.bf16.gmra.mxu1 %vm981_vm9, %v3240_v2  ;;  %v1792_v2 = vrot.slane %v1791_v4, 2  ;;  %v1292_v47 = vsel %vm244_vm3, %v2709_v60, %v1254_v45  ;;  %v1264_v60 = vrot.slane %v2719_v6, 2 }
  0xb3   : > { %v3397_v54 = vld.sshfl [vmem:[#allocation1] sm:$0xff pattern:$0x73625140] }
  0xb4   : > { %1436 = vst [vmem:[#allocation1] ss:$4 sm:$0xff] %v1349_v27  ;;  %v1379_v27 = vrot.slane %v1377_v32, 2 }
  0xb5   : > { %1438 = vst [vmem:[#allocation1 + $0x1] ss:$4 sm:$0xff] %v1352_v7  ;;  %v1796_v7 = vrot.slane %v1794_v9, 7  ;;  %2677 = vmatmul.msk.bf16.gmra.mxu0 %vm981_vm9, %v3336_v30 }
  0xb6   : > { %1439 = vst [vmem:[#allocation1 + $0x2] ss:$4 sm:$0xff] %v1355_v11  ;;  %v1658_v11 = vrot.slane %v3420_v57, 2 }
  0xb7   : > { %1440 = vst [vmem:[#allocation1 + $0x3] ss:$4 sm:$0xff] %v1358_v40  ;;  %v1801_v38 = vor.u32 %v1800_v56, %v1796_v7  ;;  %v1810_v40 = vor.u32 %v1809_v50, %v1805_v18  ;;  %v3435_v29 = vld.sshfl [vmem:[#allocation1 + $0x20] sm:$0xff pattern:$0x73625140]  ;;  %v1797_v9 = vsel %vm2994_vm8, %v1792_v2, %v1796_v7  ;;  %v1673_v56 = vsel %vm244_vm3, %v2760_v15, %v1622_v5 }
  0xb8   : > { %v3432_v52 = vshll.u32 %v1658_v11, 16  ;;  %1095 = vst [vmem:[#allocation1 + $0x20] ss:$4 sm:$0xff] %v3105_v0  ;;  %v2758_v7 = vld [vmem:[%s2911_s16 + $0x14] sm:$0x7]  ;;  %v1867_v30 = vshll.u32 %v1673_v56, 16  ;;  %v1674_v2 = vsel %vm248_vm2, %v2760_v15, %v1622_v5  ;;  %v1340_v15 = vsel %vm244_vm3, %v2720_v51, %v1265_v37 }
  0xb9   : > { %v1802_v14 = vrot.slane %v1801_v38, 2  ;;  %v1811_v36 = vrot.slane %v1810_v40, 2  ;;  %1096 = vst [vmem:[#allocation1 + $0x21] ss:$4 sm:$0xff] %v335_v41  ;;  %v3483_v38 = vld [vmem:[%s2911_s16 + $0x54] sm:$0x3] }
  0xba   : > { %v1828_v42 = vrot.slane %v3432_v52, 7  ;;  %1097 = vst [vmem:[#allocation1 + $0x22] ss:$4 sm:$0xff] %v3294_v49  ;;  %v1621_v41 = vrot.slane %v2759_v61, 2  ;;  %v3502_v43 = vrot.slane %v1867_v30, 7  ;;  %v1270_v55 = vrot.slane %v3483_v38, 2 }
  0xbb   : > { %1098 = vst [vmem:[#allocation1 + $0x23] ss:$4 sm:$0xff] %v3296_v39  ;;  %v1806_v0 = vsel %vm2994_vm8, %v1802_v14, %v1805_v18  ;;  %v1816_v49 = vsel %vm2994_vm8, %v1811_v36, %v1815_v53  ;;  %v1313_v18 = vsel %vm244_vm3, %v2714_v10, %v1259_v44  ;;  %v1871_v14 = vshrl.u32 %v1673_v56, 16 }
  0xbc   : > { %v1829_v39 = vsel %vm2994_vm8, %v1824_v33, %v1828_v42  ;;  %v1676_v36 = vrot.slane %v1674_v2, 2  ;;  %v3499_v53 = vsel %vm248_vm2, %v3380_v21, %v1269_v31  ;;  %v1668_v21 = vsel %vm248_vm2, %v2759_v61, %v1621_v41 }
  0xbd   : > { %v1873_v33 = vrot.slane %v1871_v14, 6  ;;  %v1667_v45 = vsel %vm244_vm3, %v2759_v61, %v1621_v41  ;;  %v1364_v52 = vsel %vm244_vm3, %v3483_v38, %v1270_v55  ;;  %v1367_v38 = vsel %vm244_vm3, %v3493_v46, %v1271_v22 }
  0xbe   : > { %v3424_v20 = vld.sshfl [vmem:[#allocation1] sm:$0xff pattern:$0x73625140] }
  0xbf   : > { %1449 = vst [vmem:[#allocation1] ss:$4 sm:$0xff] %v1373_v63  ;;  %v2715_v63 = vld [vmem:[%s2911_s16 + $0x2c] sm:$0x3]  ;;  %v1874_v31 = vor.u32 %v1873_v33, %v3502_v43 }
  0xc0   : > { %1450 = vst [vmem:[#allocation1 + $0x1] ss:$4 sm:$0xff] %v1376_v23 }
  0xc1   : > { %1452 = vst [vmem:[#allocation1 + $0x2] ss:$4 sm:$0xff] %v1379_v27  ;;  %v1314_v27 = vsel %vm248_vm2, %v2714_v10, %v1259_v44 }
  0xc2   : > { %1453 = vst [vmem:[#allocation1 + $0x3] ss:$4 sm:$0xff] %v1382_v24  ;;  %v3464_v34 = vld.sshfl [vmem:[#allocation1 + $0x20] sm:$0xff pattern:$0x73625140]  ;;  %2700 = vmatmul.msk.bf16.gmra.mxu1 %vm981_vm9, %v3411_v62  ;;  %v1260_v62 = vrot.slane %v2715_v63, 2 }
  0xc3   : > { %1401 = vst [vmem:[#allocation1 + $0x20] ss:$4 sm:$0xff] %v1289_v25  ;;  %v1316_v50 = vrot.slane %v1314_v27, 2  ;;  %v1620_v24 = vrot.slane %v2758_v7, 2  ;;  %v1670_v27 = vrot.slane %v1668_v21, 2 }
  0xc4   : > { %1403 = vst [vmem:[#allocation1 + $0x21] ss:$4 sm:$0xff] %v1292_v47  ;;  %v1319_v40 = vsel %vm244_vm3, %v2715_v63, %v1260_v62  ;;  %v2761_v47 = vld [vmem:[%s2911_s16 + $0x20] sm:$0xf]  ;;  %v1337_v63 = vsel %vm244_vm3, %v2719_v6, %v1264_v60  ;;  %v1368_v60 = vsel %vm248_vm2, %v3493_v46, %v1271_v22 }
  0xc5   : > { %1405 = vst [vmem:[#allocation1 + $0x22] ss:$4 sm:$0xff] %v1295_v1  ;;  %v1661_v8 = vsel %vm244_vm3, %v2758_v7, %v1620_v24  ;;  %v1662_v10 = vsel %vm248_vm2, %v2758_v7, %v1620_v24  ;;  %v1623_v44 = vrot.slane %v2761_v47, 2  ;;  %2678 = vmatmul.msk.bf16.gmra.mxu0 %vm981_vm9, %v3156_v35 }
  0xc6   : > { %1408 = vst [vmem:[#allocation1 + $0x23] ss:$4 sm:$0xff] %v1298_v16  ;;  %v1835_v25 = vshll.u32 %v1661_v8, 16  ;;  %v1839_v1 = vshrl.u32 %v1661_v8, 16  ;;  %v1875_v16 = vrot.slane %v1874_v31, 2  ;;  %v1664_v56 = vrot.slane %v1662_v10, 2 }
  0xc7   : > { %v1680_v62 = vsel %vm248_vm2, %v2761_v47, %v1623_v44 }
  0xc8   : > { %v3527_v61 = vrot.slane %v1835_v25, 7  ;;  %v1841_v6 = vrot.slane %v1839_v1, 6  ;;  %v1845_v31 = vshll.u32 %v1664_v56, 16  ;;  %v1858_v25 = vshll.u32 %v1670_v27, 16 }
  0xc9   : > { %v3453_v32 = vld.sshfl [vmem:[#allocation1] sm:$0xff pattern:$0x73625140] }
  0xca   : > { %2178 = vst [vmem:[#allocation1] ss:$4 sm:$0xff] %v1797_v9  ;;  %v1266_v9 = vrot.slane %v2721_v48, 2  ;;  %v1842_v1 = vor.u32 %v1841_v6, %v3527_v61  ;;  %v2764_v6 = vld [vmem:[%s2911_s16 + $0x2c] sm:$0x7] }
  0xcb   : > { %2181 = vst [vmem:[#allocation1 + $0x1] ss:$4 sm:$0xff] %v1806_v0  ;;  %v1877_v0 = vshll.u32 %v1676_v36, 16 }
  0xcc   : > { %2184 = vst [vmem:[#allocation1 + $0x2] ss:$4 sm:$0xff] %v1816_v49  ;;  %v1341_v49 = vsel %vm248_vm2, %v2720_v51, %v1265_v37  ;;  %v1852_v37 = vshll.u32 %v1667_v45, 16  ;;  %v1843_v56 = vrot.slane %v1842_v1, 2 }
  0xcd   : > { %2187 = vst [vmem:[#allocation1 + $0x3] ss:$4 sm:$0xff] %v1829_v39  ;;  %v1410_v4 = vld.sshfl [vmem:[#allocation1 + $0x20] sm:$0xff pattern:$0x73625140]  ;;  %v1830_v39 = vshrl.u32 %v1658_v11, 16 }
  0xce   : > { %2747 = vmatmul.msk.bf16.gmra.mxu2 %vm981_vm9, %v1410_v4  ;;  %1416 = vst [vmem:[#allocation1 + $0x20] ss:$4 sm:$0xff] %v1313_v18  ;;  %v1879_v28 = vrot.slane %v1877_v0, 7  ;;  %v1343_v5 = vrot.slane %v1341_v49, 2  ;;  %v1849_v18 = vshrl.u32 %v1667_v45, 16 }
  0xcf   : > { %1418 = vst [vmem:[#allocation1 + $0x21] ss:$4 sm:$0xff] %v1316_v50  ;;  %v1832_v7 = vrot.slane %v1830_v39, 6  ;;  %v1682_v50 = vrot.slane %v1680_v62, 2 }
  0xd0   : > { %1419 = vst [vmem:[#allocation1 + $0x22] ss:$4 sm:$0xff] %v1319_v40  ;;  %v1880_v57 = vsel %vm2994_vm8, %v1875_v16, %v1879_v28  ;;  %v1862_v28 = vshrl.u32 %v1670_v27, 16  ;;  %v1851_v16 = vrot.slane %v1849_v18, 6  ;;  %v2763_v18 = vld [vmem:[%s2911_s16 + $0x28] sm:$0xf] }
  0xd1   : > { %1420 = vst [vmem:[#allocation1 + $0x23] ss:$4 sm:$0xff] %v1322_v19  ;;  %v1890_v40 = vshll.u32 %v1682_v50, 16  ;;  %v1894_v19 = vshrl.u32 %v1682_v50, 16  ;;  %v1833_v21 = vor.u32 %v1832_v7, %v1828_v42  ;;  %v1370_v42 = vrot.slane %v1368_v60, 2 }
  0xd2   : > { %2701 = vmatmul.msk.bf16.gmra.mxu1 %vm981_vm9, %v3263_v12  ;;  %v1346_v12 = vsel %vm244_vm3, %v2721_v48, %v1266_v9  ;;  %v1679_v48 = vsel %vm244_vm3, %v2761_v47, %v1623_v44  ;;  %v1854_v44 = vrot.slane %v1852_v37, 7  ;;  %v1864_v62 = vrot.slane %v1862_v28, 6 }
  0xd3   : > { %v1881_v30 = vshrl.u32 %v1679_v48, 16  ;;  %v1884_v4 = vshll.u32 %v1679_v48, 16  ;;  %v1892_v33 = vrot.slane %v1890_v40, 7  ;;  %v1896_v9 = vrot.slane %v1894_v19, 6  ;;  %v2765_v48 = vld [vmem:[%s2911_s16 + $0x30] sm:$0xf] }
  0xd4   : > { %v2200_v23 = vld.sshfl [vmem:[#allocation1] sm:$0xff pattern:$0x73625140]  ;;  %v1855_v7 = vor.u32 %v1854_v44, %v1851_v16 }
  0xd5   : > { %2795 = vmatmul.msk.bf16.vlgmr.msra.gmra.mxu3 %vm981_vm9, %v2200_v23  ;;  %v2762_v23 = vld [vmem:[%s2911_s16 + $0x24] sm:$0x7]  ;;  %2203 = vst [vmem:[#allocation1] ss:$4 sm:$0xff] %v1880_v57  ;;  %v1883_v36 = vrot.slane %v1881_v30, 6  ;;  %v1886_v8 = vrot.slane %v1884_v4, 7  ;;  %v1897_v47 = vor.u32 %v1896_v9, %v1892_v33  ;;  %2679 = vmatmul.msk.bf16.gmra.mxu0 %vm981_vm9, %v3363_v17 }
  0xd6   : > { %v1624_v11 = vrot.slane %v2762_v23, 2  ;;  %v1847_v57 = vrot.slane %v1845_v31, 7  ;;  %v1626_v30 = vrot.slane %v2764_v6, 2  ;;  %v1627_v4 = vrot.slane %v2765_v48, 2 }
  0xd7   : > { %v1887_v45 = vor.u32 %v1886_v8, %v1883_v36  ;;  %v1856_v40 = vrot.slane %v1855_v7, 2 }
  0xd8   : > { %v3525_v51 = vld.sshfl [vmem:[#allocation1 + $0x20] sm:$0xff pattern:$0x73625140]  ;;  %v1685_v24 = vsel %vm244_vm3, %v2762_v23, %v1624_v11  ;;  %v1686_v41 = vsel %vm248_vm2, %v2762_v23, %v1624_v11  ;;  %v1860_v11 = vrot.slane %v1858_v25, 7  ;;  %v1848_v22 = vsel %vm2994_vm8, %v1843_v56, %v1847_v57 }
  0xd9   : > { %1429 = vst [vmem:[#allocation1 + $0x20] ss:$4 sm:$0xff] %v1337_v63  ;;  %v1899_v2 = vshll.u32 %v1685_v24, 16  ;;  %v1903_v35 = vshrl.u32 %v1685_v24, 16  ;;  %v1688_v14 = vrot.slane %v1686_v41, 2  ;;  %v1888_v63 = vrot.slane %v1887_v45, 2 }
  0xda   : > { %1430 = vst [vmem:[#allocation1 + $0x21] ss:$4 sm:$0xff] %v1340_v15  ;;  %v1361_v15 = vrot.slane %v3499_v53, 2  ;;  %v1625_v24 = vrot.slane %v2763_v18, 2  ;;  %v1697_v41 = vsel %vm244_vm3, %v2764_v6, %v1626_v30  ;;  %v1698_v60 = vsel %vm248_vm2, %v2764_v6, %v1626_v30 }
  0xdb   : > { %1432 = vst [vmem:[#allocation1 + $0x22] ss:$4 sm:$0xff] %v1343_v5  ;;  %v1901_v0 = vrot.slane %v1899_v2, 7  ;;  %v1905_v49 = vrot.slane %v1903_v35, 6  ;;  %v1909_v39 = vshll.u32 %v1688_v14, 16  ;;  %v1898_v5 = vrot.slane %v1897_v47, 2 }
  0xdc   : > { %1433 = vst [vmem:[#allocation1 + $0x23] ss:$4 sm:$0xff] %v1346_v12  ;;  %v1834_v12 = vrot.slane %v1833_v21, 2  ;;  %v1691_v19 = vsel %vm244_vm3, %v2763_v18, %v1625_v24  ;;  %v1692_v37 = vsel %vm248_vm2, %v2763_v18, %v1625_v24  ;;  %v1703_v2 = vsel %vm244_vm3, %v2765_v48, %v1627_v4 }
  0xdd   : > { %v1906_v10 = vor.u32 %v1905_v49, %v1901_v0  ;;  %v1911_v27 = vrot.slane %v1909_v39, 7  ;;  %v1902_v53 = vsel %vm2994_vm8, %v1898_v5, %v1901_v0  ;;  %v1694_v35 = vrot.slane %v1692_v37, 2 }
  0xde   : > { %2748 = vmatmul.msk.bf16.gmra.mxu2 %vm981_vm9, %v3375_v26  ;;  %v1893_v26 = vsel %vm2994_vm8, %v1888_v63, %v1892_v33  ;;  %2207 = vst [vmem:[#allocation1 + $0x2] ss:$4 sm:$0xff] %v1902_v53  ;;  %v1838_v46 = vsel %vm2994_vm8, %v1834_v12, %v3527_v61  ;;  %v1913_v14 = vshrl.u32 %v1691_v19, 16  ;;  %v1916_v36 = vshll.u32 %v1691_v19, 16  ;;  %v2766_v33 = vld [vmem:[%s2911_s16 + $0x34] sm:$0x7] }
  0xdf   : > { %v1907_v23 = vrot.slane %v1906_v10, 2  ;;  %2205 = vst [vmem:[#allocation1 + $0x1] ss:$4 sm:$0xff] %v1893_v26  ;;  %v1931_v61 = vshll.u32 %v1697_v41, 16  ;;  %v1704_v9 = vsel %vm248_vm2, %v2765_v48, %v1627_v4  ;;  %v1935_v17 = vshrl.u32 %v1697_v41, 16 }
  0xe0   : > { %v1861_v0 = vsel %vm2994_vm8, %v1856_v40, %v1860_v11  ;;  %v1628_v49 = vrot.slane %v2766_v33, 2  ;;  %v1700_v21 = vrot.slane %v1698_v60, 2  ;;  %v1915_v31 = vrot.slane %v1913_v14, 6  ;;  %v2767_v48 = vld [vmem:[%s2911_s16 + $0x38] sm:$0xf] }
  0xe1   : > { %v1912_v50 = vsel %vm2994_vm8, %v1907_v23, %v1911_v27  ;;  %v1918_v45 = vrot.slane %v1916_v36, 7  ;;  %v1922_v39 = vshll.u32 %v1694_v35, 16  ;;  %v1926_v25 = vshrl.u32 %v1694_v35, 16 }
  0xe2   : > { %2702 = vmatmul.msk.bf16.gmra.mxu1 %vm981_vm9, %v3435_v29  ;;  %v1865_v29 = vor.u32 %v1864_v62, %v1860_v11  ;;  %2209 = vst [vmem:[#allocation1 + $0x3] ss:$4 sm:$0xff] %v1912_v50  ;;  %v1945_v28 = vshrl.u32 %v1703_v2, 16  ;;  %v1706_v47 = vrot.slane %v1704_v9, 2  ;;  %v1710_v10 = vsel %vm248_vm2, %v2766_v33, %v1628_v49  ;;  %v2768_v9 = vld [vmem:[%s2911_s16 + $0x3c] sm:$0x7] }
  0xe3   : > { %v3556_v55 = vld.sshfl [vmem:[#allocation1 + $0x20] sm:$0xff pattern:$0x73625140]  ;;  %v1933_v1 = vrot.slane %v1931_v61, 7  ;;  %v1937_v16 = vrot.slane %v1935_v17, 6  ;;  %v1709_v63 = vsel %vm244_vm3, %v2766_v33, %v1628_v49  ;;  %v1941_v12 = vshll.u32 %v1700_v21, 16 }
  0xe4   : > { %1442 = vst [vmem:[#allocation1 + $0x20] ss:$4 sm:$0xff] %v1361_v15  ;;  %v1866_v8 = vrot.slane %v1865_v29, 2  ;;  %v1919_v15 = vor.u32 %v1918_v45, %v1915_v31  ;;  %v1712_v26 = vrot.slane %v1710_v10, 2  ;;  %v1947_v27 = vrot.slane %v1945_v28, 6 }
  0xe5   : > { %1443 = vst [vmem:[#allocation1 + $0x21] ss:$4 sm:$0xff] %v1364_v52  ;;  %v1924_v52 = vrot.slane %v1922_v39, 7  ;;  %v1948_v57 = vshll.u32 %v1703_v2, 16  ;;  %v1938_v11 = vor.u32 %v1937_v16, %v1933_v1  ;;  %v1958_v62 = vshrl.u32 %v1706_v47, 16  ;;  %2680 = vmatmul.msk.bf16.gmra.mxu0 %vm981_vm9, %v3182_v3 }
  0xe6   : > { %1444 = vst [vmem:[#allocation1 + $0x22] ss:$4 sm:$0xff] %v1367_v38  ;;  %v1870_v5 = vsel %vm2994_vm8, %v1866_v8, %v3502_v43  ;;  %v1963_v53 = vshll.u32 %v1709_v63, 16  ;;  %v1920_v38 = vrot.slane %v1919_v15, 2  ;;  %v1967_v7 = vshrl.u32 %v1709_v63, 16 }
  0xe7   : > { %1446 = vst [vmem:[#allocation1 + $0x23] ss:$4 sm:$0xff] %v1370_v42  ;;  %v1928_v42 = vrot.slane %v1926_v25, 6  ;;  %v1950_v56 = vrot.slane %v1948_v57, 7  ;;  %v1960_v50 = vrot.slane %v1958_v62, 6  ;;  %v1973_v30 = vshll.u32 %v1712_v26, 16 }
  0xe8   : > { %v1965_v6 = vrot.slane %v1963_v53, 7  ;;  %v1969_v24 = vrot.slane %v1967_v7, 6  ;;  %v1939_v4 = vrot.slane %v1938_v11, 2  ;;  %v1629_v40 = vrot.slane %v2767_v48, 2 }
  0xe9   : > { %v1929_v23 = vor.u32 %v1928_v42, %v1924_v52  ;;  %v1951_v29 = vor.u32 %v1950_v56, %v1947_v27  ;;  %v1925_v41 = vsel %vm2994_vm8, %v1920_v38, %v1924_v52  ;;  %v1975_v36 = vrot.slane %v1973_v30, 7  ;;  %v2218_v31 = vld.sshfl [vmem:[#allocation1] sm:$0xff pattern:$0x73625140] }
  0xea   : > { %v1970_v37 = vor.u32 %v1969_v24, %v1965_v6  ;;  %v1716_v35 = vsel %vm248_vm2, %v2767_v48, %v1629_v40  ;;  %v1715_v61 = vsel %vm244_vm3, %v2767_v48, %v1629_v40  ;;  %v1630_v49 = vrot.slane %v2768_v9, 2  ;;  %v2769_v27 = vld [vmem:[%s2911_s16 + $0x40] sm:$0xf] }
  0xeb   : > { %v1930_v43 = vrot.slane %v1929_v23, 2  ;;  %v1952_v19 = vrot.slane %v1951_v29, 2  ;;  %v1718_v8 = vrot.slane %v1716_v35, 2  ;;  %v1977_v17 = vshrl.u32 %v1715_v61, 16 }
  0xec   : > { %v1971_v14 = vrot.slane %v1970_v37, 2  ;;  %v1980_v21 = vshll.u32 %v1715_v61, 16  ;;  %v1631_v57 = vrot.slane %v2769_v27, 2 }
  0xed   : > { %v1986_v3 = vshll.u32 %v1718_v8, 16  ;;  %v1979_v39 = vrot.slane %v1977_v17, 6  ;;  %v1990_v25 = vshrl.u32 %v1718_v8, 16 }
  0xee   : > { %v3580_v44 = vld.sshfl [vmem:[#allocation1 + $0x20] sm:$0xff pattern:$0x73625140]  ;;  %2749 = vmatmul.msk.bf16.gmra.mxu2 %vm981_vm9, %v3525_v51  ;;  %v1954_v51 = vshll.u32 %v1706_v47, 16  ;;  %v1976_v28 = vsel %vm2994_vm8, %v1971_v14, %v1975_v36  ;;  %v1721_v47 = vsel %vm244_vm3, %v2768_v9, %v1630_v49  ;;  %v1982_v10 = vrot.slane %v1980_v21, 7 }
  0xef   : > { %2190 = vst [vmem:[#allocation1 + $0x20] ss:$4 sm:$0xff] %v1838_v46  ;;  %v1943_v46 = vrot.slane %v1941_v12, 7  ;;  %v1992_v16 = vrot.slane %v1990_v25, 6  ;;  %v1995_v63 = vshll.u32 %v1721_v47, 16  ;;  %v1727_v53 = vsel %vm244_vm3, %v2769_v27, %v1631_v57 }
  0xf0   : > { %2193 = vst [vmem:[#allocation1 + $0x21] ss:$4 sm:$0xff] %v1848_v22  ;;  %v1956_v18 = vrot.slane %v1954_v51, 7  ;;  %v1983_v15 = vor.u32 %v1982_v10, %v1979_v39  ;;  %v1728_v51 = vsel %vm248_vm2, %v2769_v27, %v1631_v57  ;;  %v1999_v56 = vshrl.u32 %v1721_v47, 16  ;;  %v2772_v25 = vld [vmem:[%s2911_s16 + $0x4c] sm:$0x7] }
  0xf1   : > { %2196 = vst [vmem:[#allocation1 + $0x22] ss:$4 sm:$0xff] %v1861_v0  ;;  %v1944_v60 = vsel %vm2994_vm8, %v1939_v4, %v1943_v46  ;;  %v1997_v42 = vrot.slane %v1995_v63, 7  ;;  %v1730_v62 = vrot.slane %v1728_v51, 2  ;;  %v2009_v7 = vshrl.u32 %v1727_v53, 16 }
  0xf2   : > { %2199 = vst [vmem:[#allocation1 + $0x23] ss:$4 sm:$0xff] %v1870_v5  ;;  %2703 = vmatmul.msk.bf16.gmra.mxu1 %vm981_vm9, %v3306_v59  ;;  %v1961_v22 = vor.u32 %v1960_v50, %v1956_v18  ;;  %v1934_v59 = vsel %vm2994_vm8, %v1930_v43, %v1933_v1  ;;  %v1957_v0 = vsel %vm2994_vm8, %v1952_v19, %v1956_v18  ;;  %v1988_v1 = vrot.slane %v1986_v3, 7 }
  0xf3   : > { %2223 = vst [vmem:[#allocation1 + $0x1] ss:$4 sm:$0xff] %v1976_v28  ;;  %v1984_v5 = vrot.slane %v1983_v15, 2  ;;  %v2012_v43 = vshll.u32 %v1727_v53, 16  ;;  %v1722_v18 = vsel %vm248_vm2, %v2768_v9, %v1630_v49  ;;  %v2001_v30 = vrot.slane %v1999_v56, 6 }
  0xf4   : > { %v1962_v2 = vrot.slane %v1961_v22, 2  ;;  %v1993_v52 = vor.u32 %v1992_v16, %v1988_v1  ;;  %v1724_v29 = vrot.slane %v1722_v18, 2  ;;  %v2011_v4 = vrot.slane %v2009_v7, 6  ;;  %v2773_v28 = vld [vmem:[%s2911_s16 + $0x50] sm:$0xf] }
  0xf5   : > { %v1989_v26 = vsel %vm2994_vm8, %v1984_v5, %v1988_v1  ;;  %v2014_v46 = vrot.slane %v2012_v43, 7  ;;  %v2002_v19 = vor.u32 %v2001_v30, %v1997_v42  ;;  %v1634_v47 = vrot.slane %v2772_v25, 2 }
  0xf6   : > { %v1966_v45 = vsel %vm2994_vm8, %v1962_v2, %v1965_v6  ;;  %v1994_v12 = vrot.slane %v1993_v52, 2  ;;  %2225 = vst [vmem:[#allocation1 + $0x2] ss:$4 sm:$0xff] %v1989_v26  ;;  %v2022_v6 = vshrl.u32 %v1730_v62, 16  ;;  %v2005_v37 = vshll.u32 %v1724_v29, 16 }
  0xf7   : > { %2221 = vst [vmem:[#allocation1] ss:$4 sm:$0xff] %v1966_v45  ;;  %v2015_v2 = vor.u32 %v2014_v46, %v2011_v4  ;;  %v2003_v36 = vrot.slane %v2002_v19, 2  ;;  %v1635_v10 = vrot.slane %v2773_v28, 2  ;;  %v1746_v26 = vsel %vm248_vm2, %v2772_v25, %v1634_v47 }
  0xf8   : > { %v1998_v23 = vsel %vm2994_vm8, %v1994_v12, %v1997_v42  ;;  %v2024_v40 = vrot.slane %v2022_v6, 6  ;;  %v2007_v61 = vrot.slane %v2005_v37, 7 }
  0xf9   : > { %v2201_v33 = vld.sshfl [vmem:[#allocation1 + $0x20] sm:$0xff pattern:$0x73625140]  ;;  %2227 = vst [vmem:[#allocation1 + $0x3] ss:$4 sm:$0xff] %v1998_v23  ;;  %v1751_v15 = vsel %vm244_vm3, %v2773_v28, %v1635_v10  ;;  %v1752_v23 = vsel %vm248_vm2, %v2773_v28, %v1635_v10 }
  0xfa   : > { %2796 = vmatmul.msk.bf16.gmra.mxu3 %vm981_vm9, %v2201_v33  ;;  %2211 = vst [vmem:[#allocation1 + $0x20] ss:$4 sm:$0xff] %v1925_v41  ;;  %v2016_v33 = vrot.slane %v2015_v2, 2  ;;  %v2008_v17 = vsel %vm2994_vm8, %v2003_v36, %v2007_v61  ;;  %v2073_v18 = vshrl.u32 %v1751_v15, 16 }
  0xfb   : > { %2213 = vst [vmem:[#allocation1 + $0x21] ss:$4 sm:$0xff] %v1934_v59 }
  0xfc   : > { %2215 = vst [vmem:[#allocation1 + $0x22] ss:$4 sm:$0xff] %v1944_v60  ;;  %v2075_v4 = vrot.slane %v2073_v18, 6 }
  0xfd   : > { %2217 = vst [vmem:[#allocation1 + $0x23] ss:$4 sm:$0xff] %v1957_v0 }
  0xfe   : > { %2750 = vmatmul.msk.bf16.gmra.mxu2 %vm981_vm9, %v3397_v54  ;;  %v2770_v54 = vld [vmem:[%s2911_s16 + $0x44] sm:$0x7] }
  0xff   : > { %v1632_v11 = vrot.slane %v2770_v54, 2 }
 0x100   : > { %v2236_v19 = vld.sshfl [vmem:[#allocation1] sm:$0xff pattern:$0x73625140] }
 0x101   : > { %v1733_v38 = vsel %vm244_vm3, %v2770_v54, %v1632_v11  ;;  %v1734_v50 = vsel %vm248_vm2, %v2770_v54, %v1632_v11  ;;  %v1748_v54 = vrot.slane %v1746_v26, 2  ;;  %v1754_v11 = vrot.slane %v1752_v23, 2 }
 0x102   : > { %2704 = vmatmul.msk.bf16.gmra.mxu1 %vm981_vm9, %v3464_v34  ;;  %v2018_v34 = vshll.u32 %v1730_v62, 16  ;;  %v2027_v48 = vshll.u32 %v1733_v38, 16  ;;  %v1736_v24 = vrot.slane %v1734_v50, 2  ;;  %v2031_v59 = vshrl.u32 %v1733_v38, 16 }
 0x103   : > { %v2076_v50 = vshll.u32 %v1751_v15, 16  ;;  %v2082_v29 = vshll.u32 %v1754_v11, 16 }
 0x104   : > { %v2020_v22 = vrot.slane %v2018_v34, 7  ;;  %v2029_v41 = vrot.slane %v2027_v48, 7  ;;  %v2037_v14 = vshll.u32 %v1736_v24, 16  ;;  %v2033_v8 = vrot.slane %v2031_v59, 6 }
 0x105   : > { %v2219_v9 = vld.sshfl [vmem:[#allocation1 + $0x20] sm:$0xff pattern:$0x73625140]  ;;  %v2069_v34 = vshll.u32 %v1748_v54, 16  ;;  %v2078_v46 = vrot.slane %v2076_v50, 7  ;;  %v2084_v59 = vrot.slane %v2082_v29, 7 }
 0x106   : > { %v2025_v35 = vor.u32 %v2024_v40, %v2020_v22  ;;  %v2034_v0 = vor.u32 %v2033_v8, %v2029_v41  ;;  %v2039_v49 = vrot.slane %v2037_v14, 7  ;;  %2229 = vst [vmem:[#allocation1 + $0x20] ss:$4 sm:$0xff] %v2008_v17  ;;  %v2775_v14 = vld [vmem:[%s2911_s16 + $0x58] sm:$0xf] }
 0x107   : > { %v2071_v30 = vrot.slane %v2069_v34, 7  ;;  %v1637_v36 = vrot.slane %v2775_v14, 2  ;;  %v2774_v8 = vld [vmem:[%s2911_s16 + $0x54] sm:$0x7] }
 0x108   : > { %v2026_v60 = vrot.slane %v2025_v35, 2  ;;  %v2035_v3 = vrot.slane %v2034_v0, 2 }
 0x109   : > { %v1763_v0 = vsel %vm244_vm3, %v2775_v14, %v1637_v36 }
 0x10a   : > { %2797 = vmatmul.msk.bf16.gmra.mxu3 %vm981_vm9, %v2218_v31  ;;  %v2030_v21 = vsel %vm2994_vm8, %v2026_v60, %v2029_v41  ;;  %v2771_v31 = vld [vmem:[%s2911_s16 + $0x48] sm:$0xf]  ;;  %v2040_v39 = vsel %vm2994_vm8, %v2035_v3, %v2039_v49  ;;  %v2079_v41 = vor.u32 %v2078_v46, %v2075_v4  ;;  %v1764_v60 = vsel %vm248_vm2, %v2775_v14, %v1637_v36  ;;  %v2776_v49 = vld [vmem:[%s2911_s16 + $0x5c] sm:$0x7] }
 0x10b   : > { %2233 = vst [vmem:[#allocation1 + $0x22] ss:$4 sm:$0xff] %v2030_v21  ;;  %v1633_v45 = vrot.slane %v2771_v31, 2 }
 0x10c   : > { %2235 = vst [vmem:[#allocation1 + $0x23] ss:$4 sm:$0xff] %v2040_v39  ;;  %v2080_v35 = vrot.slane %v2079_v41, 2 }
 0x10d   : > { %v1740_v1 = vsel %vm248_vm2, %v2771_v31, %v1633_v45  ;;  %v1739_v63 = vsel %vm244_vm3, %v2771_v31, %v1633_v45  ;;  %v2105_v31 = vshrl.u32 %v1763_v0, 16  ;;  %v1638_v45 = vrot.slane %v2776_v49, 2 }
 0x10e   : > { %2751 = vmatmul.msk.bf16.gmra.mxu2 %vm981_vm9, %v3556_v55  ;;  %v2021_v55 = vsel %vm2994_vm8, %v2016_v33, %v2020_v22  ;;  %v1742_v16 = vrot.slane %v1740_v1, 2  ;;  %v2041_v52 = vshrl.u32 %v1739_v63, 16  ;;  %v2044_v42 = vshll.u32 %v1739_v63, 16 }
 0x10f   : > { %2231 = vst [vmem:[#allocation1 + $0x21] ss:$4 sm:$0xff] %v2021_v55  ;;  %v2085_v61 = vsel %vm2994_vm8, %v2080_v35, %v2084_v59  ;;  %v1636_v33 = vrot.slane %v2774_v8, 2  ;;  %v2086_v55 = vshrl.u32 %v1754_v11, 16  ;;  %v1769_v63 = vsel %vm244_vm3, %v2776_v49, %v1638_v45 }
 0x110   : > { %v2050_v5 = vshll.u32 %v1742_v16, 16  ;;  %v2054_v12 = vshrl.u32 %v1742_v16, 16  ;;  %v2043_v51 = vrot.slane %v2041_v52, 6  ;;  %v2046_v62 = vrot.slane %v2044_v42, 7  ;;  %2245 = vst [vmem:[#allocation1 + $0x3] ss:$4 sm:$0xff] %v2085_v61 }
 0x111   : > { %v1757_v17 = vsel %vm244_vm3, %v2774_v8, %v1636_v33  ;;  %v1758_v39 = vsel %vm248_vm2, %v2774_v8, %v1636_v33  ;;  %v2088_v10 = vrot.slane %v2086_v55, 6  ;;  %v2107_v15 = vrot.slane %v2105_v31, 6 }
 0x112   : > { %2705 = vmatmul.msk.bf16.gmra.mxu1 %vm981_vm9, %v3323_v58  ;;  %v1745_v58 = vsel %vm244_vm3, %v2772_v25, %v1634_v47  ;;  %v2052_v53 = vrot.slane %v2050_v5, 7  ;;  %v2056_v38 = vrot.slane %v2054_v12, 6  ;;  %v2047_v43 = vor.u32 %v2046_v62, %v2043_v51 }
 0x113   : > { %v2059_v27 = vshll.u32 %v1745_v58, 16  ;;  %v2063_v57 = vshrl.u32 %v1745_v58, 16  ;;  %v2091_v21 = vshll.u32 %v1757_v17, 16  ;;  %v2095_v3 = vshrl.u32 %v1757_v17, 16 }
 0x114   : > { %v2057_v6 = vor.u32 %v2056_v38, %v2052_v53  ;;  %v2048_v24 = vrot.slane %v2047_v43, 2  ;;  %v2108_v25 = vshll.u32 %v1763_v0, 16  ;;  %v1760_v47 = vrot.slane %v1758_v39, 2 }
 0x115   : > { %v2061_v56 = vrot.slane %v2059_v27, 7  ;;  %v2065_v7 = vrot.slane %v2063_v57, 6  ;;  %v2093_v1 = vrot.slane %v2091_v21, 7  ;;  %v2097_v16 = vrot.slane %v2095_v3, 6 }
 0x116   : > { %v2058_v22 = vrot.slane %v2057_v6, 2  ;;  %v2053_v37 = vsel %vm2994_vm8, %v2048_v24, %v2052_v53  ;;  %v1770_v58 = vsel %vm248_vm2, %v2776_v49, %v1638_v45  ;;  %v2110_v52 = vrot.slane %v2108_v25, 7  ;;  %v2237_v43 = vld.sshfl [vmem:[#allocation1 + $0x20] sm:$0xff pattern:$0x73625140] }
 0x117   : > { %v2066_v48 = vor.u32 %v2065_v7, %v2061_v56  ;;  %2239 = vst [vmem:[#allocation1] ss:$4 sm:$0xff] %v2053_v37  ;;  %v1772_v42 = vrot.slane %v1770_v58, 2  ;;  %v2089_v5 = vor.u32 %v2088_v10, %v2084_v59  ;;  %v2098_v12 = vor.u32 %v2097_v16, %v2093_v1  ;;  %v1009_v58 = vpop.f32.mrf.mxu0 }
 0x118   : > { %v2101_v26 = vshll.u32 %v1760_v47, 16  ;;  %v2111_v23 = vor.u32 %v2110_v52, %v2107_v15  ;;  %v2123_v54 = vshll.u32 %v1769_v63, 16  ;;  %v2127_v53 = vshrl.u32 %v1769_v63, 16  ;;  %v1157_v52 = vpop.f32.mrf.mxu1 }
 0x119   : > { %v2067_v40 = vrot.slane %v2066_v48, 2  ;;  %v2090_v11 = vrot.slane %v2089_v5, 2  ;;  %v2099_v51 = vrot.slane %v2098_v12, 2  ;;  %v2133_v7 = vshll.u32 %v1772_v42, 16 }
 0x11a   : > { %2798 = vmatmul.msk.bf16.gmra.mxu3 %vm981_vm9, %v2219_v9  ;;  %v1766_v9 = vrot.slane %v1764_v60, 2  ;;  %v2103_v62 = vrot.slane %v2101_v26, 7  ;;  %v2112_v38 = vrot.slane %v2111_v23, 2  ;;  %v2125_v18 = vrot.slane %v2123_v54, 7 }
 0x11b   : > { %v2072_v2 = vsel %vm2994_vm8, %v2067_v40, %v2071_v30  ;;  %v2094_v34 = vsel %vm2994_vm8, %v2090_v11, %v2093_v1  ;;  %v2129_v50 = vrot.slane %v2127_v53, 6  ;;  %v2135_v24 = vrot.slane %v2133_v7, 7  ;;  %v2777_v30 = vld [vmem:[%s2911_s16 + $0x60] sm:$0xf]  ;;  %v2778_v40 = vld [vmem:[%s2911_s16 + $0x64] sm:$0x7] }
 0x11c   : > { %2243 = vst [vmem:[#allocation1 + $0x2] ss:$4 sm:$0xff] %v2072_v2  ;;  %v2114_v28 = vshll.u32 %v1766_v9, 16  ;;  %v2118_v57 = vshrl.u32 %v1766_v9, 16  ;;  %v1639_v46 = vrot.slane %v2777_v30, 2  ;;  %v1640_v37 = vrot.slane %v2778_v40, 2 }
 0x11d   : > { %2247 = vst [vmem:[#allocation1 + $0x20] ss:$4 sm:$0xff] %v2094_v34  ;;  %v2130_v29 = vor.u32 %v2129_v50, %v2125_v18 }
 0x11e   : > { %2752 = vmatmul.msk.bf16.gmra.mxu2 %vm981_vm9, %v3424_v20  ;;  %v2062_v20 = vsel %vm2994_vm8, %v2058_v22, %v2061_v56  ;;  %v2116_v27 = vrot.slane %v2114_v28, 7  ;;  %v2120_v56 = vrot.slane %v2118_v57, 6  ;;  %v1776_v41 = vsel %vm248_vm2, %v2777_v30, %v1639_v46 }
 0x11f   : > { %2241 = vst [vmem:[#allocation1 + $0x1] ss:$4 sm:$0xff] %v2062_v20  ;;  %v2131_v22 = vrot.slane %v2130_v29, 2  ;;  %v1778_v2 = vrot.slane %v1776_v41, 2  ;;  %v1775_v35 = vsel %vm244_vm3, %v2777_v30, %v1639_v46  ;;  %v1781_v14 = vsel %vm244_vm3, %v2778_v40, %v1640_v37  ;;  %v1011_v23 = vpop.f32.mrf.mxu0 }
 0x120   : > { %v2117_v6 = vsel %vm2994_vm8, %v2112_v38, %v2116_v27  ;;  %v2121_v48 = vor.u32 %v2120_v56, %v2116_v27  ;;  %v2137_v36 = vshrl.u32 %v1775_v35, 16  ;;  %v2140_v61 = vshll.u32 %v1775_v35, 16  ;;  %v3699_v27 = vld [vmem:[%s3780_s2] ss:$0 sm:$0xff]  ;;  %v1159_v57 = vpop.f32.mrf.mxu1 }
 0x121   : > { %2251 = vst [vmem:[#allocation1 + $0x22] ss:$4 sm:$0xff] %v2117_v6  ;;  %v2136_v20 = vsel %vm2994_vm8, %v2131_v22, %v2135_v24  ;;  %v2146_v8 = vshll.u32 %v1778_v2, 16  ;;  %v2150_v33 = vshrl.u32 %v1778_v2, 16  ;;  %v1782_v60 = vsel %vm248_vm2, %v2778_v40, %v1640_v37  ;;  %v1506_v12 = vpop.f32.mrf.mxu2 }
 0x122   : > { %v2122_v4 = vrot.slane %v2121_v48, 2  ;;  %v2155_v9 = vshll.u32 %v1781_v14, 16  ;;  %v2159_v17 = vshrl.u32 %v1781_v14, 16  ;;  %v1784_v0 = vrot.slane %v1782_v60, 2 }
 0x123   : > { %v2139_v49 = vrot.slane %v2137_v36, 6  ;;  %v2142_v55 = vrot.slane %v2140_v61, 7  ;;  %v2148_v21 = vrot.slane %v2146_v8, 7  ;;  %v2152_v3 = vrot.slane %v2150_v33, 6 }
 0x124   : > { %v2157_v31 = vrot.slane %v2155_v9, 7  ;;  %v2161_v45 = vrot.slane %v2159_v17, 6  ;;  %v2165_v25 = vshll.u32 %v1784_v0, 16 }
 0x125   : > { %v2143_v39 = vor.u32 %v2142_v55, %v2139_v49  ;;  %v2153_v28 = vor.u32 %v2152_v3, %v2148_v21 }
 0x126   : > { %v2254_v59 = vld.sshfl [vmem:[#allocation1] sm:$0xff pattern:$0x73625140]  ;;  %v2162_v47 = vor.u32 %v2161_v45, %v2157_v31  ;;  %v2167_v1 = vrot.slane %v2165_v25, 7 }
 0x127   : > { %2257 = vst [vmem:[#allocation1] ss:$4 sm:$0xff] %v2136_v20  ;;  %v2144_v10 = vrot.slane %v2143_v39, 2  ;;  %v2154_v16 = vrot.slane %v2153_v28, 2 }
 0x128   : > { %v2163_v63 = vrot.slane %v2162_v47, 2  ;;  %v1162_v50 = vpop.f32.mrf.mxu1 }
 0x129   : > { %v2149_v15 = vsel %vm2994_vm8, %v2144_v10, %v2148_v21  ;;  %v2158_v42 = vsel %vm2994_vm8, %v2154_v16, %v2157_v31 }
 0x12a   : > { %2799 = vmatmul.msk.bf16.gmra.mxu3 %vm981_vm9, %v2236_v19  ;;  %v2126_v19 = vsel %vm2994_vm8, %v2122_v4, %v2125_v18  ;;  %v2168_v5 = vsel %vm2994_vm8, %v2163_v63, %v2167_v1  ;;  %2259 = vst [vmem:[#allocation1 + $0x1] ss:$4 sm:$0xff] %v2149_v15 }
 0x12b   : > { %2253 = vst [vmem:[#allocation1 + $0x23] ss:$4 sm:$0xff] %v2126_v19 }
 0x12c   : > { %2261 = vst [vmem:[#allocation1 + $0x2] ss:$4 sm:$0xff] %v2158_v42 }
 0x12d   : > { %2263 = vst [vmem:[#allocation1 + $0x3] ss:$4 sm:$0xff] %v2168_v5 }
 0x12e   : > { %2753 = vmatmul.msk.bf16.gmra.mxu2 %vm981_vm9, %v3580_v44  ;;  %v2104_v44 = vsel %vm2994_vm8, %v2099_v51, %v2103_v62  ;;  %v1160_v51 = vadd.f32 %v1159_v57, %v1011_v23  ;;  %v1508_v62 = vpop.f32.mrf.mxu2 }
 0x12f   : > { %2249 = vst [vmem:[#allocation1 + $0x21] ss:$4 sm:$0xff] %v2104_v44  ;;  %v1014_v44 = vpop.f32.mrf.mxu0 }
 0x130   : > { %v1552_v56 = vadd.f32 %v1508_v62, %v1160_v51  ;;  %v1164_v22 = vpop.f32.mrf.mxu1  ;;  %v1163_v14 = vadd.f32 %v1162_v50, %v1014_v44 }
 0x134   : > { %v2264_v38 = vld.sshfl [vmem:[#allocation1] sm:$0xff pattern:$0x73625140] }
 0x136   : > { %v2255_v18 = vld.sshfl [vmem:[#allocation1 + $0x20] sm:$0xff pattern:$0x73625140] }
 0x137   : > { %v1016_v46 = vpop.f32.mrf.mxu0 }
 0x138   : > { %v1165_v17 = vadd.f32 %v1164_v22, %v1016_v46 }
 0x13a   : > { %2800 = vmatmul.msk.bf16.gmra.mxu3 %vm981_vm9, %v2237_v43 }
 0x13e   : > { %2754 = vmatmul.msk.bf16.gmra.mxu2 %vm981_vm9, %v3453_v32  ;;  %v1158_v32 = vadd.f32 %v1157_v52, %v1009_v58 }
 0x13f   : > { %v1019_v41 = vpop.f32.mrf.mxu0 }
 0x140   : > { %v1551_v26 = vadd.f32 %v1506_v12, %v1158_v32 }
 0x147   : > { %v1021_v2 = vpop.f32.mrf.mxu0 }
 0x14a   : > { %2801 = vmatmul.msk.bf16.gmra.mxu3 %vm981_vm9, %v2254_v59  ;;  %v1167_v59 = vpop.f32.mrf.mxu1 }
 0x14b   : > { %v1168_v45 = vadd.f32 %v1167_v59, %v1019_v41 }
 0x14f   : > { %v1024_v60 = vpop.f32.mrf.mxu0 }
 0x151   : > { %v1511_v29 = vpop.f32.mrf.mxu2 }
 0x152   : > { %v1169_v35 = vpop.f32.mrf.mxu1  ;;  %v1553_v61 = vadd.f32 %v1511_v29, %v1163_v14 }
 0x153   : > { %v1170_v12 = vadd.f32 %v1169_v35, %v1021_v2 }
 0x157   : > { %v1026_v28 = vpop.f32.mrf.mxu0 }
 0x158   : > { %v2316_v54 = vpop.f32.mrf.mxu3 }
 0x159   : > { %v2361_v11 = vadd.f32 %v2316_v54, %v1551_v26  ;;  %v1513_v37 = vpop.f32.mrf.mxu2 }
 0x15a   : > { %2802 = vmatmul.msk.bf16.gmra.mxu3 %vm981_vm9, %v2255_v18  ;;  %v1172_v9 = vpop.f32.mrf.mxu1  ;;  %v1554_v21 = vadd.f32 %v1513_v37, %v1165_v17 }
 0x15b   : > { %v2383_v13 = vadd.f32 %v3699_v27, %v2361_v11 }
 0x15d   : > { %v2401_v53 = vmax.f32 %v2383_v13, 0.0 }
 0x15f   : > { %v2437_v7 = vrot.slane %v2401_v53, 4  ;;  %2455 = vst [vmem:[#allocation1] ss:$2 sm:$0xff] %v2401_v53  ;;  %v1029_v57 = vpop.f32.mrf.mxu0 }
 0x160   : > { %v2318_v43 = vpop.f32.mrf.mxu3 }
 0x161   : > { %2457 = vst [vmem:[#allocation1 + $0x1] ss:$2 sm:$0xff] %v2437_v7  ;;  %v2362_v34 = vadd.f32 %v2318_v43, %v1552_v56  ;;  %v1516_v20 = vpop.f32.mrf.mxu2 }
 0x162   : > { %v1174_v47 = vpop.f32.mrf.mxu1  ;;  %v1555_v10 = vadd.f32 %v1516_v20, %v1168_v45 }
 0x163   : > { %v2384_v6 = vadd.f32 %v3699_v27, %v2362_v34 }
 0x165   : > { %v2402_v48 = vmax.f32 %v2384_v6, 0.0 }
 0x167   : > { %v2438_v24 = vrot.slane %v2402_v48, 4  ;;  %2459 = vst [vmem:[#allocation1 + $0x10] ss:$2 sm:$0xff] %v2402_v48  ;;  %v1031_v48 = vpop.f32.mrf.mxu0 }
 0x168   : > { %v2460_v30 = vld.sshfl [vmem:[#allocation1] sm:$0xff pattern:$0x75316420] }
 0x169   : > { %2463 = vst [vmem:[#allocation1 + $0x20] ss:$2 sm:$0xff] %v2438_v24  ;;  %v2544_v4 = vpack.c.bf16 %v2460_v30, %v2460_v30  ;;  %v1518_v36 = vpop.f32.mrf.mxu2 }
 0x16a   : > { %2803 = vmatmul.msk.bf16.gmra.mxu3 %vm981_vm9, %v2264_v38  ;;  %v1177_v54 = vpop.f32.mrf.mxu1  ;;  %v1556_v11 = vadd.f32 %v1518_v36, %v1170_v12  ;;  %v1173_v38 = vadd.f32 %v1172_v9, %v1024_v60 }
 0x16b   : > { %2569 = vst.msk [vmem:[%s3708_s30] sm:$0xf] %vm2568_vm10, %v2544_v4  ;;  %v1175_v4 = vadd.f32 %v1174_v47, %v1026_v28  ;;  %v1178_v35 = vadd.f32 %v1177_v54, %v1029_v57 }
 0x16e   : > { %v2461_v40 = vld.sshfl [vmem:[#allocation1 + $0x10] sm:$0xff pattern:$0x75316420] }
 0x16f   : > { %v2545_v19 = vpack.c.bf16 %v2461_v40, %v2461_v40 }
 0x171   : > { %2571 = vst.msk [vmem:[%s3708_s30 + $0x4] sm:$0x3] %vm2570_vm11, %v2545_v19  ;;  %v1521_v55 = vpop.f32.mrf.mxu2 }
 0x172   : > { %v1557_v34 = vadd.f32 %v1521_v55, %v1173_v38  ;;  %v1179_v24 = vpop.f32.mrf.mxu1 }
 0x179   : > { %v1523_v42 = vpop.f32.mrf.mxu2 }
 0x17a   : > { %v1558_v41 = vadd.f32 %v1523_v42, %v1175_v4 }
 0x17d   : > { %v2321_v8 = vpop.f32.mrf.mxu3 }
 0x17e   : > { %v2363_v33 = vadd.f32 %v2321_v8, %v1553_v61  ;;  %v1034_v61 = vpop.f32.mrf.mxu0  ;;  %v1182_v8 = vpop.f32.mrf.mxu1 }
 0x180   : > { %v2385_v0 = vadd.f32 %v3699_v27, %v2363_v33 }
 0x181   : > { %v1526_v7 = vpop.f32.mrf.mxu2 }
 0x182   : > { %v2403_v49 = vmax.f32 %v2385_v0, 0.0  ;;  %v1559_v60 = vadd.f32 %v1526_v7, %v1178_v35 }
 0x184   : > { %v2439_v3 = vrot.slane %v2403_v49, 4  ;;  %2465 = vst [vmem:[#allocation1 + $0x21] ss:$2 sm:$0xff] %v2403_v49 }
 0x185   : > { %v2323_v31 = vpop.f32.mrf.mxu3 }
 0x186   : > { %2467 = vst [vmem:[#allocation1 + $0x30] ss:$2 sm:$0xff] %v2439_v3  ;;  %v2364_v39 = vadd.f32 %v2323_v31, %v1554_v21  ;;  %v1180_v31 = vadd.f32 %v1179_v24, %v1031_v48 }
 0x188   : > { %v2386_v25 = vadd.f32 %v3699_v27, %v2364_v39  ;;  %v1036_v39 = vpop.f32.mrf.mxu0 }
 0x189   : > { %v1528_v22 = vpop.f32.mrf.mxu2 }
 0x18a   : > { %v2404_v1 = vmax.f32 %v2386_v25, 0.0  ;;  %v1184_v25 = vpop.f32.mrf.mxu1 }
 0x18b   : > { %v2468_v16 = vld.sshfl [vmem:[#allocation1 + $0x20] sm:$0xff pattern:$0x75316420]  ;;  %v1185_v38 = vadd.f32 %v1184_v25, %v1036_v39 }
 0x18c   : > { %v2546_v63 = vpack.c.bf16 %v2468_v16, %v2468_v16  ;;  %v2440_v58 = vrot.slane %v2404_v1, 4  ;;  %2470 = vst [vmem:[#allocation1] ss:$2 sm:$0xff] %v2404_v1 }
 0x18d   : > { %v2326_v15 = vpop.f32.mrf.mxu3  ;;  %v2469_v52 = vld.sshfl [vmem:[#allocation1 + $0x30] sm:$0xff pattern:$0x75316420] }
 0x18e   : > { %2471 = vst [vmem:[#allocation1 + $0x1] ss:$2 sm:$0xff] %v2440_v58  ;;  %v2365_v5 = vadd.f32 %v2326_v15, %v1555_v10  ;;  %v2547_v32 = vpack.c.bf16 %v2469_v52, %v2469_v52  ;;  %v1560_v10 = vadd.f32 %v1528_v22, %v1180_v31  ;;  %v1183_v15 = vadd.f32 %v1182_v8, %v1034_v61 }
 0x18f   : > { %2572 = vst.msk [vmem:[%s3708_s30 + $0x8] sm:$0xf] %vm2568_vm10, %v2546_v63 }
 0x190   : > { %v2387_v26 = vadd.f32 %v3699_v27, %v2365_v5  ;;  %2573 = vst.msk [vmem:[%s3708_s30 + $0xc] sm:$0x3] %vm2570_vm11, %v2547_v32  ;;  %v1039_v12 = vpop.f32.mrf.mxu0 }
 0x191   : > { %v1531_v17 = vpop.f32.mrf.mxu2 }
 0x192   : > { %v2405_v23 = vmax.f32 %v2387_v26, 0.0  ;;  %v1561_v5 = vadd.f32 %v1531_v17, %v1183_v15 }
 0x194   : > { %v2441_v51 = vrot.slane %v2405_v23, 4  ;;  %2472 = vst [vmem:[#allocation1 + $0x10] ss:$2 sm:$0xff] %v2405_v23  ;;  %v1187_v23 = vpop.f32.mrf.mxu1 }
 0x195   : > { %v2473_v13 = vld.sshfl [vmem:[#allocation1] sm:$0xff pattern:$0x75316420]  ;;  %v2328_v62 = vpop.f32.mrf.mxu3  ;;  %v1188_v48 = vadd.f32 %v1187_v23, %v1039_v12 }
 0x196   : > { %v2548_v53 = vpack.c.bf16 %v2473_v13, %v2473_v13  ;;  %2475 = vst [vmem:[#allocation1 + $0x20] ss:$2 sm:$0xff] %v2441_v51  ;;  %v2366_v56 = vadd.f32 %v2328_v62, %v1556_v11 }
 0x198   : > { %2574 = vst.msk [vmem:[%s3708_s30 + $0x10] sm:$0xf] %vm2568_vm10, %v2548_v53  ;;  %v2388_v43 = vadd.f32 %v3699_v27, %v2366_v56 }
 0x199   : > { %v1533_v58 = vpop.f32.mrf.mxu2 }
 0x19a   : > { %v2406_v44 = vmax.f32 %v2388_v43, 0.0  ;;  %v1562_v43 = vadd.f32 %v1533_v58, %v1185_v38 }
 0x19b   : > { %v2474_v18 = vld.sshfl [vmem:[#allocation1 + $0x10] sm:$0xff pattern:$0x75316420] }
 0x19c   : > { %v2442_v50 = vrot.slane %v2406_v44, 4  ;;  %2476 = vst [vmem:[#allocation1 + $0x21] ss:$2 sm:$0xff] %v2406_v44  ;;  %v2549_v6 = vpack.c.bf16 %v2474_v18, %v2474_v18  ;;  %v1041_v44 = vpop.f32.mrf.mxu0 }
 0x19d   : > { %v2331_v29 = vpop.f32.mrf.mxu3 }
 0x19e   : > { %2477 = vst [vmem:[#allocation1 + $0x30] ss:$2 sm:$0xff] %v2442_v50  ;;  %v2367_v30 = vadd.f32 %v2331_v29, %v1557_v34  ;;  %v1189_v50 = vpop.f32.mrf.mxu1 }
 0x19f   : > { %2575 = vst.msk [vmem:[%s3708_s30 + $0x14] sm:$0x3] %vm2570_vm11, %v2549_v6  ;;  %v1190_v35 = vadd.f32 %v1189_v50, %v1041_v44 }
 0x1a0   : > { %v2389_v46 = vadd.f32 %v3699_v27, %v2367_v30 }
 0x1a1   : > { %v1536_v53 = vpop.f32.mrf.mxu2 }
 0x1a2   : > { %v2407_v40 = vmax.f32 %v2389_v46, 0.0  ;;  %v1563_v46 = vadd.f32 %v1536_v53, %v1188_v48 }
 0x1a3   : > { %v2478_v19 = vld.sshfl [vmem:[#allocation1 + $0x20] sm:$0xff pattern:$0x75316420] }
 0x1a4   : > { %v2550_v37 = vpack.c.bf16 %v2478_v19, %v2478_v19  ;;  %v2443_v59 = vrot.slane %v2407_v40, 4  ;;  %2480 = vst [vmem:[#allocation1] ss:$2 sm:$0xff] %v2407_v40 }
 0x1a5   : > { %v2333_v20 = vpop.f32.mrf.mxu3  ;;  %v2479_v2 = vld.sshfl [vmem:[#allocation1 + $0x30] sm:$0xff pattern:$0x75316420] }
 0x1a6   : > { %2576 = vst.msk [vmem:[%s3708_s30 + $0x18] sm:$0xf] %vm2568_vm10, %v2550_v37  ;;  %v2368_v14 = vadd.f32 %v2333_v20, %v1558_v41  ;;  %v2551_v36 = vpack.c.bf16 %v2479_v2, %v2479_v2  ;;  %v1044_v20 = vpop.f32.mrf.mxu0  ;;  %v1192_v2 = vpop.f32.mrf.mxu1 }
 0x1a7   : > { %2481 = vst [vmem:[#allocation1 + $0x1] ss:$2 sm:$0xff] %v2443_v59 }
 0x1a8   : > { %v2390_v33 = vadd.f32 %v3699_v27, %v2368_v14  ;;  %2577 = vst.msk [vmem:[%s3708_s30 + $0x1c] sm:$0x3] %vm2570_vm11, %v2551_v36 }
 0x1a9   : > { %v1538_v4 = vpop.f32.mrf.mxu2 }
 0x1aa   : > { %v2408_v9 = vmax.f32 %v2390_v33, 0.0 }
 0x1ac   : > { %v2444_v0 = vrot.slane %v2408_v9, 4  ;;  %2482 = vst [vmem:[#allocation1 + $0x10] ss:$2 sm:$0xff] %v2408_v9 }
 0x1ad   : > { %v2336_v49 = vpop.f32.mrf.mxu3 }
 0x1ae   : > { %v2483_v55 = vld.sshfl [vmem:[#allocation1] sm:$0xff pattern:$0x75316420]  ;;  %2485 = vst [vmem:[#allocation1 + $0x20] ss:$2 sm:$0xff] %v2444_v0  ;;  %v2369_v21 = vadd.f32 %v2336_v49, %v1559_v60  ;;  %v1564_v60 = vadd.f32 %v1538_v4, %v1190_v35  ;;  %v1193_v49 = vadd.f32 %v1192_v2, %v1044_v20  ;;  %v1046_v31 = vpop.f32.mrf.mxu0 }
 0x1af   : > { %v2552_v3 = vpack.c.bf16 %v2483_v55, %v2483_v55 }
 0x1b0   : > { %v2391_v45 = vadd.f32 %v3699_v27, %v2369_v21 }
 0x1b1   : > { %2578 = vst.msk [vmem:[%s3708_s30 + $0x20] sm:$0xf] %vm2568_vm10, %v2552_v3  ;;  %v1541_v8 = vpop.f32.mrf.mxu2 }
 0x1b2   : > { %v2409_v28 = vmax.f32 %v2391_v45, 0.0  ;;  %v1194_v45 = vpop.f32.mrf.mxu1  ;;  %v1565_v39 = vadd.f32 %v1541_v8, %v1193_v49 }
 0x1b3   : > { %v2484_v47 = vld.sshfl [vmem:[#allocation1 + $0x10] sm:$0xff pattern:$0x75316420]  ;;  %v1195_v58 = vadd.f32 %v1194_v45, %v1046_v31 }
 0x1b4   : > { %v2445_v1 = vrot.slane %v2409_v28, 4  ;;  %2486 = vst [vmem:[#allocation1 + $0x21] ss:$2 sm:$0xff] %v2409_v28  ;;  %v2553_v16 = vpack.c.bf16 %v2484_v47, %v2484_v47 }
 0x1b5   : > { %v2338_v63 = vpop.f32.mrf.mxu3 }
 0x1b6   : > { %2487 = vst [vmem:[#allocation1 + $0x30] ss:$2 sm:$0xff] %v2445_v1  ;;  %v2370_v52 = vadd.f32 %v2338_v63, %v1560_v10 }
 0x1b7   : > { %2579 = vst.msk [vmem:[%s3708_s30 + $0x24] sm:$0x3] %vm2570_vm11, %v2553_v16 }
 0x1b8   : > { %v2392_v42 = vadd.f32 %v3699_v27, %v2370_v52 }
 0x1b9   : > { %v1543_v47 = vpop.f32.mrf.mxu2 }
 0x1ba   : > { %v2410_v32 = vmax.f32 %v2392_v42, 0.0  ;;  %v1049_v42 = vpop.f32.mrf.mxu0  ;;  %v1566_v12 = vadd.f32 %v1543_v47, %v1195_v58 }
 0x1bb   : > { %v2488_v26 = vld.sshfl [vmem:[#allocation1 + $0x20] sm:$0xff pattern:$0x75316420] }
 0x1bc   : > { %v2554_v57 = vpack.c.bf16 %v2488_v26, %v2488_v26  ;;  %v2446_v54 = vrot.slane %v2410_v32, 4  ;;  %2490 = vst [vmem:[#allocation1] ss:$2 sm:$0xff] %v2410_v32 }
 0x1bd   : > { %v2341_v11 = vpop.f32.mrf.mxu3  ;;  %v2489_v51 = vld.sshfl [vmem:[#allocation1 + $0x30] sm:$0xff pattern:$0x75316420] }
 0x1be   : > { %2580 = vst.msk [vmem:[%s3708_s30 + $0x28] sm:$0xf] %vm2568_vm10, %v2554_v57  ;;  %v2371_v13 = vadd.f32 %v2341_v11, %v1561_v5  ;;  %v2555_v62 = vpack.c.bf16 %v2489_v51, %v2489_v51  ;;  %v1197_v5 = vpop.f32.mrf.mxu1 }
 0x1bf   : > { %2491 = vst [vmem:[#allocation1 + $0x1] ss:$2 sm:$0xff] %v2446_v54  ;;  %v1198_v54 = vadd.f32 %v1197_v5, %v1049_v42 }
 0x1c0   : > { %v2393_v56 = vadd.f32 %v3699_v27, %v2371_v13  ;;  %2581 = vst.msk [vmem:[%s3708_s30 + $0x2c] sm:$0x3] %vm2570_vm11, %v2555_v62 }
 0x1c1   : > { %v1546_v51 = vpop.f32.mrf.mxu2 }
 0x1c2   : > { %v2411_v7 = vmax.f32 %v2393_v56, 0.0  ;;  %v1567_v62 = vadd.f32 %v1546_v51, %v1198_v54 }
 0x1c4   : > { %v2447_v34 = vrot.slane %v2411_v7, 4  ;;  %2492 = vst [vmem:[#allocation1 + $0x10] ss:$2 sm:$0xff] %v2411_v7 }
 0x1c5   : > { %v2343_v18 = vpop.f32.mrf.mxu3 }
 0x1c6   : > { %v2493_v6 = vld.sshfl [vmem:[#allocation1] sm:$0xff pattern:$0x75316420]  ;;  %2495 = vst [vmem:[#allocation1 + $0x20] ss:$2 sm:$0xff] %v2447_v34  ;;  %v2372_v29 = vadd.f32 %v2343_v18, %v1562_v43  ;;  %v1051_v43 = vpop.f32.mrf.mxu0  ;;  %v1199_v34 = vpop.f32.mrf.mxu1 }
 0x1c7   : > { %v2556_v24 = vpack.c.bf16 %v2493_v6, %v2493_v6  ;;  %v1200_v48 = vadd.f32 %v1199_v34, %v1051_v43 }
 0x1c8   : > { %v2394_v30 = vadd.f32 %v3699_v27, %v2372_v29 }
 0x1c9   : > { %2582 = vst.msk [vmem:[%s3708_s30 + $0x30] sm:$0xf] %vm2568_vm10, %v2556_v24  ;;  %v1548_v24 = vpop.f32.mrf.mxu2 }
 0x1ca   : > { %v2412_v22 = vmax.f32 %v2394_v30, 0.0  ;;  %v1568_v4 = vadd.f32 %v1548_v24, %v1200_v48 }
 0x1cb   : > { %v2494_v40 = vld.sshfl [vmem:[#allocation1 + $0x10] sm:$0xff pattern:$0x75316420] }
 0x1cc   : > { %v2448_v19 = vrot.slane %v2412_v22, 4  ;;  %2496 = vst [vmem:[#allocation1 + $0x21] ss:$2 sm:$0xff] %v2412_v22  ;;  %v2557_v37 = vpack.c.bf16 %v2494_v40, %v2494_v40 }
 0x1cd   : > { %v2346_v41 = vpop.f32.mrf.mxu3 }
 0x1ce   : > { %2497 = vst [vmem:[#allocation1 + $0x30] ss:$2 sm:$0xff] %v2448_v19  ;;  %v2373_v59 = vadd.f32 %v2346_v41, %v1563_v46 }
 0x1cf   : > { %2583 = vst.msk [vmem:[%s3708_s30 + $0x34] sm:$0x3] %vm2570_vm11, %v2557_v37 }
 0x1d0   : > { %v2395_v14 = vadd.f32 %v3699_v27, %v2373_v59 }
 0x1d2   : > { %v2413_v36 = vmax.f32 %v2395_v14, 0.0 }
 0x1d3   : > { %v2498_v61 = vld.sshfl [vmem:[#allocation1 + $0x20] sm:$0xff pattern:$0x75316420] }
 0x1d4   : > { %v2558_v33 = vpack.c.bf16 %v2498_v61, %v2498_v61  ;;  %v2449_v9 = vrot.slane %v2413_v36, 4  ;;  %2500 = vst [vmem:[#allocation1] ss:$2 sm:$0xff] %v2413_v36 }
 0x1d5   : > { %v2348_v17 = vpop.f32.mrf.mxu3  ;;  %v2499_v0 = vld.sshfl [vmem:[#allocation1 + $0x30] sm:$0xff pattern:$0x75316420] }
 0x1d6   : > { %2584 = vst.msk [vmem:[%s3708_s30 + $0x38] sm:$0xf] %vm2568_vm10, %v2558_v33  ;;  %v2374_v55 = vadd.f32 %v2348_v17, %v1564_v60  ;;  %v2559_v21 = vpack.c.bf16 %v2499_v0, %v2499_v0 }
 0x1d7   : > { %2501 = vst [vmem:[#allocation1 + $0x1] ss:$2 sm:$0xff] %v2449_v9 }
 0x1d8   : > { %v2396_v3 = vadd.f32 %v3699_v27, %v2374_v55  ;;  %2585 = vst.msk [vmem:[%s3708_s30 + $0x3c] sm:$0x3] %vm2570_vm11, %v2559_v21 }
 0x1da   : > { %v2414_v25 = vmax.f32 %v2396_v3, 0.0 }
 0x1dc   : > { %v2450_v28 = vrot.slane %v2414_v25, 4  ;;  %2502 = vst [vmem:[#allocation1 + $0x10] ss:$2 sm:$0xff] %v2414_v25 }
 0x1dd   : > { %v2351_v10 = vpop.f32.mrf.mxu3 }
 0x1de   : > { %v2503_v1 = vld.sshfl [vmem:[#allocation1] sm:$0xff pattern:$0x75316420]  ;;  %2505 = vst [vmem:[#allocation1 + $0x20] ss:$2 sm:$0xff] %v2450_v28  ;;  %v2375_v16 = vadd.f32 %v2351_v10, %v1565_v39 }
 0x1df   : > { %v2560_v63 = vpack.c.bf16 %v2503_v1, %v2503_v1 }
 0x1e0   : > { %v2397_v15 = vadd.f32 %v3699_v27, %v2375_v16 }
 0x1e1   : > { %2586 = vst.msk [vmem:[%s3708_s30 + $0x40] sm:$0xf] %vm2568_vm10, %v2560_v63 }
 0x1e2   : > { %v2415_v52 = vmax.f32 %v2397_v15, 0.0 }
 0x1e3   : > { %v2504_v32 = vld.sshfl [vmem:[#allocation1 + $0x10] sm:$0xff pattern:$0x75316420] }
 0x1e4   : > { %v2451_v26 = vrot.slane %v2415_v52, 4  ;;  %2506 = vst [vmem:[#allocation1 + $0x21] ss:$2 sm:$0xff] %v2415_v52  ;;  %v2561_v23 = vpack.c.bf16 %v2504_v32, %v2504_v32 }
 0x1e5   : > { %v2353_v57 = vpop.f32.mrf.mxu3 }
 0x1e6   : > { %2507 = vst [vmem:[#allocation1 + $0x30] ss:$2 sm:$0xff] %v2451_v26  ;;  %v2376_v11 = vadd.f32 %v2353_v57, %v1566_v12 }
 0x1e7   : > { %2587 = vst.msk [vmem:[%s3708_s30 + $0x44] sm:$0x3] %vm2570_vm11, %v2561_v23 }
 0x1e8   : > { %v2398_v13 = vadd.f32 %v3699_v27, %v2376_v11 }
 0x1ea   : > { %v2416_v53 = vmax.f32 %v2398_v13, 0.0 }
 0x1eb   : > { %v2508_v38 = vld.sshfl [vmem:[#allocation1 + $0x20] sm:$0xff pattern:$0x75316420] }
 0x1ec   : > { %v2562_v56 = vpack.c.bf16 %v2508_v38, %v2508_v38  ;;  %v2452_v7 = vrot.slane %v2416_v53, 4  ;;  %2510 = vst [vmem:[#allocation1] ss:$2 sm:$0xff] %v2416_v53 }
 0x1ed   : > { %v2356_v44 = vpop.f32.mrf.mxu3  ;;  %v2509_v18 = vld.sshfl [vmem:[#allocation1 + $0x30] sm:$0xff pattern:$0x75316420] }
 0x1ee   : > { %2588 = vst.msk [vmem:[%s3708_s30 + $0x48] sm:$0xf] %vm2568_vm10, %v2562_v56  ;;  %v2377_v50 = vadd.f32 %v2356_v44, %v1567_v62  ;;  %v2563_v6 = vpack.c.bf16 %v2509_v18, %v2509_v18 }
 0x1ef   : > { %2511 = vst [vmem:[#allocation1 + $0x1] ss:$2 sm:$0xff] %v2452_v7 }
 0x1f0   : > { %v2399_v29 = vadd.f32 %v3699_v27, %v2377_v50  ;;  %2589 = vst.msk [vmem:[%s3708_s30 + $0x4c] sm:$0x3] %vm2570_vm11, %v2563_v6 }
 0x1f2   : > { %v2417_v30 = vmax.f32 %v2399_v29, 0.0 }
 0x1f4   : > { %v2453_v46 = vrot.slane %v2417_v30, 4  ;;  %2512 = vst [vmem:[#allocation1 + $0x10] ss:$2 sm:$0xff] %v2417_v30 }
 0x1f5   : > { %v2358_v22 = vpop.f32.mrf.mxu3 }
 0x1f6   : > { %v2513_v40 = vld.sshfl [vmem:[#allocation1] sm:$0xff pattern:$0x75316420]  ;;  %2515 = vst [vmem:[#allocation1 + $0x20] ss:$2 sm:$0xff] %v2453_v46  ;;  %v2378_v19 = vadd.f32 %v2358_v22, %v1568_v4 }
 0x1f7   : > { %v2564_v37 = vpack.c.bf16 %v2513_v40, %v2513_v40 }
 0x1f8   : > { %v2400_v41 = vadd.f32 %v3699_v27, %v2378_v19 }
 0x1f9   : > { %2590 = vst.msk [vmem:[%s3708_s30 + $0x50] sm:$0xf] %vm2568_vm10, %v2564_v37 }
 0x1fa   : > { %v2418_v59 = vmax.f32 %v2400_v41, 0.0 }
 0x1fb   : > { %v2514_v20 = vld.sshfl [vmem:[#allocation1 + $0x10] sm:$0xff pattern:$0x75316420] }
 0x1fc   : > { %v2565_v2 = vpack.c.bf16 %v2514_v20, %v2514_v20  ;;  %v2454_v35 = vrot.slane %v2418_v59, 4  ;;  %2516 = vst [vmem:[#allocation1 + $0x21] ss:$2 sm:$0xff] %v2418_v59 }
 0x1fe   : > { %2591 = vst.msk [vmem:[%s3708_s30 + $0x54] sm:$0x3] %vm2570_vm11, %v2565_v2 }
 0x1ff   : > { %2517 = vst [vmem:[#allocation1 + $0x30] ss:$2 sm:$0xff] %v2454_v35 }
 0x203   : > { %v2518_v14 = vld.sshfl [vmem:[#allocation1 + $0x20] sm:$0xff pattern:$0x75316420] }
 0x204   : > { %v2566_v36 = vpack.c.bf16 %v2518_v14, %v2518_v14 }
 0x206   : > { %v2519_v61 = vld.sshfl [vmem:[#allocation1 + $0x30] sm:$0xff pattern:$0x75316420]  ;;  %2592 = vst.msk [vmem:[%s3708_s30 + $0x58] sm:$0xf] %vm2568_vm10, %v2566_v36 }
 0x207   : > { %v2567_v8 = vpack.c.bf16 %v2519_v61, %v2519_v61 }
 0x209   : > { %2593 = vst.msk [vmem:[%s3708_s30 + $0x5c] sm:$0x3] %vm2570_vm11, %v2567_v8 }
 0x20a PF: > { %s13_s12 = sadd.s32 1, %s2839_s12  }
 0x20b   : > { %p10_p4 = scmp.ge.s32.totalorder %s13_s12, 4  }
 0x20d   :  { %12 = sbr.rel (!%p10_p4) target bundleno = 1 (0x1), region = 96 }

// kernel: qnet_forward.4
= control target key start
LH: loop header
LB: loop body
LE: loop exit
PB: predicated region body
PF: predicated region fallthrough
CT: control target
= control target key end

     0   :  { %s1386_s12 = smov 0   ;;  %s1666_s0 = inlined_call_operand.vmem [shape: bf16[2,6,6,128], index: 0, kind: input, shape index: {}]   ;;  %s1667_s1 = inlined_call_operand.vmem [shape: bf16[512,64], index: 1, kind: input, shape index: {}]   ;;  %s1668_s2 = inlined_call_operand.vmem [shape: f32[1,64], index: 2, kind: input, shape index: {}]   ;;  %s1669_s3 = inlined_call_operand.vmem [shape: bf16[2,5,5,64], index: 3, kind: output, shape index: {}]  }
   0x1 LB: > { %s1144_s13 = sadd.s32 4294967295, %s1364_s12   ;;  %p1148_p0 = scmp.ge.s32.totalorder %s1364_s12, 1  ;;  %s1364_s12 = sphi %s1386_s12, %s13_s12  }
   0x2   : > { %p137_p1 = scmp.lt.s32.totalorder %s1364_s12, 3 }
   0x4   : > { %p138_p2 = pnand %p1148_p0, %p137_p1 }
   0x5   : > { %p161_p3 = scmp.lt.s32.totalorder (!%p138_p2), %s1144_s13, 1 }
   0x6   : > { %141 = sbr.rel (%p138_p2) target bundleno = 324 (0x144), region = 32 }
   0xb   : > { %v1338_v0 = vld [vmem:[%s1667_s1 + $0xb8] sm:$0xff]  ;;  %v1337_v3 = vld [vmem:[%s1667_s1 + $0xb0] sm:$0xff]  ;;  %s1673_s13 = smov (!%p161_p3, %s1144_s13), 1  ;;  %v1336_v8 = vld [vmem:[%s1667_s1 + $0xa8] sm:$0xff]  ;;  %vm186_vm0 = vcmask 1040384   ;;  %vm191_vm1 = vcmask 1041409  }
   0xc   : > { %v1330_v1 = vld [vmem:[%s1667_s1 + $0x78] sm:$0xff]  ;;  %740 = vmatpush.bf16.msra.mxu2 %v1338_v0  ;;  %v1329_v4 = vld [vmem:[%s1667_s1 + $0x70] sm:$0xff]  ;;  %s1347_s30 = smul.u32 24, %s1673_s13  ;;  %v1328_v9 = vld [vmem:[%s1667_s1 + $0x68] sm:$0xff]  ;;  %vm195_vm2 = vcmask 1042434   ;;  %vm1071_vm3 = vcmask 518144  }
   0xd   : > { %v1322_v2 = vld [vmem:[%s1667_s1 + $0x38] sm:$0xff]  ;;  %399 = vmatpush.bf16.msra.mxu0 %v1330_v1  ;;  %v1321_v6 = vld [vmem:[%s1667_s1 + $0x30] sm:$0xff]  ;;  %v1320_v10 = vld [vmem:[%s1667_s1 + $0x28] sm:$0xff]  ;;  %s1348_s7 = smul.u32 20, %s1673_s13  ;;  %vm1072_vm4 = vsmask.f32 2304 }
   0xe   : > { %v1346_v5 = vld [vmem:[%s1667_s1 + $0xf8] sm:$0xff]  ;;  %516 = vmatpush.bf16.msra.mxu1 %v1322_v2  ;;  %v1345_v7 = vld [vmem:[%s1667_s1 + $0xf0] sm:$0xff]  ;;  %s1430_s10 = scalar_lea.vmem %s1666_s0, %s1347_s30  ;;  %v1344_v11 = vld [vmem:[%s1667_s1 + $0xe8] sm:$0xff] }
   0xf   : > { %967 = vmatpush.bf16.msra.mxu3 %v1346_v5  ;;  %v1335_v12 = vld [vmem:[%s1667_s1 + $0xa0] sm:$0xff]  ;;  %v173_v17 = vld [vmem:[%s1430_s10 + $0x8] sm:$0x7]  ;;  %v1451_v18 = vld [vmem:[%s1430_s10 + $0xc] sm:$0x7]  ;;  %s1635_s11 = scalar_lea.vmem %s1669_s3, %s1348_s7 }
  0x10   : > { %741 = vmatpush.bf16.msra.mxu2 %v1337_v3  ;;  %v171_v13 = vld [vmem:[%s1430_s10] sm:$0x7]  ;;  %v172_v14 = vld [vmem:[%s1430_s10 + $0x4] sm:$0x7]  ;;  %v183_v20 = vrot.slane %v173_v17, 3  ;;  %v1334_v25 = vld [vmem:[%s1667_s1 + $0x98] sm:$0xff] }
  0x11   : > { %400 = vmatpush.bf16.msra.mxu0 %v1329_v4  ;;  %v1327_v15 = vld [vmem:[%s1667_s1 + $0x60] sm:$0xff]  ;;  %v181_v19 = vrot.slane %v171_v13, 3  ;;  %v182_v22 = vrot.slane %v172_v14, 3  ;;  %v1326_v26 = vld [vmem:[%s1667_s1 + $0x58] sm:$0xff]  ;;  %v1467_v27 = vrot.slane %v1451_v18, 3  ;;  %v1333_v39 = vld [vmem:[%s1667_s1 + $0x90] sm:$0xff] }
  0x12   : > { %517 = vmatpush.bf16.msra.mxu1 %v1321_v6  ;;  %v1319_v16 = vld [vmem:[%s1667_s1 + $0x20] sm:$0xff]  ;;  %v1318_v31 = vld [vmem:[%s1667_s1 + $0x18] sm:$0xff]  ;;  %v213_v35 = vsel %vm191_vm1, %v173_v17, %v183_v20  ;;  %v216_v38 = vsel %vm195_vm2, %v173_v17, %v183_v20  ;;  %v1325_v40 = vld [vmem:[%s1667_s1 + $0x50] sm:$0xff]  ;;  %v1499_v42 = vsel %vm186_vm0, %v173_v17, %v183_v20 }
  0x13   : > { %968 = vmatpush.bf16.msra.mxu3 %v1345_v7  ;;  %v1343_v21 = vld [vmem:[%s1667_s1 + $0xe0] sm:$0xff]  ;;  %v1457_v23 = vsel %vm186_vm0, %v171_v13, %v181_v19  ;;  %v192_v24 = vsel %vm191_vm1, %v171_v13, %v181_v19  ;;  %v196_v28 = vsel %vm195_vm2, %v171_v13, %v181_v19  ;;  %v203_v29 = vsel %vm191_vm1, %v172_v14, %v182_v22  ;;  %v1342_v36 = vld [vmem:[%s1667_s1 + $0xd8] sm:$0xff]  ;;  %v175_v43 = vld [vmem:[%s1430_s10 + $0x10] sm:$0x7] }
  0x14   : > { %742 = vmatpush.bf16.msra.mxu2 %v1336_v8  ;;  %v1472_v30 = vsel %vm195_vm2, %v172_v14, %v182_v22  ;;  %v1477_v32 = vrot.slane %v192_v24, 1  ;;  %v1479_v33 = vrot.slane %v203_v29, 1  ;;  %v1486_v37 = vrot.slane %v213_v35, 1  ;;  %v1317_v48 = vld [vmem:[%s1667_s1 + $0x10] sm:$0xff]  ;;  %v1332_v56 = vld [vmem:[%s1667_s1 + $0x88] sm:$0xff]  ;;  %v1331_v4 = vld [vmem:[%s1667_s1 + $0x80] sm:$0xff] }
  0x15   : > { %401 = vmatpush.bf16.msra.mxu0 %v1328_v9  ;;  %v208_v34 = vrot.slane %v1472_v30, 2  ;;  %v1496_v41 = vsel %vm186_vm0, %v172_v14, %v182_v22  ;;  %v1503_v44 = vrot.slane %v196_v28, 2  ;;  %v1505_v45 = vrot.slane %v216_v38, 2  ;;  %v1341_v50 = vld [vmem:[%s1667_s1 + $0xd0] sm:$0xff]  ;;  %v1324_v57 = vld [vmem:[%s1667_s1 + $0x48] sm:$0xff]  ;;  %v1323_v28 = vld [vmem:[%s1667_s1 + $0x40] sm:$0xff] }
  0x16   : > { %518 = vmatpush.bf16.msra.mxu1 %v1320_v10  ;;  %324 = vst [vmem:[#allocation1 + $0x3] ss:$9 sm:$0xff] %v1479_v33  ;;  %v1510_v46 = vsel %vm186_vm0, %v1451_v18, %v1467_v27  ;;  %v240_v47 = vunpack.i.h.s16 %v1457_v23  ;;  %v242_v49 = vunpack.i.h.s16 %v1477_v32  ;;  %v245_v51 = vunpack.i.h.s16 %v1496_v41  ;;  %v1316_v61 = vld [vmem:[%s1667_s1 + $0x8] sm:$0xff]  ;;  %vm1637_vm5 = vmand %vm1071_vm3, %vm1072_vm4 }
  0x17   : > { %969 = vmatpush.bf16.msra.mxu3 %v1344_v11  ;;  %327 = vst [vmem:[#allocation1 + $0x4] ss:$9 sm:$0xff] %v208_v34  ;;  %v250_v52 = vunpack.i.h.s16 %v1499_v42  ;;  %v252_v53 = vunpack.i.h.s16 %v1486_v37  ;;  %v185_v54 = vrot.slane %v175_v43, 3  ;;  %v255_v55 = vunpack.i.h.s16 %v1510_v46  ;;  %v1340_v29 = vld [vmem:[%s1667_s1 + $0xc8] sm:$0xff] }
  0x18   : > { %743 = vmatpush.bf16.msra.mxu2 %v1335_v12  ;;  %v280_v58 = vunpack.i.h.s16 %v1503_v44  ;;  %v282_v59 = vunpack.i.h.s16 %v1505_v45  ;;  %v1151_v60 = vpack.i.b16 %v1477_v32, %v240_v47  ;;  %v1152_v62 = vpack.i.b16 %v1503_v44, %v242_v49  ;;  %v1229_v38 = vld [vmem:[%s1430_s10 + $0xc] sm:$0x7] }
  0x19   : > { %402 = vmatpush.bf16.msra.mxu0 %v1327_v15  ;;  %v1153_v63 = vpack.i.b16 %v1486_v37, %v250_v52  ;;  %v1154_v1 = vpack.i.b16 %v1505_v45, %v252_v53  ;;  %v233_v2 = vsel %vm191_vm1, %v175_v43, %v185_v54  ;;  %v231_v5 = vsel %vm186_vm0, %v175_v43, %v185_v54 }
  0x1a   : > { %519 = vmatpush.bf16.msra.mxu1 %v1319_v16  ;;  %v303_v0 = vpack.i.b16 %v245_v51, %v280_v58  ;;  %315 = vst [vmem:[#allocation1] ss:$9 sm:$0xff] %v1151_v60  ;;  %v308_v3 = vpack.i.b16 %v255_v55, %v282_v59  ;;  %v235_v6 = vrot.slane %v233_v2, 1  ;;  %v236_v7 = vsel %vm195_vm2, %v175_v43, %v185_v54 }
  0x1b   : > { %970 = vmatpush.bf16.msra.mxu3 %v1343_v21  ;;  %318 = vst [vmem:[#allocation1 + $0x1] ss:$9 sm:$0xff] %v1152_v62  ;;  %v223_v8 = vsel %vm191_vm1, %v1451_v18, %v1467_v27  ;;  %v226_v9 = vsel %vm195_vm2, %v1451_v18, %v1467_v27  ;;  %v260_v10 = vunpack.i.h.s16 %v231_v5  ;;  %v238_v11 = vrot.slane %v236_v7, 2  ;;  %v1228_v27 = vld [vmem:[%s1430_s10 + $0x8] sm:$0x7] }
  0x1c   : > { %744 = vmatpush.bf16.msra.mxu2 %v1334_v25  ;;  %321 = vst [vmem:[#allocation1 + $0x2] ss:$9 sm:$0xff] %v303_v0  ;;  %v262_v12 = vunpack.i.h.s16 %v235_v6  ;;  %v225_v13 = vrot.slane %v223_v8, 1  ;;  %v228_v14 = vrot.slane %v226_v9, 2  ;;  %v247_v20 = vunpack.i.h.s16 %v1479_v33  ;;  %v1231_v62 = vld [vmem:[%s1430_s10 + $0x14] sm:$0x7] }
  0x1d   : > { %403 = vmatpush.bf16.msra.mxu0 %v1326_v26  ;;  %330 = vst [vmem:[#allocation1 + $0x5] ss:$9 sm:$0xff] %v1153_v63  ;;  %v1155_v15 = vpack.i.b16 %v235_v6, %v260_v10  ;;  %v284_v19 = vunpack.i.h.s16 %v238_v11  ;;  %v1189_v18 = vpack.i.b16 %v1496_v41, %v1503_v44  ;;  %v1190_v22 = vpack.i.b16 %v1479_v33, %v245_v51  ;;  %v1230_v44 = vld [vmem:[%s1430_s10 + $0x10] sm:$0x7] }
  0x1e   : > { %520 = vmatpush.bf16.msra.mxu1 %v1318_v31  ;;  %333 = vst [vmem:[#allocation1 + $0x6] ss:$9 sm:$0xff] %v1154_v1  ;;  %v1156_v16 = vpack.i.b16 %v238_v11, %v262_v12  ;;  %v1191_v24 = vpack.i.b16 %v208_v34, %v247_v20  ;;  %v1192_v25 = vpack.i.b16 %v1510_v46, %v1505_v45  ;;  %v257_v26 = vunpack.i.h.s16 %v225_v13  ;;  %v1227_v31 = vld [vmem:[%s1430_s10 + $0x4] sm:$0x7] }
  0x1f   : > { %971 = vmatpush.bf16.msra.mxu3 %v1342_v36  ;;  %336 = vst [vmem:[#allocation1 + $0x7] ss:$9 sm:$0xff] %v308_v3  ;;  %v1193_v30 = vpack.i.b16 %v225_v13, %v255_v55  ;;  %v547_v33 = vrot.slane %v1228_v27, 3  ;;  %v1339_v34 = vld [vmem:[%s1667_s1 + $0xc0] sm:$0xff]  ;;  %v546_v36 = vrot.slane %v1227_v31, 3  ;;  %v548_v41 = vrot.slane %v1229_v38, 3 }
  0x20   : > { %745 = vmatpush.bf16.msra.mxu2 %v1333_v39  ;;  %v549_v49 = vrot.slane %v1230_v44, 3  ;;  %v550_v3 = vrot.slane %v1231_v62, 3 }
  0x21   : > { %404 = vmatpush.bf16.msra.mxu0 %v1325_v40  ;;  %v565_v39 = vsel %vm191_vm1, %v1228_v27, %v547_v33  ;;  %v558_v40 = vsel %vm195_vm2, %v1227_v31, %v546_v36  ;;  %v568_v45 = vsel %vm195_vm2, %v1228_v27, %v547_v33  ;;  %v555_v46 = vsel %vm191_vm1, %v1227_v31, %v546_v36 }
  0x22   : > { %521 = vmatpush.bf16.msra.mxu1 %v1317_v48  ;;  %v567_v43 = vrot.slane %v565_v39, 1  ;;  %v560_v47 = vrot.slane %v558_v40, 2  ;;  %v578_v51 = vsel %vm195_vm2, %v1229_v38, %v548_v41  ;;  %v553_v53 = vsel %vm186_vm0, %v1227_v31, %v546_v36 }
  0x23   : > { %972 = vmatpush.bf16.msra.mxu3 %v1341_v50  ;;  %v570_v50 = vrot.slane %v568_v45, 2  ;;  %v557_v54 = vrot.slane %v555_v46, 1  ;;  %v580_v58 = vrot.slane %v578_v51, 2  ;;  %v583_v60 = vsel %vm186_vm0, %v1230_v44, %v549_v49 }
  0x24   : > { %746 = vmatpush.bf16.msra.mxu2 %v1332_v56  ;;  %v609_v52 = vunpack.i.h.s16 %v567_v43  ;;  %v585_v63 = vsel %vm191_vm1, %v1230_v44, %v549_v49  ;;  %v573_v0 = vsel %vm186_vm0, %v1229_v38, %v548_v41  ;;  %v617_v7 = vunpack.i.h.s16 %v583_v60 }
  0x25   : > { %405 = vmatpush.bf16.msra.mxu0 %v1324_v57  ;;  %v575_v57 = vsel %vm191_vm1, %v1229_v38, %v548_v41  ;;  %v1235_v2 = vpack.i.b16 %v583_v60, %v580_v58  ;;  %v598_v9 = vsel %vm195_vm2, %v1231_v62, %v550_v3  ;;  %v595_v12 = vsel %vm191_vm1, %v1231_v62, %v550_v3 }
  0x26   : > { %522 = vmatpush.bf16.msra.mxu1 %v1316_v61  ;;  %v337_v17 = vld [vmem:[#allocation1] sm:$0xff]  ;;  %v1234_v61 = vpack.i.b16 %v570_v50, %v609_v52  ;;  %v577_v1 = vrot.slane %v575_v57, 1 }
  0x27   : > { %339 = vst [vmem:[#allocation1] ss:$9 sm:$0xff] %v225_v13  ;;  %973 = vmatpush.bf16.msra.mxu3 %v1340_v29  ;;  %v600_v13 = vrot.slane %v598_v9, 2 }
  0x28   : > { %747 = vmatpush.bf16.msra.mxu2 %v1331_v4  ;;  %341 = vst [vmem:[#allocation1 + $0x1] ss:$9 sm:$0xff] %v228_v14  ;;  %v587_v4 = vrot.slane %v585_v63, 1 }
  0x29   : > { %343 = vst [vmem:[#allocation1 + $0x2] ss:$9 sm:$0xff] %v1155_v15  ;;  %406 = vmatpush.bf16.msra.mxu0 %v1323_v28  ;;  %v1271_v15 = vld [vmem:[%s1430_s10 + $0x8] sm:$0x7] }
  0x2a   : > { %345 = vst [vmem:[#allocation1 + $0x3] ss:$9 sm:$0xff] %v1156_v16  ;;  %v619_v10 = vunpack.i.h.s16 %v587_v4  ;;  %v1272_v16 = vld [vmem:[%s1430_s10 + $0xc] sm:$0x7] }
  0x2b   : > { %347 = vst [vmem:[#allocation1 + $0x4] ss:$9 sm:$0xff] %v284_v19  ;;  %974 = vmatpush.bf16.msra.mxu3 %v1339_v34  ;;  %v597_v19 = vrot.slane %v595_v12, 1 }
  0x2c   : > { %407 = vmatmul.bf16.vlgmr.msra.gmra.mxu0 %v337_v17 }
  0x32   : > { %v1558_v21 = vld [vmem:[#allocation1] sm:$0xff] }
  0x33   : > { %432 = vst [vmem:[#allocation1] ss:$9 sm:$0xff] %v1457_v23  ;;  %v1315_v23 = vld [vmem:[%s1667_s1] sm:$0xff] }
  0x34   : > { %435 = vst [vmem:[#allocation1 + $0x1] ss:$9 sm:$0xff] %v1477_v32  ;;  %v1194_v32 = vpack.i.b16 %v228_v14, %v257_v26  ;;  %523 = vmatpush.bf16.msra.mxu1 %v1315_v23  ;;  %v1236_v14 = vpack.i.b16 %v587_v4, %v617_v7  ;;  %v625_v26 = vunpack.i.l.s16 %v600_v13 }
  0x35   : > { %438 = vst [vmem:[#allocation1 + $0x2] ss:$9 sm:$0xff] %v1189_v18 }
  0x36   : > { %441 = vst [vmem:[#allocation1 + $0x3] ss:$9 sm:$0xff] %v1190_v22  ;;  %v774_v22 = vrot.slane %v1271_v15, 3 }
  0x37   : > { %444 = vst [vmem:[#allocation1 + $0x4] ss:$9 sm:$0xff] %v1191_v24  ;;  %v775_v24 = vrot.slane %v1272_v16, 3 }
  0x38   : > { %447 = vst [vmem:[#allocation1 + $0x5] ss:$9 sm:$0xff] %v1499_v42  ;;  %v563_v42 = vsel %vm186_vm0, %v1228_v27, %v547_v33  ;;  %v1273_v27 = vld [vmem:[%s1430_s10 + $0x10] sm:$0x7]  ;;  %v792_v41 = vsel %vm191_vm1, %v1271_v15, %v774_v22  ;;  %v795_v45 = vsel %vm195_vm2, %v1271_v15, %v774_v22 }
  0x39   : > { %450 = vst [vmem:[#allocation1 + $0x6] ss:$9 sm:$0xff] %v1486_v37  ;;  %v263_v37 = vunpack.i.l.s16 %v238_v11  ;;  %v607_v48 = vunpack.i.h.s16 %v563_v42  ;;  %v1232_v55 = vpack.i.b16 %v563_v42, %v560_v47  ;;  %v802_v31 = vsel %vm191_vm1, %v1272_v16, %v775_v24 }
  0x3a   : > { %453 = vst [vmem:[#allocation1 + $0x7] ss:$9 sm:$0xff] %v1192_v25  ;;  %v805_v33 = vsel %vm195_vm2, %v1272_v16, %v775_v24  ;;  %v800_v36 = vsel %vm186_vm0, %v1272_v16, %v775_v24  ;;  %v794_v51 = vrot.slane %v792_v41, 1 }
  0x3b   : > { %v1233_v59 = vpack.i.b16 %v567_v43, %v607_v48  ;;  %v807_v40 = vrot.slane %v805_v33, 2  ;;  %v838_v46 = vunpack.i.h.s16 %v800_v36 }
  0x3c   : > { %412 = vmatmul.bf16.gmra.mxu0 %v1558_v21  ;;  %v593_v21 = vsel %vm186_vm0, %v1231_v62, %v550_v3 }
  0x3d   : > { %v842_v52 = vunpack.i.h.s16 %v807_v40 }
  0x41   : > { %v454_v35 = vld [vmem:[#allocation1] sm:$0xff] }
  0x42   : > { %456 = vst [vmem:[#allocation1] ss:$9 sm:$0xff] %v1193_v30  ;;  %524 = vmatmul.bf16.vlgmr.msra.gmra.mxu1 %v454_v35  ;;  %v790_v30 = vsel %vm186_vm0, %v1271_v15, %v774_v22 }
  0x43   : > { %458 = vst [vmem:[#allocation1 + $0x1] ss:$9 sm:$0xff] %v1194_v32  ;;  %v776_v32 = vrot.slane %v1273_v27, 3  ;;  %v833_v39 = vunpack.i.h.s16 %v790_v30 }
  0x44   : > { %460 = vst [vmem:[#allocation1 + $0x2] ss:$9 sm:$0xff] %v231_v5  ;;  %v588_v5 = vsel %vm195_vm2, %v1230_v44, %v549_v49  ;;  %v1274_v44 = vld [vmem:[%s1430_s10 + $0x14] sm:$0x7] }
  0x45   : > { %462 = vst [vmem:[#allocation1 + $0x3] ss:$9 sm:$0xff] %v235_v6  ;;  %v1270_v6 = vld [vmem:[%s1430_s10 + $0x4] sm:$0x7]  ;;  %v590_v8 = vrot.slane %v588_v5, 2  ;;  %v810_v42 = vsel %vm186_vm0, %v1273_v27, %v776_v32  ;;  %v812_v63 = vsel %vm191_vm1, %v1273_v27, %v776_v32 }
  0x46   : > { %464 = vst [vmem:[#allocation1 + $0x4] ss:$9 sm:$0xff] %v263_v37  ;;  %v773_v11 = vrot.slane %v1270_v6, 3  ;;  %v804_v37 = vrot.slane %v802_v31, 1  ;;  %v814_v4 = vrot.slane %v812_v63, 1 }
  0x47   : > { %v1237_v17 = vpack.i.b16 %v590_v8, %v619_v10 }
  0x48   : > { %v782_v20 = vsel %vm191_vm1, %v1270_v6, %v773_v11  ;;  %v785_v25 = vsel %vm195_vm2, %v1270_v6, %v773_v11  ;;  %v780_v28 = vsel %vm186_vm0, %v1270_v6, %v773_v11  ;;  %v840_v48 = vunpack.i.h.s16 %v804_v37 }
  0x49   : > { %v784_v23 = vrot.slane %v782_v20, 1  ;;  %v787_v29 = vrot.slane %v785_v25, 2  ;;  %v828_v34 = vunpack.i.h.s16 %v780_v28 }
  0x4a   : > { %v1278_v57 = vpack.i.b16 %v807_v40, %v840_v48 }
  0x4b   : > { %v830_v35 = vunpack.i.h.s16 %v784_v23  ;;  %v832_v38 = vunpack.i.h.s16 %v787_v29  ;;  %v1275_v43 = vpack.i.b16 %v784_v23, %v828_v34 }
  0x4d   : > { %v465_v56 = vld [vmem:[#allocation1] sm:$0xff]  ;;  %v1276_v47 = vpack.i.b16 %v787_v29, %v830_v35  ;;  %v871_v49 = vpack.i.b16 %v833_v39, %v832_v38 }
  0x4e   : > { %656 = vst [vmem:[#allocation1] ss:$9 sm:$0xff] %v553_v53  ;;  %v843_v53 = vunpack.i.h.s16 %v810_v42  ;;  %v1074_v38 = vld [vmem:[%s1635_s11] sm:$0x7] }
  0x4f   : > { %659 = vst [vmem:[#allocation1 + $0x1] ss:$9 sm:$0xff] %v557_v54  ;;  %v777_v54 = vrot.slane %v1274_v44, 3 }
  0x50   : > { %662 = vst [vmem:[#allocation1 + $0x2] ss:$9 sm:$0xff] %v1232_v55  ;;  %v797_v55 = vrot.slane %v795_v45, 2  ;;  %v876_v58 = vpack.i.b16 %v843_v53, %v842_v52  ;;  %v1077_v53 = vld [vmem:[%s1635_s11 + $0x4] sm:$0x7] }
  0x51   : > { %665 = vst [vmem:[#allocation1 + $0x3] ss:$9 sm:$0xff] %v1233_v59  ;;  %v822_v59 = vsel %vm191_vm1, %v1274_v44, %v777_v54  ;;  %v820_v60 = vsel %vm186_vm0, %v1274_v44, %v777_v54  ;;  %v825_v62 = vsel %vm195_vm2, %v1274_v44, %v777_v54 }
  0x52   : > { %668 = vst [vmem:[#allocation1 + $0x4] ss:$9 sm:$0xff] %v1234_v61  ;;  %529 = vmatmul.bf16.gmra.mxu1 %v465_v56  ;;  %v1277_v56 = vpack.i.b16 %v804_v37, %v838_v46  ;;  %v824_v61 = vrot.slane %v822_v59, 1 }
  0x53   : > { %671 = vst [vmem:[#allocation1 + $0x5] ss:$9 sm:$0xff] %v573_v0  ;;  %v815_v0 = vsel %vm195_vm2, %v1273_v27, %v776_v32 }
  0x54   : > { %674 = vst [vmem:[#allocation1 + $0x6] ss:$9 sm:$0xff] %v577_v1  ;;  %v848_v1 = vunpack.i.h.s16 %v820_v60  ;;  %v850_v3 = vunpack.i.h.s16 %v824_v61  ;;  %v817_v5 = vrot.slane %v815_v0, 2 }
  0x55   : > { %677 = vst [vmem:[#allocation1 + $0x7] ss:$9 sm:$0xff] %v1235_v2  ;;  %v827_v2 = vrot.slane %v825_v62, 2 }
  0x56   : > { %v1279_v6 = vpack.i.b16 %v824_v61, %v848_v1 }
  0x57   : > { %v1280_v8 = vpack.i.b16 %v827_v2, %v850_v3  ;;  %v852_v9 = vunpack.i.h.s16 %v827_v2  ;;  %v1080_v3 = vld [vmem:[%s1635_s11 + $0x8] sm:$0x7] }
  0x5c   : > { %v678_v18 = vld [vmem:[#allocation1] sm:$0xff] }
  0x5d   : > { %748 = vmatmul.bf16.vlgmr.msra.gmra.mxu2 %v678_v18  ;;  %680 = vst [vmem:[#allocation1] ss:$9 sm:$0xff] %v1236_v14 }
  0x5e   : > { %682 = vst [vmem:[#allocation1 + $0x1] ss:$9 sm:$0xff] %v1237_v17  ;;  %v1627_v17 = vld [vmem:[%s1668_s2] ss:$0 sm:$0xff] }
  0x5f   : > { %684 = vst [vmem:[#allocation1 + $0x2] ss:$9 sm:$0xff] %v593_v21 }
  0x60   : > { %686 = vst [vmem:[#allocation1 + $0x3] ss:$9 sm:$0xff] %v597_v19 }
  0x61   : > { %688 = vst [vmem:[#allocation1 + $0x4] ss:$9 sm:$0xff] %v625_v26 }
  0x68   : > { %v689_v50 = vld [vmem:[#allocation1] sm:$0xff] }
  0x69   : > { %883 = vst [vmem:[#allocation1] ss:$9 sm:$0xff] %v1275_v43 }
  0x6a   : > { %886 = vst [vmem:[#allocation1 + $0x1] ss:$9 sm:$0xff] %v1276_v47 }
  0x6b   : > { %889 = vst [vmem:[#allocation1 + $0x2] ss:$9 sm:$0xff] %v871_v49 }
  0x6c   : > { %892 = vst [vmem:[#allocation1 + $0x3] ss:$9 sm:$0xff] %v794_v51 }
  0x6d   : > { %895 = vst [vmem:[#allocation1 + $0x4] ss:$9 sm:$0xff] %v797_v55  ;;  %753 = vmatmul.bf16.gmra.mxu2 %v689_v50 }
  0x6e   : > { %898 = vst [vmem:[#allocation1 + $0x5] ss:$9 sm:$0xff] %v1277_v56 }
  0x6f   : > { %901 = vst [vmem:[#allocation1 + $0x6] ss:$9 sm:$0xff] %v1278_v57 }
  0x70   : > { %904 = vst [vmem:[#allocation1 + $0x7] ss:$9 sm:$0xff] %v876_v58 }
  0x77   : > { %v905_v7 = vld [vmem:[#allocation1] sm:$0xff] }
  0x78   : > { %975 = vmatmul.bf16.vlgmr.msra.gmra.mxu3 %v905_v7  ;;  %907 = vst [vmem:[#allocation1] ss:$9 sm:$0xff] %v814_v4 }
  0x79   : > { %909 = vst [vmem:[#allocation1 + $0x1] ss:$9 sm:$0xff] %v817_v5 }
  0x7a   : > { %911 = vst [vmem:[#allocation1 + $0x2] ss:$9 sm:$0xff] %v1279_v6 }
  0x7b   : > { %913 = vst [vmem:[#allocation1 + $0x3] ss:$9 sm:$0xff] %v1280_v8 }
  0x7c   : > { %915 = vst [vmem:[#allocation1 + $0x4] ss:$9 sm:$0xff] %v852_v9 }
  0x83   : > { %v916_v10 = vld [vmem:[#allocation1] sm:$0xff] }
  0x88   : > { %980 = vmatmul.bf16.gmra.mxu3 %v916_v10 }
  0xa9   : > { %v408_v11 = vpop.f32.mrf.mxu0 }
  0xb1   : > { %v410_v16 = vpop.f32.mrf.mxu0 }
  0xb9   : > { %v413_v42 = vpop.f32.mrf.mxu0 }
  0xbf   : > { %v525_v12 = vpop.f32.mrf.mxu1 }
  0xc0   : > { %v526_v13 = vadd.f32 %v525_v12, %v408_v11 }
  0xc1   : > { %v415_v61 = vpop.f32.mrf.mxu0 }
  0xc7   : > { %v527_v19 = vpop.f32.mrf.mxu1 }
  0xc8   : > { %v528_v21 = vadd.f32 %v527_v19, %v410_v16 }
  0xcf   : > { %v530_v43 = vpop.f32.mrf.mxu1 }
  0xd0   : > { %v531_v44 = vadd.f32 %v530_v43, %v413_v42 }
  0xd7   : > { %v532_v62 = vpop.f32.mrf.mxu1 }
  0xd8   : > { %v533_v4 = vadd.f32 %v532_v62, %v415_v61 }
  0xe0   : > { %v749_v14 = vpop.f32.mrf.mxu2 }
  0xe1   : > { %v759_v15 = vadd.f32 %v749_v14, %v526_v13 }
  0xe8   : > { %v751_v24 = vpop.f32.mrf.mxu2 }
  0xe9   : > { %v760_v26 = vadd.f32 %v751_v24, %v528_v21 }
  0xf0   : > { %v754_v46 = vpop.f32.mrf.mxu2 }
  0xf1   : > { %v761_v47 = vadd.f32 %v754_v46, %v531_v44 }
  0xf8   : > { %v756_v7 = vpop.f32.mrf.mxu2 }
  0xf9   : > { %v762_v9 = vadd.f32 %v756_v7, %v533_v4 }
  0xfb   : > { %v976_v20 = vpop.f32.mrf.mxu3 }
  0xfc   : > { %v986_v18 = vadd.f32 %v976_v20, %v759_v15  ;;  %v1083_v15 = vld [vmem:[%s1635_s11 + $0xc] sm:$0x7] }
  0xfe   : > { %v994_v22 = vadd.f32 %v1627_v17, %v986_v18 }
 0x100   : > { %v998_v25 = vmax.f32 %v994_v22, 0.0 }
 0x102   : > { %v1006_v27 = vrot.slane %v998_v25, 1  ;;  %v1007_v28 = vrot.slane %v998_v25, 2  ;;  %v1008_v23 = vrot.slane %v998_v25, 3  ;;  %1027 = vst [vmem:[#allocation1] ss:$9 sm:$0xff] %v998_v25  ;;  %v1009_v29 = vrot.slane %v998_v25, 4 }
 0x103   : > { %v978_v30 = vpop.f32.mrf.mxu3  ;;  %v1010_v34 = vrot.slane %v998_v25, 5  ;;  %v1011_v35 = vrot.slane %v998_v25, 6  ;;  %v1012_v39 = vrot.slane %v998_v25, 7  ;;  %v1086_v25 = vld [vmem:[%s1635_s11 + $0x10] sm:$0x7] }
 0x104   : > { %1029 = vst [vmem:[#allocation1 + $0x1] ss:$9 sm:$0xff] %v1006_v27  ;;  %v987_v31 = vadd.f32 %v978_v30, %v760_v26 }
 0x105   : > { %1031 = vst [vmem:[#allocation1 + $0x2] ss:$9 sm:$0xff] %v1007_v28 }
 0x106   : > { %1033 = vst [vmem:[#allocation1 + $0x3] ss:$9 sm:$0xff] %v1008_v23  ;;  %v995_v32 = vadd.f32 %v1627_v17, %v987_v31 }
 0x107   : > { %1035 = vst [vmem:[#allocation1 + $0x4] ss:$9 sm:$0xff] %v1009_v29 }
 0x108   : > { %v999_v33 = vmax.f32 %v995_v32, 0.0 }
 0x10a   : > { %v1013_v40 = vrot.slane %v999_v33, 1  ;;  %v1014_v49 = vrot.slane %v999_v33, 2  ;;  %v1015_v51 = vrot.slane %v999_v33, 3  ;;  %v1016_v54 = vrot.slane %v999_v33, 4 }
 0x10b   : > { %v981_v48 = vpop.f32.mrf.mxu3  ;;  %v1017_v56 = vrot.slane %v999_v33, 5  ;;  %v1018_v57 = vrot.slane %v999_v33, 6  ;;  %v1019_v63 = vrot.slane %v999_v33, 7 }
 0x10c   : > { %v988_v50 = vadd.f32 %v981_v48, %v761_v47 }
 0x10e   : > { %v1036_v36 = vld [vmem:[#allocation1] sm:$0xff]  ;;  %v996_v58 = vadd.f32 %v1627_v17, %v988_v50 }
 0x10f   : > { %1037 = vst [vmem:[#allocation1] ss:$9 sm:$0xff] %v1010_v34  ;;  %v1066_v41 = vpack.c.bf16 %v1036_v36, %v1036_v36 }
 0x110   : > { %1038 = vst [vmem:[#allocation1 + $0x1] ss:$9 sm:$0xff] %v1011_v35  ;;  %v1000_v60 = vmax.f32 %v996_v58, 0.0 }
 0x111   : > { %1039 = vst [vmem:[#allocation1 + $0x2] ss:$9 sm:$0xff] %v1012_v39  ;;  %v1075_v45 = vsel %vm1637_vm5, %v1066_v41, %v1074_v38 }
 0x112   : > { %1040 = vst [vmem:[#allocation1 + $0x3] ss:$9 sm:$0xff] %v999_v33  ;;  %v1020_v0 = vrot.slane %v1000_v60, 1  ;;  %v1021_v2 = vrot.slane %v1000_v60, 2  ;;  %v1022_v5 = vrot.slane %v1000_v60, 3  ;;  %v1023_v12 = vrot.slane %v1000_v60, 4 }
 0x113   : > { %1041 = vst [vmem:[#allocation1 + $0x4] ss:$9 sm:$0xff] %v1013_v40  ;;  %v983_v10 = vpop.f32.mrf.mxu3  ;;  %v1024_v13 = vrot.slane %v1000_v60, 5  ;;  %v1025_v19 = vrot.slane %v1000_v60, 6  ;;  %v1026_v18 = vrot.slane %v1000_v60, 7 }
 0x114   : > { %1076 = vst [vmem:[%s1635_s11] sm:$0x7] %v1075_v45  ;;  %v989_v11 = vadd.f32 %v983_v10, %v762_v9 }
 0x116   : > { %v997_v16 = vadd.f32 %v1627_v17, %v989_v11 }
 0x118   : > { %v1001_v22 = vmax.f32 %v997_v16, 0.0 }
 0x11a   : > { %v1042_v52 = vld [vmem:[#allocation1] sm:$0xff] }
 0x11b   : > { %1043 = vst [vmem:[#allocation1] ss:$9 sm:$0xff] %v1014_v49  ;;  %v1067_v55 = vpack.c.bf16 %v1042_v52, %v1042_v52 }
 0x11c   : > { %1044 = vst [vmem:[#allocation1 + $0x1] ss:$9 sm:$0xff] %v1015_v51 }
 0x11d   : > { %1045 = vst [vmem:[#allocation1 + $0x2] ss:$9 sm:$0xff] %v1016_v54  ;;  %v1078_v59 = vsel %vm1637_vm5, %v1067_v55, %v1077_v53 }
 0x11e   : > { %1046 = vst [vmem:[#allocation1 + $0x3] ss:$9 sm:$0xff] %v1017_v56 }
 0x11f   : > { %1047 = vst [vmem:[#allocation1 + $0x4] ss:$9 sm:$0xff] %v1018_v57 }
 0x120   : > { %1079 = vst [vmem:[%s1635_s11 + $0x4] sm:$0x7] %v1078_v59 }
 0x126   : > { %v1048_v1 = vld [vmem:[#allocation1] sm:$0xff] }
 0x127   : > { %1049 = vst [vmem:[#allocation1] ss:$9 sm:$0xff] %v1019_v63  ;;  %v1068_v6 = vpack.c.bf16 %v1048_v1, %v1048_v1 }
 0x128   : > { %1050 = vst [vmem:[#allocation1 + $0x1] ss:$9 sm:$0xff] %v1000_v60 }
 0x129   : > { %1051 = vst [vmem:[#allocation1 + $0x2] ss:$9 sm:$0xff] %v1020_v0  ;;  %v1081_v8 = vsel %vm1637_vm5, %v1068_v6, %v1080_v3 }
 0x12a   : > { %1052 = vst [vmem:[#allocation1 + $0x3] ss:$9 sm:$0xff] %v1021_v2 }
 0x12b   : > { %1053 = vst [vmem:[#allocation1 + $0x4] ss:$9 sm:$0xff] %v1022_v5 }
 0x12c   : > { %1082 = vst [vmem:[%s1635_s11 + $0x8] sm:$0x7] %v1081_v8 }
 0x132   : > { %v1054_v14 = vld [vmem:[#allocation1] sm:$0xff] }
 0x133   : > { %1055 = vst [vmem:[#allocation1] ss:$9 sm:$0xff] %v1023_v12  ;;  %v1069_v20 = vpack.c.bf16 %v1054_v14, %v1054_v14 }
 0x134   : > { %1056 = vst [vmem:[#allocation1 + $0x1] ss:$9 sm:$0xff] %v1024_v13 }
 0x135   : > { %1057 = vst [vmem:[#allocation1 + $0x2] ss:$9 sm:$0xff] %v1025_v19  ;;  %v1084_v21 = vsel %vm1637_vm5, %v1069_v20, %v1083_v15 }
 0x136   : > { %1058 = vst [vmem:[#allocation1 + $0x3] ss:$9 sm:$0xff] %v1026_v18 }
 0x137   : > { %1085 = vst [vmem:[%s1635_s11 + $0xc] sm:$0x7] %v1084_v21 }
 0x138   : > { %1059 = vst [vmem:[#allocation1 + $0x4] ss:$9 sm:$0xff] %v1001_v22 }
 0x13f   : > { %v1060_v24 = vld [vmem:[#allocation1] sm:$0xff] }
 0x140   : > { %v1070_v26 = vpack.c.bf16 %v1060_v24, %v1060_v24 }
 0x142   : > { %v1087_v17 = vsel %vm1637_vm5, %v1070_v26, %v1086_v25 }
 0x143   : > { %1088 = vst [vmem:[%s1635_s11 + $0x10] sm:$0x7] %v1087_v17 }
 0x144 PF: > { %s13_s12 = sadd.s32 1, %s1364_s12  }
 0x145   : > { %p10_p4 = scmp.ge.s32.totalorder %s13_s12, 4  }
 0x147   :  { %12 = sbr.rel (!%p10_p4) target bundleno = 1 (0x1), region = 95 }

// kernel: qnet_forward.5
= control target key start
LH: loop header
LB: loop body
LE: loop exit
PB: predicated region body
PF: predicated region fallthrough
CT: control target
= control target key end

     0   :  { %12 = vsyncpa [#allocation3], 0  ;;  %s5646_s0 = inlined_call_operand.vmem [shape: bf16[2,5,5,64], index: 0, kind: input, shape index: {}]   ;;  %s5647_s1 = inlined_call_operand.vmem [shape: bf16[576,64], index: 1, kind: input, shape index: {}]   ;;  %s5648_s2 = inlined_call_operand.vmem [shape: f32[1,64], index: 2, kind: input, shape index: {}]   ;;  %s5649_s3 = inlined_call_operand.vmem [shape: bf16[576,512], index: 3, kind: input, shape index: {}]   ;;  %s5650_s4 = inlined_call_operand.vmem [shape: f32[1,512], index: 4, kind: input, shape index: {}]   ;;  %s5651_s5 = inlined_call_operand.vmem [shape: bf16[512,128], index: 5, kind: input, shape index: {}]   ;;  %s5652_s6 = inlined_call_operand.vmem [shape: f32[1,128], index: 6, kind: input, shape index: {}]   ;;  %s5653_s7 = inlined_call_operand.hbm [shape: f32[2,1,128], index: 7, kind: output, shape index: {}]  }
   0x1   :  { %14 = vsyncpa [#allocation3 + $0x1], 0  ;;  %s4310_s24 = smov 0   ;;  %s4312_s25 = smov 0  }
   0x2   :  { %s4314_s26 = smov 0   ;;  %s4316_s27 = smov 0  }
   0x3 LB: > { %s4331_s28 = sadd.s32 4294967295, %s4268_s27   ;;  %s3017_s29 = sadd.s32 4294967294, %s4268_s27   ;;  %s4268_s27 = sphi %s4316_s27, %s5659_s27   ;;  %s4264_s26 = sphi %s4314_s26, %s5658_s26   ;;  %s4260_s25 = sphi %s4312_s25, %s5657_s25   ;;  %s4256_s24 = sphi %s4310_s24, %s5656_s24  }
   0x4   : > { %s4335_s30 = sadd.s32 1, %s4268_s27   ;;  %s179_s8 = sadd.s32 1, %s4264_s26 }
   0x5   : > { %s176_s9 = ssub.s32 %s4268_s27, %s4335_s30  ;;  %p189_p0 = scmp.ne.s32.totalorder %s4264_s26, %s4260_s25 }
   0x6   : > { %p177_p1 = scmp.eq.s32.totalorder %s176_s9, 0  ;;  %p190_p2 = scmp.eq.s32.totalorder %s4331_s28, 1 }
   0x7   : > { %p195_p3 = scmp.ne.s32.totalorder %s4260_s25, %s4256_s24  ;;  %p196_p4 = scmp.eq.s32.totalorder %s3017_s29, 1 }
   0x8   : > { %s4346_s10 = scalar_select %p177_p1, %s4264_s26, %s179_s8  }
   0x9   : > { %p4348_p5 = por %p190_p2, %p189_p0  ;;  %p4352_p6 = por %p196_p4, %p195_p3 }
   0xa   : > { %p3020_p7 = scmp.ge.s32.totalorder %s4268_s27, 1  ;;  %p240_p8 = scmp.lt.s32.totalorder %s4268_s27, 3 }
   0xc   : > { %p241_p9 = pnand %p3020_p7, %p240_p8 }
   0xd   : > { %p271_p10 = scmp.lt.s32.totalorder (!%p241_p9), %s4331_s28, 1  ;;  %s269_s29 = sand.u32 (!%p241_p9), 1, %s4260_s25  }
   0xe   : > { %244 = sbr.rel (%p241_p9) target bundleno = 738 (0x2e2), region = 48  ;;  %s2958_s14 = scalar_lea.hbm (!%p241_p9), %s5653_s7, %s4331_s28 }
   0xf   : > { %s270_s15 = scalar_lea.vmem (!%p241_p9), [#allocation2], %s269_s29  ;;  %s2962_s17 = sshll.u32 (!%p241_p9), %s2958_s14, 4  ;;  %s2963_s17 = int_to_ptr.hbm [resolvable:$true] %s2962_s17 }
  0x10   : > { %s2950_s18 = scalar_lea.sflag (!%p241_p9), [#allocation3], %s269_s29  ;;  %s4220_s19 = sshra.s32 (!%p241_p9), %s2963_s17, 4  ;;  %s4221_s19 = int_to_ptr.hbm [resolvable:$true] %s4220_s19 }
  0x11   : > { %s4222_s20 = scalar_lea.hbm (!%p241_p9), %s4221_s19, 1  ;;  %s4226_s22 = scalar_lea.hbm (!%p241_p9), %s5653_s7, 2 }
  0x12   : > { %p4223_p11 = scmp.ne.s32.totalorder (!%p241_p9), %s4221_s19, %s4222_s20  ;;  %p4227_p0 = scmp.lt.s32.totalorder (!%p241_p9), %s4221_s19, %s5653_s7 }
  0x13   : > { %v3960_v0 = vld [vmem:[%s5647_s1 + $0x38] sm:$0xff]  ;;  %v3959_v3 = vld [vmem:[%s5647_s1 + $0x30] sm:$0xff]  ;;  %s272_s8 = scalar_select %p271_p10, %s4331_s28, 1  ;;  %v3958_v8 = vld [vmem:[%s5647_s1 + $0x28] sm:$0xff]  ;;  %vm286_vm0 = vcmask 1040384   ;;  %vm291_vm1 = vcmask 1041409  }
  0x14   : > { %v3964_v1 = vld [vmem:[%s5647_s1 + $0x58] sm:$0xff]  ;;  %388 = vmatpush.bf16.msra.mxu0 %v3960_v0  ;;  %v3963_v4 = vld [vmem:[%s5647_s1 + $0x50] sm:$0xff]  ;;  %v3962_v9 = vld [vmem:[%s5647_s1 + $0x48] sm:$0xff]  ;;  %vm381_vm2 = vcmask 523264   ;;  %p4224_p12 = pnand %p4223_p11, %p4348_p5  ;;  %p4228_p1 = scmp.lt.s32.totalorder %s4226_s22, %s4222_s20 }
  0x15   : > { %v3956_v2 = vld [vmem:[%s5647_s1 + $0x18] sm:$0xff]  ;;  %550 = vmatpush.bf16.msra.mxu2 %v3964_v1  ;;  %v3955_v6 = vld [vmem:[%s5647_s1 + $0x10] sm:$0xff]  ;;  %s4165_s16 = smul.u32 20, %s272_s8  ;;  %v3954_v10 = vld [vmem:[%s5647_s1 + $0x8] sm:$0xff] }
  0x16   : > { %v3968_v5 = vld [vmem:[%s5647_s1 + $0x78] sm:$0xff]  ;;  %448 = vmatpush.bf16.msra.mxu1 %v3956_v2  ;;  %v3967_v7 = vld [vmem:[%s5647_s1 + $0x70] sm:$0xff]  ;;  %v3957_v17 = vld [vmem:[%s5647_s1 + $0x20] sm:$0xff]  ;;  %p4225_p13 = pneg %p4224_p12  ;;  %p4229_p2 = por %p4228_p1, %p4227_p0 }
  0x17   : > { %660 = vmatpush.bf16.msra.mxu3 %v3968_v5  ;;  %s4396_s9 = scalar_lea.vmem %s5646_s0, %s4165_s16  ;;  %v3961_v18 = vld [vmem:[%s5647_s1 + $0x40] sm:$0xff]  ;;  %v3966_v42 = vld [vmem:[%s5647_s1 + $0x68] sm:$0xff]  ;;  %v3972_v43 = vld [vmem:[%s5647_s1 + $0x98] sm:$0xff]  ;;  %s2960_s16 = sshll.u32 %s270_s15, 4  ;;  %s2961_s16 = int_to_ptr.vmem [resolvable:$true] %s2960_s16 }
  0x18   : > { %389 = vmatpush.bf16.msra.mxu0 %v3959_v3  ;;  %v277_v11 = vld [vmem:[%s4396_s9] sm:$0x3]  ;;  %v278_v12 = vld [vmem:[%s4396_s9 + $0x4] sm:$0x3]  ;;  %v279_v13 = vld [vmem:[%s4396_s9 + $0x8] sm:$0x3]  ;;  %p4230_p3 = pnand %p4229_p2, %p4225_p13 }
  0x19   : > { %551 = vmatpush.bf16.msra.mxu2 %v3963_v4  ;;  %v283_v14 = vrot.slane %v277_v11, 3  ;;  %v284_v15 = vrot.slane %v278_v12, 3  ;;  %v285_v16 = vrot.slane %v279_v13, 3  ;;  %v3953_v22 = vld [vmem:[%s5647_s1] sm:$0xff]  ;;  %v3980_v44 = vld [vmem:[%s5647_s1 + $0xd8] sm:$0xff]  ;;  %v3971_v48 = vld [vmem:[%s5647_s1 + $0x90] sm:$0xff] }
  0x1a   : > { %449 = vmatpush.bf16.msra.mxu1 %v3955_v6  ;;  %v459_v41 = vld [vmem:[%s4396_s9 + $0x4] sm:$0x6]  ;;  %v458_v45 = vld [vmem:[%s4396_s9] sm:$0x6]  ;;  %v3976_v46 = vld [vmem:[%s5647_s1 + $0xb8] sm:$0xff] }
  0x1b   : > { %661 = vmatpush.bf16.msra.mxu3 %v3967_v7  ;;  %v289_v19 = vsel %vm286_vm0, %v277_v11, %v283_v14  ;;  %v292_v20 = vsel %vm291_vm1, %v277_v11, %v283_v14  ;;  %v297_v21 = vsel %vm286_vm0, %v278_v12, %v284_v15  ;;  %v299_v24 = vsel %vm291_vm1, %v278_v12, %v284_v15  ;;  %v3965_v47 = vld [vmem:[%s5647_s1 + $0x60] sm:$0xff]  ;;  %v3979_v50 = vld [vmem:[%s5647_s1 + $0xd0] sm:$0xff]  ;;  %v460_v52 = vld [vmem:[%s4396_s9 + $0x8] sm:$0x6] }
  0x1c   : > { %390 = vmatpush.bf16.msra.mxu0 %v3958_v8  ;;  %v294_v23 = vrot.slane %v292_v20, 1  ;;  %v304_v25 = vsel %vm286_vm0, %v279_v13, %v285_v16  ;;  %v306_v26 = vsel %vm291_vm1, %v279_v13, %v285_v16  ;;  %v301_v27 = vrot.slane %v299_v24, 1  ;;  %v3975_v51 = vld [vmem:[%s5647_s1 + $0xb0] sm:$0xff]  ;;  %v3079_v58 = vld [vmem:[%s4396_s9 + $0x4] sm:$0x3]  ;;  %v3970_v59 = vld [vmem:[%s5647_s1 + $0x88] sm:$0xff] }
  0x1d   : > { %552 = vmatpush.bf16.msra.mxu2 %v3962_v9  ;;  %v308_v28 = vrot.slane %v306_v26, 1  ;;  %v310_v29 = vunpack.i.h.s16 %v289_v19  ;;  %v313_v30 = vunpack.i.h.s16 %v297_v21  ;;  %v316_v31 = vunpack.i.h.s16 %v304_v25  ;;  %v3978_v60 = vld [vmem:[%s5647_s1 + $0xc8] sm:$0xff]  ;;  %v3984_v61 = vld [vmem:[%s5647_s1 + $0xf8] sm:$0xff]  ;;  %v3969_v1 = vld [vmem:[%s5647_s1 + $0x80] sm:$0xff] }
  0x1e   : > { %450 = vmatpush.bf16.msra.mxu1 %v3954_v10  ;;  %v326_v32 = vunpack.i.h.s16 %v294_v23  ;;  %349 = vst [vmem:[#allocation1 + $0x2] ss:$9 sm:$0xff] %v301_v27  ;;  %v3041_v37 = vpack.i.b16 %v297_v21, %v294_v23  ;;  %v3080_v62 = vld [vmem:[%s4396_s9 + $0x8] sm:$0x3]  ;;  %v3977_v2 = vld [vmem:[%s5647_s1 + $0xc0] sm:$0xff]  ;;  %v569_v5 = vrot.slane %v3079_v58, 3 }
  0x1f   : > { %v3022_v33 = vpack.i.b16 %v294_v23, %v310_v29  ;;  %v328_v34 = vunpack.i.h.s16 %v308_v28  ;;  %v3023_v36 = vpack.i.b16 %v308_v28, %v316_v31  ;;  %v3042_v38 = vpack.i.b16 %v301_v27, %v313_v30  ;;  %662 = vmatpush.bf16.msra.mxu3 %v3966_v42  ;;  %v3974_v63 = vld [vmem:[%s5647_s1 + $0xa8] sm:$0xff]  ;;  %v3983_v6 = vld [vmem:[%s5647_s1 + $0xf0] sm:$0xff]  ;;  %v3973_v7 = vld [vmem:[%s5647_s1 + $0xa0] sm:$0xff] }
  0x20   : > { %391 = vmatpush.bf16.msra.mxu0 %v3957_v17  ;;  %v338_v35 = vpack.i.b16 %v313_v30, %v326_v32  ;;  %v317_v40 = vunpack.i.l.s16 %v308_v28  ;;  %v3081_v4 = vld [vmem:[%s4396_s9 + $0xc] sm:$0x3]  ;;  %v570_v10 = vrot.slane %v3080_v62, 3  ;;  %v576_v13 = vsel %vm291_vm1, %v3079_v58, %v569_v5  ;;  %v3101_v16 = vld [vmem:[%s4396_s9 + $0x4] sm:$0x3] }
  0x21   : > { %553 = vmatpush.bf16.msra.mxu2 %v3961_v18  ;;  %343 = vst [vmem:[#allocation1] ss:$9 sm:$0xff] %v3022_v33  ;;  %v571_v12 = vrot.slane %v3081_v4, 3  ;;  %v578_v17 = vrot.slane %v576_v13, 1  ;;  %v3103_v21 = vld [vmem:[%s4396_s9 + $0xc] sm:$0x3] }
  0x22   : > { %451 = vmatpush.bf16.msra.mxu1 %v3953_v22  ;;  %346 = vst [vmem:[#allocation1 + $0x1] ss:$9 sm:$0xff] %v338_v35  ;;  %v581_v14 = vsel %vm286_vm0, %v3080_v62, %v570_v10  ;;  %v583_v15 = vsel %vm291_vm1, %v3080_v62, %v570_v10  ;;  %v678_v22 = vrot.slane %v3101_v16, 3  ;;  %v3102_v24 = vld [vmem:[%s4396_s9 + $0x8] sm:$0x3]  ;;  %v680_v28 = vrot.slane %v3103_v21, 3 }
  0x23   : > { %352 = vst [vmem:[#allocation1 + $0x3] ss:$9 sm:$0xff] %v3023_v36  ;;  %663 = vmatpush.bf16.msra.mxu3 %v3965_v47  ;;  %v590_v18 = vsel %vm291_vm1, %v3081_v4, %v571_v12  ;;  %v597_v20 = vunpack.i.h.s16 %v581_v14  ;;  %v3082_v26 = vpack.i.b16 %v581_v14, %v578_v17  ;;  %v679_v30 = vrot.slane %v3102_v24, 3  ;;  %v3145_v62 = vld [vmem:[%s4396_s9 + $0x8] sm:$0x3] }
  0x24   : > { %355 = vst [vmem:[#allocation1 + $0x4] ss:$9 sm:$0xff] %v328_v34  ;;  %769 = vmatpush.bf16.msrb.mxu0 %v3972_v43  ;;  %v592_v23 = vrot.slane %v590_v18, 1  ;;  %v685_v31 = vsel %vm291_vm1, %v3101_v16, %v678_v22  ;;  %v588_v32 = vsel %vm286_vm0, %v3081_v4, %v571_v12  ;;  %v697_v35 = vsel %vm286_vm0, %v3103_v21, %v680_v28  ;;  %v3167_v10 = vld [vmem:[%s4396_s9 + $0x8] sm:$0x3] }
  0x25   : > { %983 = vmatpush.bf16.msrb.mxu2 %v3980_v44  ;;  %v687_v34 = vrot.slane %v685_v31, 1  ;;  %v699_v36 = vsel %vm291_vm1, %v3103_v21, %v680_v28  ;;  %v3168_v18 = vld [vmem:[%s4396_s9 + $0xc] sm:$0x3] }
  0x26   : > { %873 = vmatpush.bf16.msrb.mxu1 %v3976_v46  ;;  %v601_v33 = vunpack.i.l.s16 %v592_v23 }
  0x27   : > { %1092 = vmatpush.bf16.msrb.mxu3 %v3984_v61  ;;  %v704_v42 = vunpack.i.h.s16 %v687_v34 }
  0x28   : > { %770 = vmatpush.bf16.msrb.mxu0 %v3971_v48 }
  0x29   : > { %984 = vmatpush.bf16.msrb.mxu2 %v3979_v50 }
  0x2a   : > { %874 = vmatpush.bf16.msrb.mxu1 %v3975_v51  ;;  %v3124_v51 = vld [vmem:[%s4396_s9 + $0x8] sm:$0x6] }
  0x2b   : > { %v356_v39 = vld [vmem:[#allocation1] sm:$0xff]  ;;  %1093 = vmatpush.bf16.msrb.mxu3 %v3983_v6 }
  0x2c   : > { %3040 = vmatmul.msk.bf16.vlgmr.msra.gmra.mxu0 %vm381_vm2, %v356_v39  ;;  %404 = vst [vmem:[#allocation1] ss:$9 sm:$0xff] %v289_v19  ;;  %v585_v19 = vrot.slane %v583_v15, 1  ;;  %v701_v39 = vrot.slane %v699_v36, 1  ;;  %v1001_v15 = vrot.slane %v3167_v10, 3 }
  0x2d   : > { %407 = vst [vmem:[#allocation1 + $0x1] ss:$9 sm:$0xff] %v3041_v37  ;;  %771 = vmatpush.bf16.msrb.mxu0 %v3970_v59  ;;  %985 = vmatpush.bf16.msrb.mxu2 %v3978_v60  ;;  %v690_v37 = vsel %vm286_vm0, %v3102_v24, %v679_v30  ;;  %v3981_v59 = vld [vmem:[%s5647_s1 + $0xe0] sm:$0xff] }
  0x2e   : > { %410 = vst [vmem:[#allocation1 + $0x2] ss:$9 sm:$0xff] %v3042_v38  ;;  %875 = vmatpush.bf16.msrb.mxu1 %v3974_v63  ;;  %v3083_v27 = vpack.i.b16 %v585_v19, %v597_v20  ;;  %v692_v38 = vsel %vm291_vm1, %v3102_v24, %v679_v30  ;;  %v705_v43 = vunpack.i.h.s16 %v690_v37  ;;  %v3146_v63 = vld [vmem:[%s4396_s9 + $0xc] sm:$0x3]  ;;  %v1008_v23 = vsel %vm291_vm1, %v3167_v10, %v1001_v15  ;;  %v3988_v30 = vld [vmem:[%s5647_s1 + $0x118] sm:$0xff] }
  0x2f   : > { %413 = vst [vmem:[#allocation1 + $0x3] ss:$9 sm:$0xff] %v304_v25  ;;  %v574_v25 = vsel %vm286_vm0, %v3079_v58, %v569_v5  ;;  %v694_v44 = vrot.slane %v692_v38, 1  ;;  %v3982_v58 = vld [vmem:[%s5647_s1 + $0xe8] sm:$0xff]  ;;  %v893_v6 = vrot.slane %v3146_v63, 3  ;;  %v1006_v31 = vsel %vm286_vm0, %v3167_v10, %v1001_v15 }
  0x30   : > { %416 = vst [vmem:[#allocation1 + $0x4] ss:$9 sm:$0xff] %v317_v40  ;;  %v708_v40 = vunpack.i.h.s16 %v697_v35  ;;  %v720_v47 = vpack.i.b16 %v705_v43, %v704_v42  ;;  %1094 = vmatpush.bf16.msrb.mxu3 %v3982_v58  ;;  %v1025_v35 = vunpack.i.h.s16 %v1006_v31  ;;  %v3253_v31 = vld [vmem:[%s5649_s3 + $0xc8] sm:$0xf] }
  0x31   : > { %470 = vst [vmem:[#allocation1 + $0x20] sm:$0xff] %v459_v41  ;;  %772 = vmatpush.bf16.msrb.mxu0 %v3969_v1  ;;  %986 = vmatpush.bf16.msrb.mxu2 %v3977_v2  ;;  %v683_v41 = vsel %vm286_vm0, %v3101_v16, %v678_v22  ;;  %v3147_v2 = vld [vmem:[%s4396_s9 + $0x10] sm:$0x3]  ;;  %v906_v12 = vsel %vm291_vm1, %v3146_v63, %v893_v6 }
  0x32   : > { %876 = vmatpush.bf16.msrb.mxu1 %v3973_v7  ;;  %v3105_v46 = vpack.i.b16 %v701_v39, %v708_v40  ;;  %v908_v16 = vrot.slane %v906_v12, 1  ;;  %v3169_v22 = vld [vmem:[%s4396_s9 + $0x10] sm:$0x3]  ;;  %v3986_v40 = vld [vmem:[%s5647_s1 + $0x108] sm:$0xff] }
  0x34   : > { %1095 = vmatpush.bf16.msrb.mxu3 %v3981_v59 }
  0x35   : > { %1196 = vmatpush.bf16.msra.mxu0 %v3988_v30 }
  0x37   : > { %v417_v49 = vld [vmem:[#allocation1] sm:$0xff] }
  0x38   : > { %462 = vst [vmem:[#allocation1] sm:$0xff] %v458_v45  ;;  %3059 = vmatmul.msk.bf16.vlgmr.msra.gmra.mxu1 %vm381_vm2, %v417_v49  ;;  %v472_v55 = vld [vmem:[#allocation1 + $0x21] ss:$4 sm:$0xff]  ;;  %v475_v56 = vld [vmem:[#allocation1 + $0x22] ss:$4 sm:$0xff]  ;;  %v702_v45 = vunpack.i.h.s16 %v683_v41  ;;  %v710_v49 = vunpack.i.h.s16 %v701_v39 }
  0x39   : > { %v487_v57 = vunpack.i.h.s16 %v472_v55 }
  0x3a   : > { %v3104_v50 = vpack.i.b16 %v687_v34, %v702_v45  ;;  %v3987_v34 = vld [vmem:[%s5647_s1 + $0x110] sm:$0xff] }
  0x3b   : > { %v3061_v3 = vpack.i.b16 %v475_v56, %v487_v57  ;;  %1197 = vmatpush.bf16.msra.mxu0 %v3987_v34 }
  0x3f   : > { %v464_v53 = vld [vmem:[#allocation1 + $0x1] ss:$4 sm:$0xff]  ;;  %v467_v54 = vld [vmem:[#allocation1 + $0x2] ss:$4 sm:$0xff]  ;;  %1198 = vmatpush.bf16.msra.mxu0 %v3986_v40 }
  0x40   : > { %478 = vst [vmem:[#allocation1] sm:$0xff] %v460_v52  ;;  %v3060_v0 = vpack.i.b16 %v472_v55, %v467_v54  ;;  %v3123_v52 = vld [vmem:[%s4396_s9 + $0x4] sm:$0x6]  ;;  %v3125_v54 = vld [vmem:[%s4396_s9 + $0xc] sm:$0x6] }
  0x41   : > { %v4009_v40 = vld [vmem:[%s5649_s3 + $0xa4] sm:$0xf] }
  0x47   : > { %v479_v8 = vld [vmem:[#allocation1 + $0x1] ss:$4 sm:$0xff]  ;;  %v481_v9 = vld [vmem:[#allocation1 + $0x2] ss:$4 sm:$0xff] }
  0x48   : > { %v491_v11 = vunpack.i.l.s16 %v481_v9  ;;  %506 = vst [vmem:[#allocation1] ss:$9 sm:$0xff] %v464_v53 }
  0x49   : > { %509 = vst [vmem:[#allocation1 + $0x1] ss:$9 sm:$0xff] %v3060_v0 }
  0x4a   : > { %512 = vst [vmem:[#allocation1 + $0x2] ss:$9 sm:$0xff] %v3061_v3  ;;  %v892_v3 = vrot.slane %v3145_v62, 3 }
  0x4b   : > { %515 = vst [vmem:[#allocation1 + $0x3] ss:$9 sm:$0xff] %v479_v8  ;;  %v894_v8 = vrot.slane %v3147_v2, 3 }
  0x4c   : > { %518 = vst [vmem:[#allocation1 + $0x4] ss:$9 sm:$0xff] %v491_v11  ;;  %v899_v9 = vsel %vm291_vm1, %v3145_v62, %v892_v3  ;;  %v904_v11 = vsel %vm286_vm0, %v3146_v63, %v893_v6  ;;  %v897_v20 = vsel %vm286_vm0, %v3145_v62, %v892_v3 }
  0x4d   : > { %v901_v13 = vrot.slane %v899_v9, 1  ;;  %v913_v14 = vsel %vm291_vm1, %v3147_v2, %v894_v8  ;;  %v920_v17 = vunpack.i.h.s16 %v904_v11 }
  0x4e   : > { %v915_v19 = vrot.slane %v913_v14, 1 }
  0x4f   : > { %v3148_v21 = vpack.i.b16 %v904_v11, %v901_v13  ;;  %v3149_v24 = vpack.i.b16 %v908_v16, %v920_v17  ;;  %v4017_v16 = vld [vmem:[%s5649_s3 + $0xe4] sm:$0xf]  ;;  %v3263_v17 = vld [vmem:[%s5649_s3 + $0xf0] sm:$0xf0] }
  0x50   : > { %v924_v28 = vunpack.i.l.s16 %v915_v19  ;;  %v3266_v19 = vor.u32 %v4017_v16, %v3263_v17  ;;  %v3997_v16 = vld [vmem:[%s5649_s3 + $0x44] sm:$0xf] }
  0x53   : > { %v519_v29 = vld [vmem:[#allocation1] sm:$0xff] }
  0x54   : > { %3078 = vmatmul.msk.bf16.vlgmr.msra.gmra.mxu2 %vm381_vm2, %v519_v29  ;;  %616 = vst [vmem:[#allocation1] ss:$9 sm:$0xff] %v574_v25  ;;  %v1002_v25 = vrot.slane %v3168_v18, 3  ;;  %v1003_v29 = vrot.slane %v3169_v22, 3 }
  0x55   : > { %619 = vst [vmem:[#allocation1 + $0x1] ss:$9 sm:$0xff] %v3082_v26  ;;  %1356 = vmatpush.bf16.msra.mxu2 %v3266_v19  ;;  %v3321_v19 = vld [vmem:[%s5649_s3 + $0x48] sm:$0xf] }
  0x56   : > { %622 = vst [vmem:[#allocation1 + $0x2] ss:$9 sm:$0xff] %v3083_v27  ;;  %v911_v27 = vsel %vm286_vm0, %v3147_v2, %v894_v8  ;;  %v1020_v36 = vsel %vm286_vm0, %v3169_v22, %v1003_v29  ;;  %v1022_v37 = vsel %vm291_vm1, %v3169_v22, %v1003_v29  ;;  %v1015_v41 = vsel %vm291_vm1, %v3168_v18, %v1002_v25  ;;  %v3261_v22 = vld [vmem:[%s5649_s3 + $0xe0] sm:$0xf]  ;;  %v3247_v29 = vld [vmem:[%s5649_s3 + $0xd0] sm:$0xf0] }
  0x57   : > { %625 = vst [vmem:[#allocation1 + $0x3] ss:$9 sm:$0xff] %v588_v32  ;;  %v1010_v32 = vrot.slane %v1008_v23, 1  ;;  %v1024_v42 = vrot.slane %v1022_v37, 1  ;;  %v1031_v43 = vunpack.i.h.s16 %v1020_v36  ;;  %v4019_v23 = vld [vmem:[%s5649_s3 + $0xec] sm:$0xf0] }
  0x58   : > { %628 = vst [vmem:[#allocation1 + $0x4] ss:$9 sm:$0xff] %v601_v33  ;;  %v1013_v33 = vsel %vm286_vm0, %v3168_v18, %v1002_v25  ;;  %v3269_v18 = vld [vmem:[%s5649_s3 + $0xe8] sm:$0xf]  ;;  %v3262_v25 = vor.u32 %v4019_v23, %v3261_v22  ;;  %v4014_v36 = vld [vmem:[%s5649_s3 + $0xcc] sm:$0xf] }
  0x59   : > { %v1027_v38 = vunpack.i.h.s16 %v1010_v32  ;;  %v1028_v39 = vunpack.i.h.s16 %v1013_v33  ;;  %v3245_v33 = vld [vmem:[%s5649_s3 + $0xc0] sm:$0xf]  ;;  %v3255_v37 = vld [vmem:[%s5649_s3 + $0xd8] sm:$0xf0] }
  0x5a   : > { %1343 = vmatpush.bf16.msra.mxu1 %v3262_v25  ;;  %v3313_v23 = vld [vmem:[%s5649_s3 + $0x40] sm:$0xf]  ;;  %v3998_v25 = vld [vmem:[%s5649_s3 + $0x4c] sm:$0xf] }
  0x5b   : > { %v1043_v45 = vpack.i.b16 %v1028_v39, %v1027_v38  ;;  %v3258_v39 = vor.u32 %v4014_v36, %v3255_v37  ;;  %v3994_v36 = vld [vmem:[%s5649_s3 + $0x2c] sm:$0xf]  ;;  %v3307_v37 = vld [vmem:[%s5649_s3 + $0x38] sm:$0xf0] }
  0x5f   : > { %v629_v48 = vld [vmem:[#allocation1] sm:$0xff] }
  0x60   : > { %3100 = vmatmul.msk.bf16.vlgmr.msra.gmra.mxu3 %vm381_vm2, %v629_v48  ;;  %731 = vst [vmem:[#allocation1 + $0x2] ss:$9 sm:$0xff] %v694_v44  ;;  %v3170_v44 = vpack.i.b16 %v1010_v32, %v1025_v35  ;;  %v4016_v32 = vld [vmem:[%s5649_s3 + $0xd4] sm:$0xf0]  ;;  %v4015_v35 = vld [vmem:[%s5649_s3 + $0xcc] sm:$0xf0] }
  0x61   : > { %734 = vst [vmem:[#allocation1 + $0x3] ss:$9 sm:$0xff] %v3105_v46  ;;  %v1017_v46 = vrot.slane %v1015_v41, 1  ;;  %v3254_v34 = vor.u32 %v4016_v32, %v3253_v31  ;;  %v3246_v38 = vor.u32 %v4015_v35, %v3245_v33  ;;  %v3231_v41 = vld [vmem:[%s5649_s3 + $0xb0] sm:$0xf0] }
  0x62   : > { %728 = vst [vmem:[#allocation1 + $0x1] ss:$9 sm:$0xff] %v720_v47  ;;  %v3985_v47 = vld [vmem:[%s5647_s1 + $0x100] sm:$0xff]  ;;  %v3305_v32 = vld [vmem:[%s5649_s3 + $0x28] sm:$0xf] }
  0x63   : > { %737 = vst [vmem:[#allocation1 + $0x4] ss:$9 sm:$0xff] %v710_v49  ;;  %v3171_v49 = vpack.i.b16 %v1024_v42, %v1031_v43  ;;  %1199 = vmatpush.bf16.msra.mxu0 %v3985_v47  ;;  %1344 = vmatpush.bf16.msra.mxu1 %v3246_v38  ;;  %v3234_v43 = vor.u32 %v4009_v40, %v3231_v41  ;;  %v3297_v33 = vld [vmem:[%s5649_s3 + $0x20] sm:$0xf]  ;;  %v3995_v35 = vld [vmem:[%s5649_s3 + $0x2c] sm:$0xf0] }
  0x64   : > { %725 = vst [vmem:[#allocation1] ss:$9 sm:$0xff] %v3104_v50  ;;  %v1033_v50 = vunpack.i.h.s16 %v1024_v42  ;;  %v3237_v42 = vld [vmem:[%s5649_s3 + $0xa8] sm:$0xf]  ;;  %v3298_v40 = vor.u32 %v3995_v35, %v3297_v33  ;;  %v3989_v41 = vld [vmem:[%s5649_s3 + $0x4] sm:$0xf] }
  0x65   : > { %793 = vst [vmem:[#allocation1 + $0x20] sm:$0xff] %v3124_v51  ;;  %v3190_v51 = vld [vmem:[%s4396_s9 + $0xc] sm:$0x6]  ;;  %v4025_v35 = vld [vmem:[%s5649_s3 + $0x124] sm:$0xf] }
  0x6b   : > { %v738_v53 = vld [vmem:[#allocation1] sm:$0xff] }
  0x6c   : > { %3122 = vmatmul.msk.bf16.vlgmr.msrb.gmra.mxu0 %vm381_vm2, %v738_v53  ;;  %785 = vst [vmem:[#allocation1] sm:$0xff] %v3123_v52  ;;  %v795_v55 = vld [vmem:[#allocation1 + $0x21] ss:$4 sm:$0xff]  ;;  %v798_v61 = vld [vmem:[#allocation1 + $0x22] ss:$4 sm:$0xff] }
  0x6d   : > { %v810_v60 = vunpack.i.h.s16 %v795_v55  ;;  %v3189_v52 = vld [vmem:[%s4396_s9 + $0x8] sm:$0x6] }
  0x6f   : > { %v3127_v1 = vpack.i.b16 %v798_v61, %v810_v60 }
  0x73   : > { %v787_v56 = vld [vmem:[#allocation1 + $0x1] ss:$4 sm:$0xff]  ;;  %v790_v57 = vld [vmem:[#allocation1 + $0x2] ss:$4 sm:$0xff] }
  0x74   : > { %801 = vst [vmem:[#allocation1] sm:$0xff] %v3125_v54  ;;  %v3126_v0 = vpack.i.b16 %v795_v55, %v790_v57  ;;  %v3191_v54 = vld [vmem:[%s4396_s9 + $0x10] sm:$0x6] }
  0x7b   : > { %v802_v4 = vld [vmem:[#allocation1 + $0x1] ss:$4 sm:$0xff]  ;;  %v804_v5 = vld [vmem:[#allocation1 + $0x2] ss:$4 sm:$0xff] }
  0x7c   : > { %v814_v7 = vunpack.i.l.s16 %v804_v5  ;;  %829 = vst [vmem:[#allocation1] ss:$9 sm:$0xff] %v787_v56 }
  0x7d   : > { %832 = vst [vmem:[#allocation1 + $0x1] ss:$9 sm:$0xff] %v3126_v0 }
  0x7e   : > { %835 = vst [vmem:[#allocation1 + $0x2] ss:$9 sm:$0xff] %v3127_v1 }
  0x7f   : > { %838 = vst [vmem:[#allocation1 + $0x3] ss:$9 sm:$0xff] %v802_v4 }
  0x80   : > { %841 = vst [vmem:[#allocation1 + $0x4] ss:$9 sm:$0xff] %v814_v7 }
  0x87   : > { %v842_v26 = vld [vmem:[#allocation1] sm:$0xff] }
  0x88   : > { %939 = vst [vmem:[#allocation1] ss:$9 sm:$0xff] %v897_v20  ;;  %3144 = vmatmul.msk.bf16.vlgmr.msrb.gmra.mxu1 %vm381_vm2, %v842_v26  ;;  %v4020_v20 = vld [vmem:[%s5649_s3 + $0xf4] sm:$0xf0]  ;;  %v3271_v26 = vld [vmem:[%s5649_s3 + $0xf8] sm:$0xf0] }
  0x89   : > { %942 = vst [vmem:[#allocation1 + $0x1] ss:$9 sm:$0xff] %v3148_v21  ;;  %v3270_v21 = vor.u32 %v4020_v20, %v3269_v18  ;;  %v3315_v18 = vld [vmem:[%s5649_s3 + $0x50] sm:$0xf0]  ;;  %v4000_v20 = vld [vmem:[%s5649_s3 + $0x54] sm:$0xf0] }
  0x8a   : > { %945 = vst [vmem:[#allocation1 + $0x2] ss:$9 sm:$0xff] %v3149_v24  ;;  %v4018_v24 = vld [vmem:[%s5649_s3 + $0xec] sm:$0xf]  ;;  %v3322_v22 = vor.u32 %v4000_v20, %v3321_v19  ;;  %v3407_v20 = vld [vmem:[%s5649_s3 + $0x178] sm:$0xf0] }
  0x8b   : > { %948 = vst [vmem:[#allocation1 + $0x3] ss:$9 sm:$0xff] %v911_v27  ;;  %1369 = vmatpush.bf16.msra.mxu3 %v3270_v21  ;;  %v3274_v27 = vor.u32 %v4018_v24, %v3271_v26  ;;  %v3318_v21 = vor.u32 %v3997_v16, %v3315_v18  ;;  %v3999_v24 = vld [vmem:[%s5649_s3 + $0x4c] sm:$0xf0]  ;;  %v4034_v19 = vld [vmem:[%s5649_s3 + $0x16c] sm:$0xf] }
  0x8c   : > { %951 = vst [vmem:[#allocation1 + $0x4] ss:$9 sm:$0xff] %v924_v28  ;;  %v4013_v28 = vld [vmem:[%s5649_s3 + $0xc4] sm:$0xf]  ;;  %v4035_v18 = vld [vmem:[%s5649_s3 + $0x16c] sm:$0xf0] }
  0x8d   : > { %1382 = vmatpush.bf16.msrb.mxu0 %v3274_v27  ;;  %v3250_v30 = vor.u32 %v4013_v28, %v3247_v29  ;;  %v3314_v27 = vor.u32 %v3999_v24, %v3313_v23  ;;  %v3323_v28 = vld [vmem:[%s5649_s3 + $0x58] sm:$0xf0]  ;;  %v3993_v29 = vld [vmem:[%s5649_s3 + $0x24] sm:$0xf] }
  0x8e   : > { %v3326_v31 = vor.u32 %v3998_v25, %v3323_v28  ;;  %v4029_v24 = vld [vmem:[%s5649_s3 + $0x144] sm:$0xf]  ;;  %v3383_v25 = vld [vmem:[%s5649_s3 + $0x150] sm:$0xf0]  ;;  %v3389_v28 = vld [vmem:[%s5649_s3 + $0x148] sm:$0xf] }
  0x8f   : > { %1357 = vmatpush.bf16.msra.mxu2 %v3250_v30  ;;  %1370 = vmatpush.bf16.msra.mxu3 %v3254_v34  ;;  %v3299_v30 = vld [vmem:[%s5649_s3 + $0x30] sm:$0xf0]  ;;  %v3386_v33 = vor.u32 %v4029_v24, %v3383_v25  ;;  %v4041_v24 = vld [vmem:[%s5649_s3 + $0x1a4] sm:$0xf] }
  0x90   : > { %v3302_v34 = vor.u32 %v3993_v29, %v3299_v30  ;;  %v4032_v29 = vld [vmem:[%s5649_s3 + $0x154] sm:$0xf0]  ;;  %v3381_v30 = vld [vmem:[%s5649_s3 + $0x140] sm:$0xf]  ;;  %v3435_v25 = vld [vmem:[%s5649_s3 + $0x1b0] sm:$0xf0] }
  0x91   : > { %1383 = vmatpush.bf16.msrb.mxu0 %v3258_v39 }
  0x93   : > { %v952_v48 = vld [vmem:[#allocation1] sm:$0xff]  ;;  %1358 = vmatpush.bf16.msra.mxu2 %v3234_v43  ;;  %v3289_v43 = vld [vmem:[%s5649_s3 + $0x8] sm:$0xf] }
  0x94   : > { %3166 = vmatmul.msk.bf16.vlgmr.msrb.gmra.mxu2 %vm381_vm2, %v952_v48  ;;  %1048 = vst [vmem:[#allocation1] ss:$9 sm:$0xff] %v3170_v44  ;;  %v4012_v44 = vld [vmem:[%s5649_s3 + $0xb4] sm:$0xf0] }
  0x95   : > { %1051 = vst [vmem:[#allocation1 + $0x1] ss:$9 sm:$0xff] %v1043_v45  ;;  %v3229_v45 = vld [vmem:[%s5649_s3 + $0xa0] sm:$0xf]  ;;  %v3238_v48 = vor.u32 %v4012_v44, %v3237_v42  ;;  %v3283_v42 = vld [vmem:[%s5649_s3 + $0x10] sm:$0xf0] }
  0x96   : > { %1054 = vst [vmem:[#allocation1 + $0x2] ss:$9 sm:$0xff] %v1017_v46  ;;  %v4011_v46 = vld [vmem:[%s5649_s3 + $0xac] sm:$0xf0] }
  0x97   : > { %1057 = vst [vmem:[#allocation1 + $0x3] ss:$9 sm:$0xff] %v3171_v49  ;;  %v3230_v49 = vor.u32 %v4011_v46, %v3229_v45  ;;  %1371 = vmatpush.bf16.msra.mxu3 %v3238_v48  ;;  %v3310_v45 = vor.u32 %v3994_v36, %v3307_v37  ;;  %v3992_v46 = vld [vmem:[%s5649_s3 + $0x14] sm:$0xf0]  ;;  %v3991_v48 = vld [vmem:[%s5649_s3 + $0xc] sm:$0xf0] }
  0x98   : > { %1060 = vst [vmem:[#allocation1 + $0x4] ss:$9 sm:$0xff] %v1033_v50  ;;  %v4010_v50 = vld [vmem:[%s5649_s3 + $0xac] sm:$0xf]  ;;  %v3367_v36 = vld [vmem:[%s5649_s3 + $0x130] sm:$0xf0] }
  0x99   : > { %1116 = vst [vmem:[#allocation1 + $0x20] sm:$0xff] %v3190_v51  ;;  %v3239_v51 = vld [vmem:[%s5649_s3 + $0xb8] sm:$0xf0]  ;;  %1345 = vmatpush.bf16.msra.mxu1 %v3230_v49 }
  0x9f   : > { %v1061_v53 = vld [vmem:[#allocation1] sm:$0xff] }
  0xa0   : > { %3188 = vmatmul.msk.bf16.vlgmr.msrb.gmra.mxu3 %vm381_vm2, %v1061_v53  ;;  %1108 = vst [vmem:[#allocation1] sm:$0xff] %v3189_v52  ;;  %v1118_v57 = vld [vmem:[#allocation1 + $0x21] ss:$4 sm:$0xff]  ;;  %v1121_v59 = vld [vmem:[#allocation1 + $0x22] ss:$4 sm:$0xff]  ;;  %v3242_v52 = vor.u32 %v4010_v50, %v3239_v51 }
  0xa1   : > { %v1133_v58 = vunpack.i.h.s16 %v1118_v57  ;;  %v4005_v53 = vld [vmem:[%s5649_s3 + $0x84] sm:$0xf]  ;;  %v3990_v50 = vld [vmem:[%s5649_s3 + $0xc] sm:$0xf]  ;;  %v3291_v51 = vld [vmem:[%s5649_s3 + $0x18] sm:$0xf0] }
  0xa2   : > { %1384 = vmatpush.bf16.msrb.mxu0 %v3242_v52  ;;  %v3286_v52 = vor.u32 %v3989_v41, %v3283_v42  ;;  %v3365_v41 = vld [vmem:[%s5649_s3 + $0x120] sm:$0xf]  ;;  %v4027_v42 = vld [vmem:[%s5649_s3 + $0x12c] sm:$0xf0] }
  0xa3   : > { %v3193_v61 = vpack.i.b16 %v1121_v59, %v1133_v58  ;;  %v3213_v58 = vld [vmem:[%s5649_s3 + $0x80] sm:$0xf]  ;;  %v4007_v59 = vld [vmem:[%s5649_s3 + $0x8c] sm:$0xf0] }
  0xa7   : > { %v1110_v55 = vld [vmem:[#allocation1 + $0x1] ss:$4 sm:$0xff]  ;;  %v1113_v56 = vld [vmem:[#allocation1 + $0x2] ss:$4 sm:$0xff] }
  0xa8   : > { %1124 = vst [vmem:[#allocation1] sm:$0xff] %v3191_v54  ;;  %v3192_v60 = vpack.i.b16 %v1118_v57, %v1113_v56  ;;  %v3215_v54 = vld [vmem:[%s5649_s3 + $0x90] sm:$0xf0]  ;;  %v4008_v57 = vld [vmem:[%s5649_s3 + $0x94] sm:$0xf0] }
  0xa9   : > { %v393_v2 = vpop.f32.mrf.mxu0  ;;  %v3218_v56 = vor.u32 %v4005_v53, %v3215_v54  ;;  %v3290_v54 = vor.u32 %v3992_v46, %v3289_v43  ;;  %v4026_v43 = vld [vmem:[%s5649_s3 + $0x12c] sm:$0xf] }
  0xab   : > { %1359 = vmatpush.bf16.msra.mxu2 %v3218_v56 }
  0xaf   : > { %v1125_v62 = vld [vmem:[#allocation1 + $0x1] ss:$4 sm:$0xff]  ;;  %v1127_v63 = vld [vmem:[#allocation1 + $0x2] ss:$4 sm:$0xff] }
  0xb0   : > { %v1137_v0 = vunpack.i.l.s16 %v1127_v63  ;;  %1152 = vst [vmem:[#allocation1] ss:$9 sm:$0xff] %v1110_v55  ;;  %v3221_v55 = vld [vmem:[%s5649_s3 + $0x88] sm:$0xf]  ;;  %v4006_v63 = vld [vmem:[%s5649_s3 + $0x8c] sm:$0xf] }
  0xb1   : > { %1155 = vst [vmem:[#allocation1 + $0x1] ss:$9 sm:$0xff] %v3192_v60  ;;  %v395_v5 = vpop.f32.mrf.mxu0 }
  0xb2   : > { %1158 = vst [vmem:[#allocation1 + $0x2] ss:$9 sm:$0xff] %v3193_v61  ;;  %v3222_v61 = vor.u32 %v4008_v57, %v3221_v55  ;;  %v3294_v57 = vor.u32 %v3990_v50, %v3291_v51  ;;  %v3357_v51 = vld [vmem:[%s5649_s3 + $0x108] sm:$0xf] }
  0xb3   : > { %1161 = vst [vmem:[#allocation1 + $0x3] ss:$9 sm:$0xff] %v1125_v62  ;;  %v3214_v62 = vor.u32 %v4007_v59, %v3213_v58  ;;  %v4205_v59 = vld [vmem:[%s5648_s2] ss:$0 sm:$0xff] }
  0xb4   : > { %1164 = vst [vmem:[#allocation1 + $0x4] ss:$9 sm:$0xff] %v1137_v0  ;;  %v3223_v0 = vld [vmem:[%s5649_s3 + $0x98] sm:$0xf0]  ;;  %1372 = vmatpush.bf16.msra.mxu3 %v3222_v61 }
  0xb5   : > { %v453_v3 = vpop.f32.mrf.mxu1  ;;  %1346 = vmatpush.bf16.msra.mxu1 %v3214_v62 }
  0xb6   : > { %v454_v47 = vadd.f32 %v453_v3, %v393_v2  ;;  %v4001_v2 = vld [vmem:[%s5649_s3 + $0x64] sm:$0xf]  ;;  %v3331_v3 = vld [vmem:[%s5649_s3 + $0x70] sm:$0xf0] }
  0xbb   : > { %v1165_v1 = vld [vmem:[#allocation1] sm:$0xff] }
  0xbc   : > { %3210 = vmatmul.msk.bf16.vlgmr.msra.gmra.mxu0 %vm381_vm2, %v1165_v1  ;;  %v3226_v1 = vor.u32 %v4006_v63, %v3223_v0 }
  0xbd   : > { %v455_v6 = vpop.f32.mrf.mxu1 }
  0xbe   : > { %v456_v8 = vadd.f32 %v455_v6, %v395_v5  ;;  %1385 = vmatpush.bf16.msrb.mxu0 %v3226_v1  ;;  %v3334_v6 = vor.u32 %v4001_v2, %v3331_v3 }
  0xc0   : > { %1491 = vmatpush.bf16.msrb.mxu2 %v3334_v6 }
  0xc4   : > { %1492 = vmatpush.bf16.msrb.mxu2 %v3318_v21 }
  0xc8   : > { %1493 = vmatpush.bf16.msrb.mxu2 %v3302_v34  ;;  %v3390_v34 = vor.u32 %v4032_v29, %v3389_v28  ;;  %v4044_v28 = vld [vmem:[%s5649_s3 + $0x1b4] sm:$0xf0]  ;;  %v3433_v29 = vld [vmem:[%s5649_s3 + $0x1a0] sm:$0xf] }
  0xcc   : > { %1494 = vmatpush.bf16.msrb.mxu2 %v3286_v52  ;;  %v4024_v52 = vld [vmem:[%s5649_s3 + $0x114] sm:$0xf0] }
  0xd7   : > { %v4536_v4 = vpop.f32.mrf.mxu2 }
  0xd8   : > { %v560_v60 = vadd.f32 %v4536_v4, %v454_v47  ;;  %v3337_v4 = vld [vmem:[%s5649_s3 + $0x68] sm:$0xf]  ;;  %v3281_v47 = vld [vmem:[%s5649_s3] sm:$0xf] }
  0xd9   : > { %v3282_v55 = vor.u32 %v3991_v48, %v3281_v47  ;;  %v4021_v47 = vld [vmem:[%s5649_s3 + $0x104] sm:$0xf]  ;;  %v3351_v48 = vld [vmem:[%s5649_s3 + $0x110] sm:$0xf0] }
  0xdf   : > { %v557_v9 = vpop.f32.mrf.mxu2 }
  0xe0   : > { %v561_v10 = vadd.f32 %v557_v9, %v456_v8  ;;  %v4004_v8 = vld [vmem:[%s5649_s3 + $0x74] sm:$0xf0]  ;;  %v3329_v9 = vld [vmem:[%s5649_s3 + $0x60] sm:$0xf] }
  0xe3   : > { %v4538_v7 = vpop.f32.mrf.mxu3 }
  0xe4   : > { %v670_v5 = vadd.f32 %v4538_v7, %v560_v60  ;;  %v3339_v7 = vld [vmem:[%s5649_s3 + $0x78] sm:$0xf0] }
  0xe9   : > { %v4540_v13 = vpop.f32.mrf.mxu0 }
  0xea   : > { %v779_v26 = vadd.f32 %v4540_v13, %v670_v5  ;;  %v3996_v13 = vld [vmem:[%s5649_s3 + $0x34] sm:$0xf0] }
  0xeb   : > { %v667_v11 = vpop.f32.mrf.mxu3  ;;  %v3306_v39 = vor.u32 %v3996_v13, %v3305_v32  ;;  %v4030_v32 = vld [vmem:[%s5649_s3 + $0x14c] sm:$0xf]  ;;  %v3391_v13 = vld [vmem:[%s5649_s3 + $0x158] sm:$0xf0] }
  0xec   : > { %v671_v12 = vadd.f32 %v667_v11, %v561_v10  ;;  %v4003_v10 = vld [vmem:[%s5649_s3 + $0x6c] sm:$0xf0]  ;;  %v3338_v11 = vor.u32 %v4004_v8, %v3337_v4 }
  0xee   : > { %1504 = vmatpush.bf16.msrb.mxu3 %v3338_v11  ;;  %v4033_v11 = vld [vmem:[%s5649_s3 + $0x164] sm:$0xf] }
  0xf1   : > { %v776_v14 = vpop.f32.mrf.mxu0 }
  0xf2   : > { %v4542_v15 = vadd.f32 %v776_v14, %v671_v12  ;;  %v3330_v12 = vor.u32 %v4003_v10, %v3329_v9  ;;  %v4002_v14 = vld [vmem:[%s5649_s3 + $0x6c] sm:$0xf]  ;;  %1505 = vmatpush.bf16.msrb.mxu3 %v3322_v22 }
  0xf3   : > { %v3342_v17 = vor.u32 %v4002_v14, %v3339_v7  ;;  %v4036_v14 = vld [vmem:[%s5649_s3 + $0x174] sm:$0xf0]  ;;  %v3397_v7 = vld [vmem:[%s5649_s3 + $0x160] sm:$0xf] }
  0xf4   : > { %1478 = vmatpush.bf16.msrb.mxu1 %v3330_v12  ;;  %v3399_v12 = vld [vmem:[%s5649_s3 + $0x170] sm:$0xf0] }
  0xf5   : > { %1517 = vmatpush.bf16.msra.mxu0 %v3342_v17  ;;  %v3402_v22 = vor.u32 %v4033_v11, %v3399_v12 }
  0xf6   : > { %1506 = vmatpush.bf16.msrb.mxu3 %v3306_v39  ;;  %v3373_v39 = vld [vmem:[%s5649_s3 + $0x128] sm:$0xf] }
  0xf8   : > { %1479 = vmatpush.bf16.msrb.mxu1 %v3314_v27  ;;  %v3410_v27 = vor.u32 %v4034_v19, %v3407_v20  ;;  %v4046_v19 = vld [vmem:[%s5649_s3 + $0x1cc] sm:$0xf]  ;;  %v3459_v20 = vld [vmem:[%s5649_s3 + $0x1d8] sm:$0xf0] }
  0xf9   : > { %1518 = vmatpush.bf16.msra.mxu0 %v3326_v31  ;;  %v4031_v31 = vld [vmem:[%s5649_s3 + $0x14c] sm:$0xf0] }
  0xfa   : > { %1507 = vmatpush.bf16.msrb.mxu3 %v3290_v54  ;;  %v3382_v37 = vor.u32 %v4031_v31, %v3381_v30  ;;  %v4023_v54 = vld [vmem:[%s5649_s3 + $0x10c] sm:$0xf0]  ;;  %v4042_v31 = vld [vmem:[%s5649_s3 + $0x1ac] sm:$0xf] }
  0xfb   : > { %v4043_v30 = vld [vmem:[%s5649_s3 + $0x1ac] sm:$0xf0] }
  0xfc   : > { %1480 = vmatpush.bf16.msrb.mxu1 %v3298_v40  ;;  %v4028_v40 = vld [vmem:[%s5649_s3 + $0x134] sm:$0xf0] }
  0xfd   : > { %1519 = vmatpush.bf16.msra.mxu0 %v3310_v45  ;;  %v3370_v45 = vor.u32 %v4025_v35, %v3367_v36  ;;  %v3374_v46 = vor.u32 %v4028_v40, %v3373_v39  ;;  %v3419_v35 = vld [vmem:[%s5649_s3 + $0x190] sm:$0xf0]  ;;  %v3434_v36 = vor.u32 %v4043_v30, %v3433_v29  ;;  %v4040_v39 = vld [vmem:[%s5649_s3 + $0x194] sm:$0xf0]  ;;  %v3417_v40 = vld [vmem:[%s5649_s3 + $0x180] sm:$0xf] }
  0xfe   : > { %v3485_v29 = vld [vmem:[%s5649_s3 + $0x200] sm:$0xf]  ;;  %v4055_v30 = vld [vmem:[%s5649_s3 + $0x20c] sm:$0xf0] }
 0x100   : > { %1481 = vmatpush.bf16.msrb.mxu1 %v3282_v55  ;;  %v4022_v55 = vld [vmem:[%s5649_s3 + $0x10c] sm:$0xf] }
 0x101   : > { %1520 = vmatpush.bf16.msra.mxu0 %v3294_v57  ;;  %v3354_v57 = vor.u32 %v4021_v47, %v3351_v48  ;;  %v3535_v47 = vld [vmem:[%s5649_s3 + $0x270] sm:$0xf0] }
 0x105   : > { %v878_v38 = vpop.f32.mrf.mxu1 }
 0x106   : > { %v883_v44 = vadd.f32 %v878_v38, %v779_v26  ;;  %v3398_v26 = vor.u32 %v4035_v18, %v3397_v7  ;;  %v3394_v38 = vor.u32 %v4030_v32, %v3391_v13  ;;  %v3449_v7 = vld [vmem:[%s5649_s3 + $0x1c0] sm:$0xf]  ;;  %v4047_v18 = vld [vmem:[%s5649_s3 + $0x1cc] sm:$0xf0]  ;;  %v3443_v32 = vld [vmem:[%s5649_s3 + $0x1b8] sm:$0xf0]  ;;  %v3438_v13 = vor.u32 %v4041_v24, %v3435_v25 }
 0x107   : > { %v4053_v24 = vld [vmem:[%s5649_s3 + $0x204] sm:$0xf]  ;;  %v3487_v25 = vld [vmem:[%s5649_s3 + $0x210] sm:$0xf0] }
 0x10d   : > { %v880_v60 = vpop.f32.mrf.mxu1 }
 0x10e   : > { %v884_v0 = vadd.f32 %v880_v60, %v4542_v15  ;;  %v3405_v15 = vld [vmem:[%s5649_s3 + $0x168] sm:$0xf]  ;;  %v3467_v60 = vld [vmem:[%s5649_s3 + $0x1f0] sm:$0xf0] }
 0x10f   : > { %v3406_v23 = vor.u32 %v4036_v14, %v3405_v15  ;;  %v3457_v15 = vld [vmem:[%s5649_s3 + $0x1c8] sm:$0xf]  ;;  %v4048_v14 = vld [vmem:[%s5649_s3 + $0x1d4] sm:$0xf0] }
 0x117   : > { %v988_v49 = vpop.f32.mrf.mxu2 }
 0x118   : > { %v993_v56 = vadd.f32 %v988_v49, %v883_v44  ;;  %v3375_v44 = vld [vmem:[%s5649_s3 + $0x138] sm:$0xf0]  ;;  %v3366_v49 = vor.u32 %v4027_v42, %v3365_v41  ;;  %v4039_v41 = vld [vmem:[%s5649_s3 + $0x18c] sm:$0xf0]  ;;  %v4038_v42 = vld [vmem:[%s5649_s3 + $0x18c] sm:$0xf] }
 0x119   : > { %v3378_v50 = vor.u32 %v4026_v43, %v3375_v44  ;;  %v3427_v43 = vld [vmem:[%s5649_s3 + $0x198] sm:$0xf0]  ;;  %v3418_v48 = vor.u32 %v4039_v41, %v3417_v40  ;;  %v3601_v40 = vld [vmem:[%s5649_s3 + $0x2e0] sm:$0xf]  ;;  %v4083_v41 = vld [vmem:[%s5649_s3 + $0x2ec] sm:$0xf0] }
 0x11f   : > { %v990_v63 = vpop.f32.mrf.mxu2 }
 0x120   : > { %v994_v3 = vadd.f32 %v990_v63, %v884_v0  ;;  %v3473_v63 = vld [vmem:[%s5649_s3 + $0x1e8] sm:$0xf]  ;;  %v4052_v0 = vld [vmem:[%s5649_s3 + $0x1f4] sm:$0xf0] }
 0x123   : > { %v1097_v53 = vpop.f32.mrf.mxu3 }
 0x124   : > { %v1102_v58 = vadd.f32 %v1097_v53, %v993_v56  ;;  %v3349_v53 = vld [vmem:[%s5649_s3 + $0x100] sm:$0xf]  ;;  %v3359_v56 = vld [vmem:[%s5649_s3 + $0x118] sm:$0xf0] }
 0x12b   : > { %v1099_v2 = vpop.f32.mrf.mxu3 }
 0x12c   : > { %v1103_v5 = vadd.f32 %v1099_v2, %v994_v3  ;;  %v4051_v2 = vld [vmem:[%s5649_s3 + $0x1ec] sm:$0xf0]  ;;  %v4050_v3 = vld [vmem:[%s5649_s3 + $0x1ec] sm:$0xf] }
 0x139   : > { %v1201_v61 = vpop.f32.mrf.mxu0 }
 0x13a   : > { %v1206_v62 = vadd.f32 %v1201_v61, %v1102_v58  ;;  %v3358_v58 = vor.u32 %v4024_v52, %v3357_v51  ;;  %v3350_v61 = vor.u32 %v4023_v54, %v3349_v53  ;;  %v4068_v51 = vld [vmem:[%s5649_s3 + $0x274] sm:$0xf0]  ;;  %v3533_v52 = vld [vmem:[%s5649_s3 + $0x260] sm:$0xf]  ;;  %v4067_v53 = vld [vmem:[%s5649_s3 + $0x26c] sm:$0xf0] }
 0x13b   : > { %v4066_v54 = vld [vmem:[%s5649_s3 + $0x26c] sm:$0xf] }
 0x13c   : > { %v1212_v1 = vadd.f32 %v4205_v59, %v1206_v62  ;;  %v3362_v62 = vor.u32 %v4022_v55, %v3359_v56  ;;  %v3543_v55 = vld [vmem:[%s5649_s3 + $0x278] sm:$0xf0] }
 0x13e   : > { %v1214_v4 = vmax.f32 %v1212_v1, 0.0  ;;  %v3465_v1 = vld [vmem:[%s5649_s3 + $0x1e0] sm:$0xf] }
 0x13f   : > { %v3466_v11 = vor.u32 %v4051_v2, %v3465_v1  ;;  %v3517_v1 = vld [vmem:[%s5649_s3 + $0x240] sm:$0xf]  ;;  %v4063_v2 = vld [vmem:[%s5649_s3 + $0x24c] sm:$0xf0] }
 0x140   : > { %v4743_v6 = vpack.c.bf16 %v1214_v4, %v1214_v4  ;;  %v3475_v4 = vld [vmem:[%s5649_s3 + $0x1f8] sm:$0xf0] }
 0x141   : > { %v1203_v8 = vpop.f32.mrf.mxu0  ;;  %v3478_v12 = vor.u32 %v4050_v3, %v3475_v4  ;;  %v4062_v3 = vld [vmem:[%s5649_s3 + $0x24c] sm:$0xf]  ;;  %v3527_v4 = vld [vmem:[%s5649_s3 + $0x258] sm:$0xf0] }
 0x142   : > { %v1251_v9 = vunpack.c.l.b16 %v4743_v6  ;;  %v1207_v10 = vadd.f32 %v1203_v8, %v1103_v5  ;;  %v3474_v8 = vor.u32 %v4052_v0, %v3473_v63  ;;  %v3525_v63 = vld [vmem:[%s5649_s3 + $0x248] sm:$0xf]  ;;  %v4064_v0 = vld [vmem:[%s5649_s3 + $0x254] sm:$0xf0] }
 0x144   : > { %v4761_v16 = vpack.c.b16 %v1251_v9, %v1251_v9  ;;  %v4763_v17 = vadd.f32 %v4205_v59, %v1207_v10  ;;  %v4049_v59 = vld [vmem:[%s5649_s3 + $0x1e4] sm:$0xf]  ;;  %v3451_v10 = vld [vmem:[%s5649_s3 + $0x1d0] sm:$0xf0] }
 0x145   : > { %v3470_v5 = vor.u32 %v4049_v59, %v3467_v60  ;;  %v4045_v9 = vld [vmem:[%s5649_s3 + $0x1c4] sm:$0xf]  ;;  %v3519_v60 = vld [vmem:[%s5649_s3 + $0x250] sm:$0xf0] }
 0x146   : > { %v4775_v21 = vshrl.u32 %v4761_v16, 16  ;;  %v1542_v56 = vrot.slane %v4761_v16, 1  ;;  %v4061_v59 = vld [vmem:[%s5649_s3 + $0x244] sm:$0xf] }
 0x148   : > { %3275 = vmatmul.msk.bf16.vlgmr.msra.gmra.mxu1 %vm381_vm2, %v4775_v21  ;;  %3276 = vmatmul.msk.bf16.vlgmr.msra.gmra.mxu2 %vm381_vm2, %v4775_v21 }
 0x149   : > { %3277 = vmatmul.msk.bf16.vlgmr.msra.gmra.mxu3 %vm381_vm2, %v4775_v21  ;;  %3278 = vmatmul.msk.bf16.vlgmr.msrb.gmra.mxu0 %vm381_vm2, %v4775_v21 }
 0x14a   : > { %1643 = vmatpush.bf16.msra.mxu2 %v3402_v22  ;;  %1656 = vmatpush.bf16.msra.mxu3 %v3406_v23  ;;  %v3454_v22 = vor.u32 %v4045_v9, %v3451_v10  ;;  %v3458_v23 = vor.u32 %v4048_v14, %v3457_v15  ;;  %v4057_v9 = vld [vmem:[%s5649_s3 + $0x224] sm:$0xf]  ;;  %v3503_v10 = vld [vmem:[%s5649_s3 + $0x230] sm:$0xf0]  ;;  %v3509_v15 = vld [vmem:[%s5649_s3 + $0x228] sm:$0xf] }
 0x14b   : > { %1630 = vmatpush.bf16.msra.mxu1 %v3398_v26  ;;  %1669 = vmatpush.bf16.msrb.mxu0 %v3410_v27  ;;  %v3450_v26 = vor.u32 %v4047_v18, %v3449_v7  ;;  %v3462_v27 = vor.u32 %v4046_v19, %v3459_v20  ;;  %v4060_v14 = vld [vmem:[%s5649_s3 + $0x234] sm:$0xf0]  ;;  %v3501_v7 = vld [vmem:[%s5649_s3 + $0x220] sm:$0xf]  ;;  %v4059_v18 = vld [vmem:[%s5649_s3 + $0x22c] sm:$0xf0] }
 0x14c   : > { %v4058_v19 = vld [vmem:[%s5649_s3 + $0x22c] sm:$0xf]  ;;  %v3511_v20 = vld [vmem:[%s5649_s3 + $0x238] sm:$0xf0] }
 0x14e   : > { %1644 = vmatpush.bf16.msra.mxu2 %v3386_v33  ;;  %1657 = vmatpush.bf16.msra.mxu3 %v3390_v34  ;;  %v4037_v34 = vld [vmem:[%s5649_s3 + $0x184] sm:$0xf] }
 0x14f   : > { %1631 = vmatpush.bf16.msra.mxu1 %v3382_v37  ;;  %1670 = vmatpush.bf16.msrb.mxu0 %v3394_v38  ;;  %v3446_v37 = vor.u32 %v4042_v31, %v3443_v32  ;;  %v3425_v38 = vld [vmem:[%s5649_s3 + $0x188] sm:$0xf]  ;;  %v3422_v44 = vor.u32 %v4037_v34, %v3419_v35  ;;  %v4054_v31 = vld [vmem:[%s5649_s3 + $0x20c] sm:$0xf]  ;;  %v3495_v32 = vld [vmem:[%s5649_s3 + $0x218] sm:$0xf0] }
 0x150   : > { %v4081_v34 = vld [vmem:[%s5649_s3 + $0x2e4] sm:$0xf]  ;;  %v3603_v35 = vld [vmem:[%s5649_s3 + $0x2f0] sm:$0xf0] }
 0x152   : > { %1645 = vmatpush.bf16.msra.mxu2 %v3370_v45  ;;  %1658 = vmatpush.bf16.msra.mxu3 %v3374_v46  ;;  %v3426_v45 = vor.u32 %v4040_v39, %v3425_v38  ;;  %v4065_v46 = vld [vmem:[%s5649_s3 + $0x264] sm:$0xf]  ;;  %v3609_v38 = vld [vmem:[%s5649_s3 + $0x2e8] sm:$0xf]  ;;  %v4084_v39 = vld [vmem:[%s5649_s3 + $0x2f4] sm:$0xf0] }
 0x153   : > { %1632 = vmatpush.bf16.msra.mxu1 %v3366_v49  ;;  %1671 = vmatpush.bf16.msrb.mxu0 %v3378_v50  ;;  %v3430_v49 = vor.u32 %v4038_v42, %v3427_v43  ;;  %v3541_v50 = vld [vmem:[%s5649_s3 + $0x268] sm:$0xf]  ;;  %v4082_v42 = vld [vmem:[%s5649_s3 + $0x2ec] sm:$0xf]  ;;  %v3611_v43 = vld [vmem:[%s5649_s3 + $0x2f8] sm:$0xf0] }
 0x156   : > { %1646 = vmatpush.bf16.msra.mxu2 %v3354_v57  ;;  %1659 = vmatpush.bf16.msra.mxu3 %v3358_v58  ;;  %v3538_v57 = vor.u32 %v4065_v46, %v3535_v47  ;;  %v3542_v58 = vor.u32 %v4068_v51, %v3541_v50  ;;  %v3610_v46 = vor.u32 %v4084_v39, %v3609_v38  ;;  %v4077_v47 = vld [vmem:[%s5649_s3 + $0x2c4] sm:$0xf]  ;;  %v3593_v51 = vld [vmem:[%s5649_s3 + $0x2c8] sm:$0xf] }
 0x157   : > { %1633 = vmatpush.bf16.msra.mxu1 %v3350_v61  ;;  %1672 = vmatpush.bf16.msrb.mxu0 %v3362_v62  ;;  %v3534_v61 = vor.u32 %v4067_v53, %v3533_v52  ;;  %v3546_v62 = vor.u32 %v4066_v54, %v3543_v55  ;;  %v3614_v50 = vor.u32 %v4082_v42, %v3611_v43  ;;  %v4080_v52 = vld [vmem:[%s5649_s3 + $0x2d4] sm:$0xf0]  ;;  %v3585_v53 = vld [vmem:[%s5649_s3 + $0x2c0] sm:$0xf]  ;;  %v4079_v54 = vld [vmem:[%s5649_s3 + $0x2cc] sm:$0xf0] }
 0x158   : > { %3343 = vmatmul.msk.bf16.vlgmr.msrb.gmra.mxu1 %vm381_vm2, %v4743_v6  ;;  %3344 = vmatmul.msk.bf16.vlgmr.msrb.gmra.mxu2 %vm381_vm2, %v4743_v6  ;;  %v4078_v55 = vld [vmem:[%s5649_s3 + $0x2cc] sm:$0xf]  ;;  %v3661_v39 = vld [vmem:[%s5649_s3 + $0x348] sm:$0xf]  ;;  %v4095_v42 = vld [vmem:[%s5649_s3 + $0x34c] sm:$0xf0] }
 0x159   : > { %3345 = vmatmul.msk.bf16.vlgmr.msrb.gmra.mxu3 %vm381_vm2, %v4743_v6  ;;  %3346 = vmatmul.msk.bf16.vlgmr.msra.gmra.mxu0 %vm381_vm2, %v4743_v6  ;;  %v3441_v6 = vld [vmem:[%s5649_s3 + $0x1a8] sm:$0xf]  ;;  %v4094_v43 = vld [vmem:[%s5649_s3 + $0x34c] sm:$0xf] }
 0x15a   : > { %1799 = vmatpush.bf16.msrb.mxu2 %v3470_v5  ;;  %1812 = vmatpush.bf16.msrb.mxu3 %v3474_v8  ;;  %v3442_v33 = vor.u32 %v4044_v28, %v3441_v6  ;;  %v3522_v5 = vor.u32 %v4061_v59, %v3519_v60  ;;  %v3526_v8 = vor.u32 %v4064_v0, %v3525_v63  ;;  %v3493_v6 = vld [vmem:[%s5649_s3 + $0x208] sm:$0xf]  ;;  %v4056_v28 = vld [vmem:[%s5649_s3 + $0x214] sm:$0xf0]  ;;  %v4073_v59 = vld [vmem:[%s5649_s3 + $0x2a4] sm:$0xf] }
 0x15b   : > { %1786 = vmatpush.bf16.msrb.mxu1 %v3466_v11  ;;  %1825 = vmatpush.bf16.msra.mxu0 %v3478_v12  ;;  %v3518_v11 = vor.u32 %v4063_v2, %v3517_v1  ;;  %v3530_v12 = vor.u32 %v4062_v3, %v3527_v4  ;;  %v3571_v60 = vld [vmem:[%s5649_s3 + $0x2b0] sm:$0xf0]  ;;  %v3577_v63 = vld [vmem:[%s5649_s3 + $0x2a8] sm:$0xf]  ;;  %v4076_v0 = vld [vmem:[%s5649_s3 + $0x2b4] sm:$0xf0] }
 0x15c   : > { %v3569_v1 = vld [vmem:[%s5649_s3 + $0x2a0] sm:$0xf]  ;;  %v4075_v2 = vld [vmem:[%s5649_s3 + $0x2ac] sm:$0xf0]  ;;  %v4074_v3 = vld [vmem:[%s5649_s3 + $0x2ac] sm:$0xf] }
 0x15d   : > { %v3579_v4 = vld [vmem:[%s5649_s3 + $0x2b8] sm:$0xf0] }
 0x15e   : > { %1800 = vmatpush.bf16.msrb.mxu2 %v3454_v22  ;;  %1813 = vmatpush.bf16.msrb.mxu3 %v3458_v23  ;;  %v3506_v22 = vor.u32 %v4057_v9, %v3503_v10  ;;  %v3510_v23 = vor.u32 %v4060_v14, %v3509_v15  ;;  %v4069_v9 = vld [vmem:[%s5649_s3 + $0x284] sm:$0xf]  ;;  %v3555_v10 = vld [vmem:[%s5649_s3 + $0x290] sm:$0xf0]  ;;  %v3561_v15 = vld [vmem:[%s5649_s3 + $0x288] sm:$0xf] }
 0x15f   : > { %1787 = vmatpush.bf16.msrb.mxu1 %v3450_v26  ;;  %1826 = vmatpush.bf16.msra.mxu0 %v3462_v27  ;;  %v3502_v26 = vor.u32 %v4059_v18, %v3501_v7  ;;  %v3514_v27 = vor.u32 %v4058_v19, %v3511_v20  ;;  %v4072_v14 = vld [vmem:[%s5649_s3 + $0x294] sm:$0xf0]  ;;  %v3553_v7 = vld [vmem:[%s5649_s3 + $0x280] sm:$0xf]  ;;  %v4071_v18 = vld [vmem:[%s5649_s3 + $0x28c] sm:$0xf0] }
 0x160   : > { %v4070_v19 = vld [vmem:[%s5649_s3 + $0x28c] sm:$0xf]  ;;  %v3563_v20 = vld [vmem:[%s5649_s3 + $0x298] sm:$0xf0] }
 0x162   : > { %1801 = vmatpush.bf16.msrb.mxu2 %v3438_v13  ;;  %1814 = vmatpush.bf16.msrb.mxu3 %v3442_v33  ;;  %v3490_v13 = vor.u32 %v4053_v24, %v3487_v25  ;;  %v3494_v33 = vor.u32 %v4056_v28, %v3493_v6  ;;  %v4097_v24 = vld [vmem:[%s5649_s3 + $0x364] sm:$0xf]  ;;  %v3671_v25 = vld [vmem:[%s5649_s3 + $0x370] sm:$0xf0]  ;;  %v3677_v6 = vld [vmem:[%s5649_s3 + $0x368] sm:$0xf] }
 0x163   : > { %1788 = vmatpush.bf16.msrb.mxu1 %v3434_v36  ;;  %1827 = vmatpush.bf16.msra.mxu0 %v3446_v37  ;;  %v3486_v36 = vor.u32 %v4055_v30, %v3485_v29  ;;  %v3498_v37 = vor.u32 %v4054_v31, %v3495_v32  ;;  %v4100_v28 = vld [vmem:[%s5649_s3 + $0x374] sm:$0xf0]  ;;  %v3669_v29 = vld [vmem:[%s5649_s3 + $0x360] sm:$0xf]  ;;  %v4099_v30 = vld [vmem:[%s5649_s3 + $0x36c] sm:$0xf0] }
 0x164   : > { %v4098_v31 = vld [vmem:[%s5649_s3 + $0x36c] sm:$0xf]  ;;  %v3679_v32 = vld [vmem:[%s5649_s3 + $0x378] sm:$0xf0] }
 0x165   : > { %v3682_v38 = vor.u32 %v4098_v31, %v3679_v32  ;;  %v4111_v31 = vld [vmem:[%s5649_s3 + $0x3cc] sm:$0xf0]  ;;  %v4110_v32 = vld [vmem:[%s5649_s3 + $0x3cc] sm:$0xf] }
 0x166   : > { %1802 = vmatpush.bf16.msrb.mxu2 %v3422_v44  ;;  %1815 = vmatpush.bf16.msrb.mxu3 %v3426_v45  ;;  %v1698_v44 = vrot.slane %v4775_v21, 1  ;;  %v3606_v45 = vor.u32 %v4081_v34, %v3603_v35  ;;  %v3678_v34 = vor.u32 %v4100_v28, %v3677_v6  ;;  %v4093_v35 = vld [vmem:[%s5649_s3 + $0x344] sm:$0xf]  ;;  %v3729_v28 = vld [vmem:[%s5649_s3 + $0x3c8] sm:$0xf] }
 0x167   : > { %1789 = vmatpush.bf16.msrb.mxu1 %v3418_v48  ;;  %1828 = vmatpush.bf16.msra.mxu0 %v3430_v49  ;;  %v3587_v48 = vld [vmem:[%s5649_s3 + $0x2d0] sm:$0xf0]  ;;  %v3602_v49 = vor.u32 %v4083_v41, %v3601_v40  ;;  %v4096_v40 = vld [vmem:[%s5649_s3 + $0x354] sm:$0xf0]  ;;  %v3653_v41 = vld [vmem:[%s5649_s3 + $0x340] sm:$0xf] }
 0x168   : > { %3411 = vmatmul.msk.bf16.vlgmr.msra.gmra.mxu1 %vm381_vm2, %v1542_v56  ;;  %3412 = vmatmul.msk.bf16.vlgmr.msra.gmra.mxu2 %vm381_vm2, %v1542_v56 }
 0x169   : > { %3413 = vmatmul.msk.bf16.vlgmr.msra.gmra.mxu3 %vm381_vm2, %v1542_v56  ;;  %3414 = vmatmul.msk.bf16.vlgmr.msrb.gmra.mxu0 %vm381_vm2, %v1542_v56  ;;  %v3595_v56 = vld [vmem:[%s5649_s3 + $0x2d8] sm:$0xf0] }
 0x16a   : > { %1955 = vmatpush.bf16.msra.mxu2 %v3538_v57  ;;  %1968 = vmatpush.bf16.msra.mxu3 %v3542_v58  ;;  %v3590_v57 = vor.u32 %v4077_v47, %v3587_v48  ;;  %v3594_v58 = vor.u32 %v4080_v52, %v3593_v51  ;;  %v4089_v47 = vld [vmem:[%s5649_s3 + $0x324] sm:$0xf]  ;;  %v3639_v48 = vld [vmem:[%s5649_s3 + $0x330] sm:$0xf0]  ;;  %v3645_v51 = vld [vmem:[%s5649_s3 + $0x328] sm:$0xf] }
 0x16b   : > { %1942 = vmatpush.bf16.msra.mxu1 %v3534_v61  ;;  %1981 = vmatpush.bf16.msrb.mxu0 %v3546_v62  ;;  %v3586_v61 = vor.u32 %v4079_v54, %v3585_v53  ;;  %v3598_v62 = vor.u32 %v4078_v55, %v3595_v56  ;;  %v4092_v52 = vld [vmem:[%s5649_s3 + $0x334] sm:$0xf0]  ;;  %v3637_v53 = vld [vmem:[%s5649_s3 + $0x320] sm:$0xf]  ;;  %v4091_v54 = vld [vmem:[%s5649_s3 + $0x32c] sm:$0xf0] }
 0x16c   : > { %v4090_v55 = vld [vmem:[%s5649_s3 + $0x32c] sm:$0xf]  ;;  %v3647_v56 = vld [vmem:[%s5649_s3 + $0x338] sm:$0xf0] }
 0x16e   : > { %1956 = vmatpush.bf16.msra.mxu2 %v3522_v5  ;;  %1969 = vmatpush.bf16.msra.mxu3 %v3526_v8  ;;  %v3574_v5 = vor.u32 %v4073_v59, %v3571_v60  ;;  %v3578_v8 = vor.u32 %v4076_v0, %v3577_v63  ;;  %v4085_v59 = vld [vmem:[%s5649_s3 + $0x304] sm:$0xf]  ;;  %v3623_v60 = vld [vmem:[%s5649_s3 + $0x310] sm:$0xf0]  ;;  %v3629_v63 = vld [vmem:[%s5649_s3 + $0x308] sm:$0xf] }
 0x16f   : > { %1943 = vmatpush.bf16.msra.mxu1 %v3518_v11  ;;  %1982 = vmatpush.bf16.msrb.mxu0 %v3530_v12  ;;  %v3570_v11 = vor.u32 %v4075_v2, %v3569_v1  ;;  %v3582_v12 = vor.u32 %v4074_v3, %v3579_v4  ;;  %v4088_v0 = vld [vmem:[%s5649_s3 + $0x314] sm:$0xf0]  ;;  %v3621_v1 = vld [vmem:[%s5649_s3 + $0x300] sm:$0xf]  ;;  %v4087_v2 = vld [vmem:[%s5649_s3 + $0x30c] sm:$0xf0] }
 0x170   : > { %v4086_v3 = vld [vmem:[%s5649_s3 + $0x30c] sm:$0xf]  ;;  %v3631_v4 = vld [vmem:[%s5649_s3 + $0x318] sm:$0xf0] }
 0x172   : > { %1957 = vmatpush.bf16.msra.mxu2 %v3506_v22  ;;  %1970 = vmatpush.bf16.msra.mxu3 %v3510_v23  ;;  %v3558_v22 = vor.u32 %v4069_v9, %v3555_v10  ;;  %v3562_v23 = vor.u32 %v4072_v14, %v3561_v15  ;;  %v4113_v9 = vld [vmem:[%s5649_s3 + $0x3e4] sm:$0xf]  ;;  %v3739_v10 = vld [vmem:[%s5649_s3 + $0x3f0] sm:$0xf0]  ;;  %v3745_v15 = vld [vmem:[%s5649_s3 + $0x3e8] sm:$0xf] }
 0x173   : > { %1944 = vmatpush.bf16.msra.mxu1 %v3502_v26  ;;  %1983 = vmatpush.bf16.msrb.mxu0 %v3514_v27  ;;  %v3554_v26 = vor.u32 %v4071_v18, %v3553_v7  ;;  %v3566_v27 = vor.u32 %v4070_v19, %v3563_v20  ;;  %v4116_v14 = vld [vmem:[%s5649_s3 + $0x3f4] sm:$0xf0]  ;;  %v3737_v7 = vld [vmem:[%s5649_s3 + $0x3e0] sm:$0xf]  ;;  %v4115_v18 = vld [vmem:[%s5649_s3 + $0x3ec] sm:$0xf0] }
 0x174   : > { %v4114_v19 = vld [vmem:[%s5649_s3 + $0x3ec] sm:$0xf]  ;;  %v3747_v20 = vld [vmem:[%s5649_s3 + $0x3f8] sm:$0xf0] }
 0x175   : > { %v3750_v6 = vor.u32 %v4114_v19, %v3747_v20  ;;  %v4126_v19 = vld [vmem:[%s5649_s3 + $0x44c] sm:$0xf]  ;;  %v3799_v20 = vld [vmem:[%s5649_s3 + $0x458] sm:$0xf0] }
 0x176   : > { %1958 = vmatpush.bf16.msra.mxu2 %v3490_v13  ;;  %1971 = vmatpush.bf16.msra.mxu3 %v3494_v33  ;;  %v1854_v13 = vrot.slane %v4761_v16, 2  ;;  %v3674_v33 = vor.u32 %v4097_v24, %v3671_v25  ;;  %v3746_v24 = vor.u32 %v4116_v14, %v3745_v15  ;;  %v4109_v25 = vld [vmem:[%s5649_s3 + $0x3c4] sm:$0xf]  ;;  %v4128_v14 = vld [vmem:[%s5649_s3 + $0x454] sm:$0xf0] }
 0x177   : > { %1945 = vmatpush.bf16.msra.mxu1 %v3486_v36  ;;  %1984 = vmatpush.bf16.msrb.mxu0 %v3498_v37  ;;  %v3655_v36 = vld [vmem:[%s5649_s3 + $0x350] sm:$0xf0]  ;;  %v3670_v37 = vor.u32 %v4099_v30, %v3669_v29  ;;  %v4112_v29 = vld [vmem:[%s5649_s3 + $0x3d4] sm:$0xf0]  ;;  %v3721_v30 = vld [vmem:[%s5649_s3 + $0x3c0] sm:$0xf] }
 0x178   : > { %3479 = vmatmul.msk.bf16.vlgmr.msrb.gmra.mxu1 %vm381_vm2, %v1698_v44  ;;  %3480 = vmatmul.msk.bf16.vlgmr.msrb.gmra.mxu2 %vm381_vm2, %v1698_v44 }
 0x179   : > { %3481 = vmatmul.msk.bf16.vlgmr.msrb.gmra.mxu3 %vm381_vm2, %v1698_v44  ;;  %3482 = vmatmul.msk.bf16.vlgmr.msra.gmra.mxu0 %vm381_vm2, %v1698_v44  ;;  %v3663_v44 = vld [vmem:[%s5649_s3 + $0x358] sm:$0xf0] }
 0x17a   : > { %2111 = vmatpush.bf16.msrb.mxu2 %v3606_v45  ;;  %2124 = vmatpush.bf16.msrb.mxu3 %v3610_v46  ;;  %v3658_v45 = vor.u32 %v4093_v35, %v3655_v36  ;;  %v3662_v46 = vor.u32 %v4096_v40, %v3661_v39  ;;  %v4105_v35 = vld [vmem:[%s5649_s3 + $0x3a4] sm:$0xf]  ;;  %v3707_v36 = vld [vmem:[%s5649_s3 + $0x3b0] sm:$0xf0]  ;;  %v3713_v39 = vld [vmem:[%s5649_s3 + $0x3a8] sm:$0xf] }
 0x17b   : > { %2098 = vmatpush.bf16.msrb.mxu1 %v3602_v49  ;;  %2137 = vmatpush.bf16.msra.mxu0 %v3614_v50  ;;  %v3654_v49 = vor.u32 %v4095_v42, %v3653_v41  ;;  %v3666_v50 = vor.u32 %v4094_v43, %v3663_v44  ;;  %v4108_v40 = vld [vmem:[%s5649_s3 + $0x3b4] sm:$0xf0]  ;;  %v3705_v41 = vld [vmem:[%s5649_s3 + $0x3a0] sm:$0xf]  ;;  %v4107_v42 = vld [vmem:[%s5649_s3 + $0x3ac] sm:$0xf0] }
 0x17c   : > { %v4106_v43 = vld [vmem:[%s5649_s3 + $0x3ac] sm:$0xf]  ;;  %v3715_v44 = vld [vmem:[%s5649_s3 + $0x3b8] sm:$0xf0] }
 0x17e   : > { %2112 = vmatpush.bf16.msrb.mxu2 %v3590_v57  ;;  %2125 = vmatpush.bf16.msrb.mxu3 %v3594_v58  ;;  %v3642_v57 = vor.u32 %v4089_v47, %v3639_v48  ;;  %v3646_v58 = vor.u32 %v4092_v52, %v3645_v51  ;;  %v4101_v47 = vld [vmem:[%s5649_s3 + $0x384] sm:$0xf]  ;;  %v3691_v48 = vld [vmem:[%s5649_s3 + $0x390] sm:$0xf0]  ;;  %v3697_v51 = vld [vmem:[%s5649_s3 + $0x388] sm:$0xf] }
 0x17f   : > { %2099 = vmatpush.bf16.msrb.mxu1 %v3586_v61  ;;  %2138 = vmatpush.bf16.msra.mxu0 %v3598_v62  ;;  %v3638_v61 = vor.u32 %v4091_v54, %v3637_v53  ;;  %v3650_v62 = vor.u32 %v4090_v55, %v3647_v56  ;;  %v4104_v52 = vld [vmem:[%s5649_s3 + $0x394] sm:$0xf0]  ;;  %v3689_v53 = vld [vmem:[%s5649_s3 + $0x380] sm:$0xf]  ;;  %v4103_v54 = vld [vmem:[%s5649_s3 + $0x38c] sm:$0xf0] }
 0x180   : > { %v4102_v55 = vld [vmem:[%s5649_s3 + $0x38c] sm:$0xf]  ;;  %v3699_v56 = vld [vmem:[%s5649_s3 + $0x398] sm:$0xf0] }
 0x182   : > { %2113 = vmatpush.bf16.msrb.mxu2 %v3574_v5  ;;  %2126 = vmatpush.bf16.msrb.mxu3 %v3578_v8  ;;  %v3626_v5 = vor.u32 %v4085_v59, %v3623_v60  ;;  %v3630_v8 = vor.u32 %v4088_v0, %v3629_v63  ;;  %v4129_v59 = vld [vmem:[%s5649_s3 + $0x464] sm:$0xf]  ;;  %v3807_v60 = vld [vmem:[%s5649_s3 + $0x470] sm:$0xf0]  ;;  %v3813_v63 = vld [vmem:[%s5649_s3 + $0x468] sm:$0xf] }
 0x183   : > { %2100 = vmatpush.bf16.msrb.mxu1 %v3570_v11  ;;  %2139 = vmatpush.bf16.msra.mxu0 %v3582_v12  ;;  %v3622_v11 = vor.u32 %v4087_v2, %v3621_v1  ;;  %v3634_v12 = vor.u32 %v4086_v3, %v3631_v4  ;;  %v4132_v0 = vld [vmem:[%s5649_s3 + $0x474] sm:$0xf0]  ;;  %v3805_v1 = vld [vmem:[%s5649_s3 + $0x460] sm:$0xf]  ;;  %v4131_v2 = vld [vmem:[%s5649_s3 + $0x46c] sm:$0xf0] }
 0x184   : > { %v4130_v3 = vld [vmem:[%s5649_s3 + $0x46c] sm:$0xf]  ;;  %v3815_v4 = vld [vmem:[%s5649_s3 + $0x478] sm:$0xf0] }
 0x185   : > { %v3818_v15 = vor.u32 %v4130_v3, %v3815_v4 }
 0x186   : > { %2114 = vmatpush.bf16.msrb.mxu2 %v3558_v22  ;;  %2127 = vmatpush.bf16.msrb.mxu3 %v3562_v23  ;;  %v2010_v22 = vrot.slane %v4775_v21, 2  ;;  %v3742_v23 = vor.u32 %v4113_v9, %v3739_v10  ;;  %v3814_v9 = vor.u32 %v4132_v0, %v3813_v63  ;;  %v4125_v10 = vld [vmem:[%s5649_s3 + $0x444] sm:$0xf] }
 0x187   : > { %2101 = vmatpush.bf16.msrb.mxu1 %v3554_v26  ;;  %2140 = vmatpush.bf16.msra.mxu0 %v3566_v27  ;;  %v3723_v26 = vld [vmem:[%s5649_s3 + $0x3d0] sm:$0xf0]  ;;  %v3738_v27 = vor.u32 %v4115_v18, %v3737_v7  ;;  %v3789_v7 = vld [vmem:[%s5649_s3 + $0x440] sm:$0xf]  ;;  %v4127_v18 = vld [vmem:[%s5649_s3 + $0x44c] sm:$0xf0] }
 0x188   : > { %3547 = vmatmul.msk.bf16.vlgmr.msra.gmra.mxu1 %vm381_vm2, %v1854_v13  ;;  %3548 = vmatmul.msk.bf16.vlgmr.msra.gmra.mxu2 %vm381_vm2, %v1854_v13 }
 0x189   : > { %3549 = vmatmul.msk.bf16.vlgmr.msra.gmra.mxu3 %vm381_vm2, %v1854_v13  ;;  %3550 = vmatmul.msk.bf16.vlgmr.msrb.gmra.mxu0 %vm381_vm2, %v1854_v13  ;;  %v3731_v13 = vld [vmem:[%s5649_s3 + $0x3d8] sm:$0xf0] }
 0x18a   : > { %2267 = vmatpush.bf16.msra.mxu2 %v3674_v33  ;;  %2280 = vmatpush.bf16.msra.mxu3 %v3678_v34  ;;  %v3726_v33 = vor.u32 %v4109_v25, %v3723_v26  ;;  %v3730_v34 = vor.u32 %v4112_v29, %v3729_v28  ;;  %v3775_v25 = vld [vmem:[%s5649_s3 + $0x430] sm:$0xf0]  ;;  %v3790_v26 = vor.u32 %v4127_v18, %v3789_v7  ;;  %v4124_v28 = vld [vmem:[%s5649_s3 + $0x434] sm:$0xf0]  ;;  %v3773_v29 = vld [vmem:[%s5649_s3 + $0x420] sm:$0xf] }
 0x18b   : > { %2254 = vmatpush.bf16.msra.mxu1 %v3670_v37  ;;  %2293 = vmatpush.bf16.msrb.mxu0 %v3682_v38  ;;  %v3722_v37 = vor.u32 %v4111_v31, %v3721_v30  ;;  %v3734_v38 = vor.u32 %v4110_v32, %v3731_v13  ;;  %v4123_v30 = vld [vmem:[%s5649_s3 + $0x42c] sm:$0xf0]  ;;  %v4122_v31 = vld [vmem:[%s5649_s3 + $0x42c] sm:$0xf]  ;;  %v3783_v32 = vld [vmem:[%s5649_s3 + $0x438] sm:$0xf0] }
 0x18e   : > { %2268 = vmatpush.bf16.msra.mxu2 %v3658_v45  ;;  %2281 = vmatpush.bf16.msra.mxu3 %v3662_v46  ;;  %v3710_v45 = vor.u32 %v4105_v35, %v3707_v36  ;;  %v3714_v46 = vor.u32 %v4108_v40, %v3713_v39  ;;  %v3759_v35 = vld [vmem:[%s5649_s3 + $0x410] sm:$0xf0]  ;;  %v3774_v36 = vor.u32 %v4123_v30, %v3773_v29  ;;  %v4120_v39 = vld [vmem:[%s5649_s3 + $0x414] sm:$0xf0]  ;;  %v3757_v40 = vld [vmem:[%s5649_s3 + $0x400] sm:$0xf] }
 0x18f   : > { %2255 = vmatpush.bf16.msra.mxu1 %v3654_v49  ;;  %2294 = vmatpush.bf16.msrb.mxu0 %v3666_v50  ;;  %v3706_v49 = vor.u32 %v4107_v42, %v3705_v41  ;;  %v3718_v50 = vor.u32 %v4106_v43, %v3715_v44  ;;  %v4119_v41 = vld [vmem:[%s5649_s3 + $0x40c] sm:$0xf0]  ;;  %v4118_v42 = vld [vmem:[%s5649_s3 + $0x40c] sm:$0xf]  ;;  %v3767_v43 = vld [vmem:[%s5649_s3 + $0x418] sm:$0xf0] }
 0x192   : > { %2269 = vmatpush.bf16.msra.mxu2 %v3642_v57  ;;  %2282 = vmatpush.bf16.msra.mxu3 %v3646_v58  ;;  %v3694_v57 = vor.u32 %v4101_v47, %v3691_v48  ;;  %v3698_v58 = vor.u32 %v4104_v52, %v3697_v51  ;;  %v3770_v47 = vor.u32 %v4118_v42, %v3767_v43  ;;  %v2322_v48 = vrot.slane %v4775_v21, 3  ;;  %v4163_v42 = vld [vmem:[%s5651_s5 + $0xf0] sm:$0xff] }
 0x193   : > { %2256 = vmatpush.bf16.msra.mxu1 %v3638_v61  ;;  %2295 = vmatpush.bf16.msrb.mxu0 %v3650_v62  ;;  %v3690_v61 = vor.u32 %v4103_v54, %v3689_v53  ;;  %v3702_v62 = vor.u32 %v4102_v55, %v3699_v56 }
 0x196   : > { %2270 = vmatpush.bf16.msra.mxu2 %v3626_v5  ;;  %2283 = vmatpush.bf16.msra.mxu3 %v3630_v8  ;;  %v2166_v5 = vrot.slane %v4761_v16, 3  ;;  %v3810_v8 = vor.u32 %v4129_v59, %v3807_v60  ;;  %v3797_v16 = vld [vmem:[%s5649_s3 + $0x448] sm:$0xf] }
 0x197   : > { %2257 = vmatpush.bf16.msra.mxu1 %v3622_v11  ;;  %2296 = vmatpush.bf16.msrb.mxu0 %v3634_v12  ;;  %v3791_v11 = vld [vmem:[%s5649_s3 + $0x450] sm:$0xf0]  ;;  %v3806_v12 = vor.u32 %v4131_v2, %v3805_v1 }
 0x198   : > { %3615 = vmatmul.msk.bf16.vlgmr.msrb.gmra.mxu1 %vm381_vm2, %v2010_v22  ;;  %3616 = vmatmul.msk.bf16.vlgmr.msrb.gmra.mxu2 %vm381_vm2, %v2010_v22 }
 0x199   : > { %3617 = vmatmul.msk.bf16.vlgmr.msrb.gmra.mxu3 %vm381_vm2, %v2010_v22  ;;  %3618 = vmatmul.msk.bf16.vlgmr.msra.gmra.mxu0 %vm381_vm2, %v2010_v22  ;;  %v3794_v22 = vor.u32 %v4125_v10, %v3791_v11 }
 0x19a   : > { %2423 = vmatpush.bf16.msrb.mxu2 %v3742_v23  ;;  %2436 = vmatpush.bf16.msrb.mxu3 %v3746_v24  ;;  %v3798_v23 = vor.u32 %v4128_v14, %v3797_v16  ;;  %v4121_v24 = vld [vmem:[%s5649_s3 + $0x424] sm:$0xf] }
 0x19b   : > { %2410 = vmatpush.bf16.msrb.mxu1 %v3738_v27  ;;  %2449 = vmatpush.bf16.msra.mxu0 %v3750_v6  ;;  %v3802_v27 = vor.u32 %v4126_v19, %v3799_v20  ;;  %v3781_v6 = vld [vmem:[%s5649_s3 + $0x428] sm:$0xf]  ;;  %v3778_v13 = vor.u32 %v4121_v24, %v3775_v25 }
 0x19e   : > { %2424 = vmatpush.bf16.msrb.mxu2 %v3726_v33  ;;  %2437 = vmatpush.bf16.msrb.mxu3 %v3730_v34  ;;  %v3782_v33 = vor.u32 %v4124_v28, %v3781_v6  ;;  %v4117_v34 = vld [vmem:[%s5649_s3 + $0x404] sm:$0xf] }
 0x19f   : > { %2411 = vmatpush.bf16.msrb.mxu1 %v3722_v37  ;;  %2450 = vmatpush.bf16.msra.mxu0 %v3734_v38  ;;  %v3786_v37 = vor.u32 %v4122_v31, %v3783_v32  ;;  %v3765_v38 = vld [vmem:[%s5649_s3 + $0x408] sm:$0xf]  ;;  %v3762_v44 = vor.u32 %v4117_v34, %v3759_v35 }
 0x1a2   : > { %2425 = vmatpush.bf16.msrb.mxu2 %v3710_v45  ;;  %2438 = vmatpush.bf16.msrb.mxu3 %v3714_v46  ;;  %v3766_v45 = vor.u32 %v4120_v39, %v3765_v38  ;;  %v3758_v46 = vor.u32 %v4119_v41, %v3757_v40  ;;  %v4164_v38 = vld [vmem:[%s5651_s5 + $0xf8] sm:$0xff]  ;;  %v4139_v41 = vld [vmem:[%s5651_s5 + $0x30] sm:$0xff] }
 0x1a3   : > { %2412 = vmatpush.bf16.msrb.mxu1 %v3706_v49  ;;  %2451 = vmatpush.bf16.msra.mxu0 %v3718_v50  ;;  %v1215_v49 = vmax.f32 %v4763_v17, 0.0 }
 0x1a5   : > { %v1217_v51 = vpack.c.bf16 %v1215_v49, %v1215_v49  ;;  %v4147_v49 = vld [vmem:[%s5651_s5 + $0x70] sm:$0xff] }
 0x1a6   : > { %2426 = vmatpush.bf16.msrb.mxu2 %v3694_v57  ;;  %2439 = vmatpush.bf16.msrb.mxu3 %v3698_v58 }
 0x1a7   : > { %2413 = vmatpush.bf16.msrb.mxu1 %v3690_v61  ;;  %2452 = vmatpush.bf16.msra.mxu0 %v3702_v62 }
 0x1a8   : > { %3683 = vmatmul.msk.bf16.vlgmr.msra.gmra.mxu1 %vm381_vm2, %v2166_v5  ;;  %3684 = vmatmul.msk.bf16.vlgmr.msra.gmra.mxu2 %vm381_vm2, %v2166_v5 }
 0x1a9   : > { %3685 = vmatmul.msk.bf16.vlgmr.msra.gmra.mxu3 %vm381_vm2, %v2166_v5  ;;  %3686 = vmatmul.msk.bf16.vlgmr.msrb.gmra.mxu0 %vm381_vm2, %v2166_v5 }
 0x1aa   : > { %2578 = vmatpush.bf16.msra.mxu2 %v3810_v8  ;;  %2591 = vmatpush.bf16.msra.mxu3 %v3814_v9 }
 0x1ab   : > { %2565 = vmatpush.bf16.msra.mxu1 %v3806_v12  ;;  %2604 = vmatpush.bf16.msrb.mxu0 %v3818_v15 }
 0x1ae   : > { %2579 = vmatpush.bf16.msra.mxu2 %v3794_v22  ;;  %2592 = vmatpush.bf16.msra.mxu3 %v3798_v23 }
 0x1af   : > { %2566 = vmatpush.bf16.msra.mxu1 %v3790_v26  ;;  %2605 = vmatpush.bf16.msrb.mxu0 %v3802_v27 }
 0x1b2   : > { %2580 = vmatpush.bf16.msra.mxu2 %v3778_v13  ;;  %2593 = vmatpush.bf16.msra.mxu3 %v3782_v33 }
 0x1b3   : > { %2567 = vmatpush.bf16.msra.mxu1 %v3774_v36  ;;  %2606 = vmatpush.bf16.msrb.mxu0 %v3786_v37  ;;  %v4140_v37 = vld [vmem:[%s5651_s5 + $0x38] sm:$0xff] }
 0x1b6   : > { %2581 = vmatpush.bf16.msra.mxu2 %v3762_v44  ;;  %2594 = vmatpush.bf16.msra.mxu3 %v3766_v45  ;;  %v4148_v45 = vld [vmem:[%s5651_s5 + $0x78] sm:$0xff] }
 0x1b7   : > { %2568 = vmatpush.bf16.msra.mxu1 %v3758_v46  ;;  %2607 = vmatpush.bf16.msrb.mxu0 %v3770_v47  ;;  %v4156_v46 = vld [vmem:[%s5651_s5 + $0xb8] sm:$0xff]  ;;  %v4138_v47 = vld [vmem:[%s5651_s5 + $0x28] sm:$0xff] }
 0x1b8   : > { %3751 = vmatmul.msk.bf16.vlgmr.msrb.gmra.mxu1 %vm381_vm2, %v2322_v48  ;;  %3752 = vmatmul.msk.bf16.vlgmr.msrb.gmra.mxu2 %vm381_vm2, %v2322_v48 }
 0x1b9   : > { %3753 = vmatmul.msk.bf16.vlgmr.msrb.gmra.mxu3 %vm381_vm2, %v2322_v48  ;;  %3754 = vmatmul.msk.bf16.vlgmr.msra.gmra.mxu0 %vm381_vm2, %v2322_v48  ;;  %v4162_v48 = vld [vmem:[%s5651_s5 + $0xe8] sm:$0xff] }
 0x1ba   : > { %2909 = vmatpush.bf16.msrb.mxu2 %v4148_v45  ;;  %2922 = vmatpush.bf16.msrb.mxu3 %v4156_v46 }
 0x1bb   : > { %2896 = vmatpush.bf16.msrb.mxu1 %v4140_v37  ;;  %2935 = vmatpush.bf16.msra.mxu0 %v4164_v38 }
 0x1be   : > { %2910 = vmatpush.bf16.msrb.mxu2 %v4147_v49 }
 0x1bf   : > { %2897 = vmatpush.bf16.msrb.mxu1 %v4139_v41  ;;  %2936 = vmatpush.bf16.msra.mxu0 %v4163_v42  ;;  %v2617_v41 = vld [vmem:[%s5650_s4] sm:$0xf] }
 0x1c0   : > { %v2622_v49 = vperm.slane %v2617_v41, 3 }
 0x1c3   : > { %2898 = vmatpush.bf16.msrb.mxu1 %v4138_v47  ;;  %2937 = vmatpush.bf16.msra.mxu0 %v4162_v48 }
 0x1c5   : > { %v1348_v50 = vpop.f32.mrf.mxu1 }
 0x1c6   : > { %v1387_v52 = vpop.f32.mrf.mxu0 }
 0x1c8   : > { %3819 = vmatmul.msk.bf16.vlgmr.msra.gmra.mxu1 %vm381_vm2, %v1217_v51  ;;  %3820 = vmatmul.msk.bf16.vlgmr.msra.gmra.mxu2 %vm381_vm2, %v1217_v51 }
 0x1c9   : > { %3821 = vmatmul.msk.bf16.vlgmr.msra.gmra.mxu3 %vm381_vm2, %v1217_v51  ;;  %3822 = vmatmul.msk.bf16.vlgmr.msrb.gmra.mxu0 %vm381_vm2, %v1217_v51 }
 0x1cb   : > { %v1361_v21 = vpop.f32.mrf.mxu2 }
 0x1cc   : > { %v1374_v53 = vpop.f32.mrf.mxu3 }
 0x1cd   : > { %v1350_v54 = vpop.f32.mrf.mxu1 }
 0x1ce   : > { %v1389_v55 = vpop.f32.mrf.mxu0  ;;  %v4161_v54 = vld [vmem:[%s5651_s5 + $0xe0] sm:$0xff] }
 0x1cf   : > { %2938 = vmatpush.bf16.msra.mxu0 %v4161_v54 }
 0x1d3   : > { %v1363_v56 = vpop.f32.mrf.mxu2 }
 0x1d4   : > { %v1376_v57 = vpop.f32.mrf.mxu3  ;;  %v4146_v56 = vld [vmem:[%s5651_s5 + $0x68] sm:$0xff] }
 0x1d5   : > { %v1483_v58 = vpop.f32.mrf.mxu1  ;;  %v4154_v57 = vld [vmem:[%s5651_s5 + $0xa8] sm:$0xff]  ;;  %2911 = vmatpush.bf16.msrb.mxu2 %v4146_v56 }
 0x1d6   : > { %v1484_v59 = vadd.f32 %v1483_v58, %v1348_v50  ;;  %v1522_v17 = vpop.f32.mrf.mxu0  ;;  %v4155_v50 = vld [vmem:[%s5651_s5 + $0xb0] sm:$0xff]  ;;  %v4136_v58 = vld [vmem:[%s5651_s5 + $0x18] sm:$0xff] }
 0x1d7   : > { %v1523_v60 = vadd.f32 %v1522_v17, %v1387_v52  ;;  %2923 = vmatpush.bf16.msrb.mxu3 %v4155_v50  ;;  %v4145_v17 = vld [vmem:[%s5651_s5 + $0x60] sm:$0xff] }
 0x1d9   : > { %2912 = vmatpush.bf16.msrb.mxu2 %v4145_v17 }
 0x1db   : > { %v1496_v61 = vpop.f32.mrf.mxu2  ;;  %2924 = vmatpush.bf16.msrb.mxu3 %v4154_v57 }
 0x1dc   : > { %v1497_v62 = vadd.f32 %v1496_v61, %v1361_v21  ;;  %v1509_v63 = vpop.f32.mrf.mxu3 }
 0x1dd   : > { %v1510_v0 = vadd.f32 %v1509_v63, %v1374_v53  ;;  %v1485_v1 = vpop.f32.mrf.mxu1  ;;  %v4137_v53 = vld [vmem:[%s5651_s5 + $0x20] sm:$0xff]  ;;  %v4135_v63 = vld [vmem:[%s5651_s5 + $0x10] sm:$0xff] }
 0x1de   : > { %v1524_v2 = vpop.f32.mrf.mxu0  ;;  %2899 = vmatpush.bf16.msrb.mxu1 %v4137_v53 }
 0x1e2   : > { %2900 = vmatpush.bf16.msrb.mxu1 %v4136_v58 }
 0x1e3   : > { %v1498_v3 = vpop.f32.mrf.mxu2 }
 0x1e4   : > { %v1511_v4 = vpop.f32.mrf.mxu3 }
 0x1e5   : > { %v1635_v5 = vpop.f32.mrf.mxu1 }
 0x1e6   : > { %v1678_v8 = vadd.f32 %v1635_v5, %v1484_v59  ;;  %v1674_v9 = vpop.f32.mrf.mxu0  ;;  %v4160_v59 = vld [vmem:[%s5651_s5 + $0xd8] sm:$0xff]  ;;  %2901 = vmatpush.bf16.msrb.mxu1 %v4135_v63 }
 0x1e7   : > { %v1681_v10 = vadd.f32 %v1674_v9, %v1523_v60  ;;  %v4153_v60 = vld [vmem:[%s5651_s5 + $0xa0] sm:$0xff]  ;;  %2939 = vmatpush.bf16.msra.mxu0 %v4160_v59  ;;  %v4152_v9 = vld [vmem:[%s5651_s5 + $0x98] sm:$0xff]  ;;  %v2620_v59 = vperm.slane %v2617_v41, 1 }
 0x1e8   : > { %2925 = vmatpush.bf16.msrb.mxu3 %v4153_v60 }
 0x1eb   : > { %v1648_v11 = vpop.f32.mrf.mxu2 }
 0x1ec   : > { %v1679_v12 = vadd.f32 %v1648_v11, %v1497_v62  ;;  %v1661_v15 = vpop.f32.mrf.mxu3  ;;  %2926 = vmatpush.bf16.msrb.mxu3 %v4152_v9 }
 0x1ed   : > { %v1680_v16 = vadd.f32 %v1661_v15, %v1510_v0  ;;  %v1637_v14 = vpop.f32.mrf.mxu1  ;;  %v4159_v0 = vld [vmem:[%s5651_s5 + $0xd0] sm:$0xff] }
 0x1ee   : > { %v1676_v7 = vpop.f32.mrf.mxu0  ;;  %2940 = vmatpush.bf16.msra.mxu0 %v4159_v0  ;;  %v4143_v15 = vld [vmem:[%s5651_s5 + $0x50] sm:$0xff] }
 0x1ef   : > { %v4133_v7 = vld [vmem:[%s5651_s5] sm:$0xff] }
 0x1f3   : > { %v1650_v18 = vpop.f32.mrf.mxu2 }
 0x1f4   : > { %v1663_v19 = vpop.f32.mrf.mxu3  ;;  %v4157_v18 = vld [vmem:[%s5651_s5 + $0xc0] sm:$0xff] }
 0x1f5   : > { %v1791_v20 = vpop.f32.mrf.mxu1  ;;  %v4142_v19 = vld [vmem:[%s5651_s5 + $0x48] sm:$0xff] }
 0x1f6   : > { %v5476_v22 = vadd.f32 %v1791_v20, %v1678_v8  ;;  %v1830_v23 = vpop.f32.mrf.mxu0  ;;  %v4144_v8 = vld [vmem:[%s5651_s5 + $0x58] sm:$0xff] }
 0x1f7   : > { %v5478_v24 = vadd.f32 %v1830_v23, %v1681_v10  ;;  %v4134_v10 = vld [vmem:[%s5651_s5 + $0x8] sm:$0xff]  ;;  %2913 = vmatpush.bf16.msrb.mxu2 %v4144_v8 }
 0x1f8   : > { %2902 = vmatpush.bf16.msrb.mxu1 %v4134_v10  ;;  %v4150_v23 = vld [vmem:[%s5651_s5 + $0x88] sm:$0xff] }
 0x1fb   : > { %v1804_v25 = vpop.f32.mrf.mxu2  ;;  %2914 = vmatpush.bf16.msrb.mxu2 %v4143_v15 }
 0x1fc   : > { %v5480_v26 = vadd.f32 %v1804_v25, %v1679_v12  ;;  %v1817_v27 = vpop.f32.mrf.mxu3  ;;  %v4158_v12 = vld [vmem:[%s5651_s5 + $0xc8] sm:$0xff]  ;;  %2903 = vmatpush.bf16.msrb.mxu1 %v4133_v7 }
 0x1fd   : > { %v5482_v6 = vadd.f32 %v1817_v27, %v1680_v16  ;;  %v1793_v28 = vpop.f32.mrf.mxu1  ;;  %v4151_v16 = vld [vmem:[%s5651_s5 + $0x90] sm:$0xff]  ;;  %2941 = vmatpush.bf16.msra.mxu0 %v4158_v12 }
 0x1fe   : > { %v1832_v29 = vpop.f32.mrf.mxu0  ;;  %2927 = vmatpush.bf16.msrb.mxu3 %v4151_v16  ;;  %v4141_v28 = vld [vmem:[%s5651_s5 + $0x40] sm:$0xff] }
 0x1ff   : > { %2915 = vmatpush.bf16.msrb.mxu2 %v4142_v19  ;;  %v4149_v29 = vld [vmem:[%s5651_s5 + $0x80] sm:$0xff] }
 0x200   : > { %v2703_v16 = vld [vmem:[%s5652_s6] sm:$0x1] }
 0x201   : > { %2942 = vmatpush.bf16.msra.mxu0 %v4157_v18 }
 0x202   : > { %2928 = vmatpush.bf16.msrb.mxu3 %v4150_v23 }
 0x203   : > { %v1806_v30 = vpop.f32.mrf.mxu2  ;;  %2916 = vmatpush.bf16.msrb.mxu2 %v4141_v28 }
 0x204   : > { %v1819_v31 = vpop.f32.mrf.mxu3 }
 0x205   : > { %v5484_v32 = vpop.f32.mrf.mxu1 }
 0x206   : > { %v5486_v13 = vpop.f32.mrf.mxu0  ;;  %2929 = vmatpush.bf16.msrb.mxu3 %v4149_v29 }
 0x207   : > { %v1993_v38 = vadd.f32 %v5486_v13, %v5478_v24 }
 0x20b   : > { %v5488_v33 = vpop.f32.mrf.mxu2 }
 0x20c   : > { %v5490_v34 = vpop.f32.mrf.mxu3  ;;  %v1991_v47 = vadd.f32 %v5488_v33, %v5480_v26 }
 0x20d   : > { %v1949_v35 = vpop.f32.mrf.mxu1  ;;  %v1992_v24 = vadd.f32 %v5490_v34, %v5482_v6  ;;  %v2621_v34 = vperm.slane %v2617_v41, 2 }
 0x20e   : > { %v1988_v36 = vpop.f32.mrf.mxu0 }
 0x20f   : > { %v1990_v36 = vadd.f32 %v5484_v32, %v5476_v22  ;;  %v2619_v32 = vperm.slane %v2617_v41, 0 }
 0x213   : > { %v1962_v39 = vpop.f32.mrf.mxu2 }
 0x214   : > { %v1975_v40 = vpop.f32.mrf.mxu3 }
 0x215   : > { %v5504_v43 = vpop.f32.mrf.mxu1 }
 0x216   : > { %v5506_v44 = vpop.f32.mrf.mxu0  ;;  %v2146_v39 = vadd.f32 %v5504_v43, %v1990_v36 }
 0x217   : > { %v2149_v40 = vadd.f32 %v5506_v44, %v1993_v38 }
 0x21b   : > { %v5526_v51 = vpop.f32.mrf.mxu2 }
 0x21c   : > { %v5528_v52 = vpop.f32.mrf.mxu3  ;;  %v2147_v44 = vadd.f32 %v5526_v51, %v1991_v47 }
 0x21d   : > { %v2105_v21 = vpop.f32.mrf.mxu1  ;;  %v2148_v53 = vadd.f32 %v5528_v52, %v1992_v24 }
 0x21e   : > { %v2144_v55 = vpop.f32.mrf.mxu0 }
 0x223   : > { %v2118_v61 = vpop.f32.mrf.mxu2 }
 0x224   : > { %v2131_v62 = vpop.f32.mrf.mxu3 }
 0x225   : > { %v2259_v1 = vpop.f32.mrf.mxu1 }
 0x226   : > { %v2298_v2 = vpop.f32.mrf.mxu0  ;;  %v2302_v42 = vadd.f32 %v2259_v1, %v2146_v39 }
 0x227   : > { %v2305_v45 = vadd.f32 %v2298_v2, %v2149_v40 }
 0x22b   : > { %v2272_v3 = vpop.f32.mrf.mxu2 }
 0x22c   : > { %v2285_v4 = vpop.f32.mrf.mxu3  ;;  %v2303_v55 = vadd.f32 %v2272_v3, %v2147_v44 }
 0x22d   : > { %v2261_v5 = vpop.f32.mrf.mxu1  ;;  %v2304_v57 = vadd.f32 %v2285_v4, %v2148_v53 }
 0x22e   : > { %v2300_v11 = vpop.f32.mrf.mxu0 }
 0x233   : > { %v2274_v14 = vpop.f32.mrf.mxu2 }
 0x234   : > { %v2287_v20 = vpop.f32.mrf.mxu3 }
 0x235   : > { %v2415_v25 = vpop.f32.mrf.mxu1 }
 0x236   : > { %v2454_v27 = vpop.f32.mrf.mxu0  ;;  %v2458_v48 = vadd.f32 %v2415_v25, %v2302_v42 }
 0x237   : > { %v2461_v13 = vadd.f32 %v2454_v27, %v2305_v45 }
 0x23b   : > { %v2428_v30 = vpop.f32.mrf.mxu2 }
 0x23c   : > { %v2441_v31 = vpop.f32.mrf.mxu3  ;;  %v2459_v33 = vadd.f32 %v2428_v30, %v2303_v55 }
 0x23d   : > { %v2417_v35 = vpop.f32.mrf.mxu1  ;;  %v2460_v17 = vadd.f32 %v2441_v31, %v2304_v57 }
 0x23e   : > { %v2456_v37 = vpop.f32.mrf.mxu0 }
 0x243   : > { %v2430_v46 = vpop.f32.mrf.mxu2 }
 0x244   : > { %v2443_v22 = vpop.f32.mrf.mxu3 }
 0x245   : > { %v2570_v43 = vpop.f32.mrf.mxu1 }
 0x246   : > { %v2613_v50 = vadd.f32 %v2570_v43, %v2458_v48  ;;  %v2609_v21 = vpop.f32.mrf.mxu0 }
 0x247   : > { %v2616_v54 = vadd.f32 %v2609_v21, %v2461_v13 }
 0x248   : > { %v2627_v56 = vadd.f32 %v2619_v32, %v2613_v50 }
 0x249   : > { %v2630_v26 = vadd.f32 %v2622_v49, %v2616_v54 }
 0x24a   : > { %v2631_v58 = vmax.f32 %v2627_v56, 0.0 }
 0x24b   : > { %v2634_v60 = vmax.f32 %v2630_v26, 0.0  ;;  %v2583_v6 = vpop.f32.mrf.mxu2 }
 0x24c   : > { %v2635_v61 = vpack.c.bf16 %v2631_v58, %v2631_v58  ;;  %v2614_v62 = vadd.f32 %v2583_v6, %v2459_v33  ;;  %v2596_v63 = vpop.f32.mrf.mxu3 }
 0x24d   : > { %v2638_v51 = vpack.c.bf16 %v2634_v60, %v2634_v60  ;;  %v2615_v0 = vadd.f32 %v2596_v63, %v2460_v17  ;;  %v2572_v1 = vpop.f32.mrf.mxu1 }
 0x24e   : > { %v2628_v2 = vadd.f32 %v2620_v59, %v2614_v62  ;;  %v2611_v52 = vpop.f32.mrf.mxu0  ;;  %2904 = vmatmul.bf16.vlgmr.msrb.gmra.mxu1 %v2635_v61 }
 0x24f   : > { %v2629_v3 = vadd.f32 %v2621_v34, %v2615_v0  ;;  %2943 = vmatmul.bf16.vlgmr.msra.gmra.mxu0 %v2638_v51 }
 0x250   : > { %v2632_v4 = vmax.f32 %v2628_v2, 0.0 }
 0x251   : > { %v2633_v5 = vmax.f32 %v2629_v3, 0.0 }
 0x252   : > { %v2636_v8 = vpack.c.bf16 %v2632_v4, %v2632_v4 }
 0x253   : > { %v2637_v9 = vpack.c.bf16 %v2633_v5, %v2633_v5  ;;  %v2585_v10 = vpop.f32.mrf.mxu2 }
 0x254   : > { %v2598_v11 = vpop.f32.mrf.mxu3  ;;  %2917 = vmatmul.bf16.vlgmr.msrb.gmra.mxu2 %v2636_v8 }
 0x255   : > { %2930 = vmatmul.bf16.vlgmr.msrb.gmra.mxu3 %v2637_v9 }
 0x2cb   : > { %v2905_v12 = vpop.f32.mrf.mxu1 }
 0x2cc   : > { %v2944_v15 = vpop.f32.mrf.mxu0  ;;  %v2906_v18 = vadd.f32 %v2905_v12, %v2703_v16 }
 0x2d3   : > { %v2907_v14 = vpop.f32.mrf.mxu1 }
 0x2d4   : > { %v2946_v7 = vpop.f32.mrf.mxu0 }
 0x2d7   : > { %v2918_v19 = vpop.f32.mrf.mxu2 }
 0x2d8   : > { %v2919_v20 = vadd.f32 %v2918_v19, %v2906_v18  ;;  %v2931_v23 = vpop.f32.mrf.mxu3 }
 0x2da   : > { %v2932_v25 = vadd.f32 %v2931_v23, %v2919_v20 }
 0x2dc   : > { %v2945_v27 = vadd.f32 %v2944_v15, %v2932_v25 }
 0x2de   : > { %2948 = vst [vmem:[%s270_s15] sm:$0x1] %v2945_v27 }
 0x2df   : > { %v2920_v28 = vpop.f32.mrf.mxu2 }
 0x2e0   : > { %4233 = shalt.err (!%p4230_p3)
}
 0x2e1   : > { %4166 = dma.vmem_to_hbm [thread:$0]  (%p4348_p5), %s2961_s16, 16, %s2963_s17, %s2950_s18   ;;  %v2933_v29 = vpop.f32.mrf.mxu3 }
 0x2e2 PF: > { %p4172_p4 = scmp.ge.s32.totalorder %s4268_s27, 2  ;;  %s2974_s29 = sand.u32 1, %s4256_s24  }
 0x2e3   : > { %s2975_s8 = scalar_lea.sflag [#allocation3], %s2974_s29 }
 0x2e4   : > { %p4169_p7 = pnand %p4172_p4, %p4352_p6 }
 0x2e6   : > { %p4170_p8 = pneg %p4169_p7 }
 0x2e8   : > { %4251 = dma.done.wait (%p4170_p8), %s2975_s8, 16  }
 0x2e9   : > { %4253 = vsyncadd (%p4170_p8), %s2975_s8, 4294967280  ;;  %p17_p9 = scmp.ge.s32.totalorder %s4335_s30, 4   ;;  %s5656_s24 = smov %s4260_s25 }
 0x2ea   : > { %s5657_s25 = smov %s4264_s26  ;;  %s5658_s26 = smov %s4346_s10 }
 0x2eb   : > { %s5659_s27 = smov %s4335_s30  ;;  %19 = sbr.rel (!%p17_p9) target bundleno = 3 (0x3), region = 133 }
 0x2f0   :  { %2980 = vsyncpa [#allocation3], 1 }
 0x2f1   :  { %2982 = vsyncpa [#allocation3 + $0x1], 1 }

</bundles_post_ra>
